<compile_context>
chip_gen: v6e
topology: v6e:2x2x1
jax: 0.10.0
libtpu: 0.0.40
codegen_flags: <defaults>
</compile_context>

<pallas_src>
import functools

import jax
import jax.numpy as jnp
from jax.experimental import pallas as pl
from jax.experimental.pallas import tpu as pltpu

HIDDEN = 100   # nn.Linear(1, 100) -> nn.Linear(100, 1)
LANES = 128    # vreg lane width


def _round_up(n, m):
    return ((n + m - 1) // m) * m


def _mlp_kernel(x_ref, w1_ref, b1_ref, w2_ref, b2_ref, o_ref, *, n_hidden, activation):
    # x_ref : (TR, 128) f32 VMEM   batch laid out along lanes (lane-dense I/O)
    # w1_ref: (n_hidden,) f32 SMEM fc1 weights (scalars)
    # b1_ref: (n_hidden,) f32 SMEM fc1 bias
    # w2_ref: (n_hidden,) f32 SMEM fc2 weights
    # b2_ref: (1,)        f32 SMEM fc2 bias
    # o_ref : (TR, 128) f32 VMEM
    x = x_ref[...]
    acc = jnp.full_like(x, b2_ref[0])
    # Statically-unrolled loop over the real hidden units only (no pad lanes).
    for j in range(n_hidden):
        h = x * w1_ref[j] + b1_ref[j]
        if activation == "relu":
            h = jnp.maximum(h, 0.0)
        elif activation == "tanh":
            # sigmoid affine constants were folded into the weights in the
            # wrapper, so only the EUP tanh remains here.
            h = jnp.tanh(h)
        # activation == "none": identity
        acc = acc + w2_ref[j] * h
    o_ref[...] = acc.astype(o_ref.dtype)


def simple_net_forward(x, params, activation, *, block_rows=256):
    """x: (B, 1). params: w1 (1,100), b1 (100,), w2 (100,1), b2 (1,)."""
    B = x.shape[0]
    out_dtype = x.dtype

    w1 = params["w1"].reshape(HIDDEN).astype(jnp.float32)
    b1 = params["b1"].reshape(HIDDEN).astype(jnp.float32)
    w2 = params["w2"].reshape(HIDDEN).astype(jnp.float32)
    b2 = params["b2"].reshape(1).astype(jnp.float32)

    if activation == "sigmoid":
        # sigmoid(z) = 0.5*(tanh(0.5*z) + 1); fold the affine constants into
        # the weights so the kernel only runs a bare tanh per hidden unit.
        b2 = b2 + 0.5 * jnp.sum(w2)
        w1, b1, w2 = 0.5 * w1, 0.5 * b1, 0.5 * w2
        act, n_hidden = "tanh", HIDDEN
    elif activation == "relu":
        act, n_hidden = "relu", HIDDEN
    else:
        # No activation: the whole net collapses to y = a*x + c.
        a = jnp.sum(w1 * w2)
        c = jnp.sum(b1 * w2) + b2[0]
        w1 = a.reshape(1)
        b1 = jnp.zeros((1,), jnp.float32)
        w2 = jnp.ones((1,), jnp.float32)
        b2 = c.reshape(1)
        act, n_hidden = "none", 1

    # Batch-on-lanes layout: (B, 1) -> (rows, 128), rows padded to a multiple
    # of the (sublane) batch tile so the grid divides evenly.
    total_rows = pl.cdiv(B, LANES)
    block_rows = max(8, _round_up(block_rows, 8))
    tr = min(block_rows, _round_up(total_rows, 8))
    rows_pad = _round_up(total_rows, tr)
    b_pad = rows_pad * LANES

    xf = x.reshape(B).astype(jnp.float32)
    if b_pad != B:
        xf = jnp.pad(xf, (0, b_pad - B))
    x2d = xf.reshape(rows_pad, LANES)

    grid = (rows_pad // tr,)
    kernel = functools.partial(_mlp_kernel, n_hidden=n_hidden, activation=act)

    out = pl.pallas_call(
        kernel,
        out_shape=jax.ShapeDtypeStruct((rows_pad, LANES), jnp.float32),
        grid=grid,
        in_specs=[
            pl.BlockSpec((tr, LANES), lambda i: (i, 0)),        # x batch tile
            pl.BlockSpec(memory_space=pltpu.MemorySpace.SMEM),  # w1 scalars
            pl.BlockSpec(memory_space=pltpu.MemorySpace.SMEM),  # b1 scalars
            pl.BlockSpec(memory_space=pltpu.MemorySpace.SMEM),  # w2 scalars
            pl.BlockSpec(memory_space=pltpu.MemorySpace.SMEM),  # b2 scalar
        ],
        out_specs=pl.BlockSpec((tr, LANES), lambda i: (i, 0)),
        compiler_params=pltpu.CompilerParams(
            dimension_semantics=("parallel",),
            vmem_limit_bytes=32 * 1024 * 1024,
        ),
        cost_estimate=pl.CostEstimate(
            flops=(4 * n_hidden + 1) * b_pad,
            transcendentals=(n_hidden * b_pad if act == "tanh" else 0),
            bytes_accessed=2 * 4 * b_pad + 4 * (3 * n_hidden + 1),
        ),
    )(x2d, w1, b1, w2, b2)

    return out.reshape(b_pad, 1)[:B].astype(out_dtype)


def init_params(key):
    """Deterministic init matching nn.Linear shapes (Kaiming-uniform-ish bounds)."""
    k1, k2, k3, k4 = jax.random.split(key, 4)
    bound1 = 1.0  # 1/sqrt(fan_in=1)
    bound2 = 1.0 / jnp.sqrt(float(HIDDEN))
    return {
        # stored as (in_features, out_features), i.e. transposed vs torch
        "w1": jax.random.uniform(k1, (1, HIDDEN), jnp.float32, -bound1, bound1),
        "b1": jax.random.uniform(k2, (HIDDEN,), jnp.float32, -bound1, bound1),
        "w2": jax.random.uniform(k3, (HIDDEN, 1), jnp.float32, -bound2, bound2),
        "b2": jax.random.uniform(k4, (1,), jnp.float32, -bound2, bound2),
    }


def _reference(x, params, activation):
    h = x @ params["w1"] + params["b1"][None, :]
    if activation == "relu":
        h = jnp.maximum(h, 0.0)
    elif activation == "sigmoid":
        h = jax.nn.sigmoid(h)
    return h @ params["w2"] + params["b2"][None, :]


if __name__ == "__main__":
    key = jax.random.PRNGKey(0)
    kx, kp = jax.random.split(key)
    params = init_params(kp)

    ok = True
    test_cases = [
        (8, 256),    # single tile
        (10, 256),   # exercises the batch-padding path
        (2048, 8),   # exercises a multi-step grid (grid=(2,)) with small tiles
    ]
    for batch, br in test_cases:
        x = jax.random.uniform(kx, (batch, 1), jnp.float32, -jnp.pi, jnp.pi)
        for act in ("relu", "sigmoid", "none"):
            out = jax.block_until_ready(
                simple_net_forward(x, params, act, block_rows=br))
            ref = _reference(x, params, act)
            if not jnp.allclose(out, ref, atol=1e-5, rtol=1e-5):
                ok = False
                print(f"MISMATCH batch={batch} act={act} "
                      f"max_err={float(jnp.max(jnp.abs(out - ref)))}")

    if ok:
        print("KERNEL_OK")
</pallas_src>

<mosaic_0001>
module attributes {stable_mosaic.version = 11 : i64} {
  func.func @_mlp_kernel(%arg0: i32, %arg1: memref<8x128xf32, #tpu.memory_space<vmem>>, %arg2: memref<100xf32, #tpu.memory_space<smem>>, %arg3: memref<100xf32, #tpu.memory_space<smem>>, %arg4: memref<100xf32, #tpu.memory_space<smem>>, %arg5: memref<1xf32, #tpu.memory_space<smem>>, %arg6: memref<8x128xf32, #tpu.memory_space<vmem>>) attributes {dimension_semantics = [#tpu.dimension_semantics<parallel>], iteration_bounds = array<i64: 1>, scalar_prefetch = 0 : i64, scratch_operands = 0 : i64, tpu.core_type = #tpu.core_type<tc>, window_params = [{transform_indices = @transform_0, window_bounds = array<i64: 8, 128>}, {transform_indices = @transform_1, window_bounds = array<i64: 100>}, {transform_indices = @transform_2, window_bounds = array<i64: 100>}, {transform_indices = @transform_3, window_bounds = array<i64: 100>}, {transform_indices = @transform_4, window_bounds = array<i64: 1>}, {transform_indices = @transform_5, window_bounds = array<i64: 8, 128>}]} {
    %c0 = arith.constant 0 : index
    %c0_0 = arith.constant 0 : index
    %0 = vector.load %arg1[%c0, %c0_0] : memref<8x128xf32, #tpu.memory_space<vmem>>, vector<8x128xf32>
    %c0_1 = arith.constant 0 : index
    %1 = memref.load %arg5[%c0_1] : memref<1xf32, #tpu.memory_space<smem>>
    %2 = vector.broadcast %1 : f32 to vector<8x128xf32>
    %c0_2 = arith.constant 0 : index
    %3 = memref.load %arg2[%c0_2] : memref<100xf32, #tpu.memory_space<smem>>
    %4 = vector.broadcast %3 : f32 to vector<8x128xf32>
    %5 = arith.mulf %0, %4 : vector<8x128xf32>
    %c0_3 = arith.constant 0 : index
    %6 = memref.load %arg3[%c0_3] : memref<100xf32, #tpu.memory_space<smem>>
    %7 = vector.broadcast %6 : f32 to vector<8x128xf32>
    %8 = arith.addf %5, %7 : vector<8x128xf32>
    %cst = arith.constant 0.000000e+00 : f32
    %9 = vector.broadcast %cst : f32 to vector<8x128xf32>
    %10 = arith.maximumf %8, %9 : vector<8x128xf32>
    %c0_4 = arith.constant 0 : index
    %11 = memref.load %arg4[%c0_4] : memref<100xf32, #tpu.memory_space<smem>>
    %12 = vector.broadcast %11 : f32 to vector<8x128xf32>
    %13 = arith.mulf %12, %10 : vector<8x128xf32>
    %14 = arith.addf %2, %13 : vector<8x128xf32>
    %c1 = arith.constant 1 : index
    %15 = memref.load %arg2[%c1] : memref<100xf32, #tpu.memory_space<smem>>
    %16 = vector.broadcast %15 : f32 to vector<8x128xf32>
    %17 = arith.mulf %0, %16 : vector<8x128xf32>
    %c1_5 = arith.constant 1 : index
    %18 = memref.load %arg3[%c1_5] : memref<100xf32, #tpu.memory_space<smem>>
    %19 = vector.broadcast %18 : f32 to vector<8x128xf32>
    %20 = arith.addf %17, %19 : vector<8x128xf32>
    %cst_6 = arith.constant 0.000000e+00 : f32
    %21 = vector.broadcast %cst_6 : f32 to vector<8x128xf32>
    %22 = arith.maximumf %20, %21 : vector<8x128xf32>
    %c1_7 = arith.constant 1 : index
    %23 = memref.load %arg4[%c1_7] : memref<100xf32, #tpu.memory_space<smem>>
    %24 = vector.broadcast %23 : f32 to vector<8x128xf32>
    %25 = arith.mulf %24, %22 : vector<8x128xf32>
    %26 = arith.addf %14, %25 : vector<8x128xf32>
    %c2 = arith.constant 2 : index
    %27 = memref.load %arg2[%c2] : memref<100xf32, #tpu.memory_space<smem>>
    %28 = vector.broadcast %27 : f32 to vector<8x128xf32>
    %29 = arith.mulf %0, %28 : vector<8x128xf32>
    %c2_8 = arith.constant 2 : index
    %30 = memref.load %arg3[%c2_8] : memref<100xf32, #tpu.memory_space<smem>>
    %31 = vector.broadcast %30 : f32 to vector<8x128xf32>
    %32 = arith.addf %29, %31 : vector<8x128xf32>
    %cst_9 = arith.constant 0.000000e+00 : f32
    %33 = vector.broadcast %cst_9 : f32 to vector<8x128xf32>
    %34 = arith.maximumf %32, %33 : vector<8x128xf32>
    %c2_10 = arith.constant 2 : index
    %35 = memref.load %arg4[%c2_10] : memref<100xf32, #tpu.memory_space<smem>>
    %36 = vector.broadcast %35 : f32 to vector<8x128xf32>
    %37 = arith.mulf %36, %34 : vector<8x128xf32>
    %38 = arith.addf %26, %37 : vector<8x128xf32>
    %c3 = arith.constant 3 : index
    %39 = memref.load %arg2[%c3] : memref<100xf32, #tpu.memory_space<smem>>
    %40 = vector.broadcast %39 : f32 to vector<8x128xf32>
    %41 = arith.mulf %0, %40 : vector<8x128xf32>
    %c3_11 = arith.constant 3 : index
    %42 = memref.load %arg3[%c3_11] : memref<100xf32, #tpu.memory_space<smem>>
    %43 = vector.broadcast %42 : f32 to vector<8x128xf32>
    %44 = arith.addf %41, %43 : vector<8x128xf32>
    %cst_12 = arith.constant 0.000000e+00 : f32
    %45 = vector.broadcast %cst_12 : f32 to vector<8x128xf32>
    %46 = arith.maximumf %44, %45 : vector<8x128xf32>
    %c3_13 = arith.constant 3 : index
    %47 = memref.load %arg4[%c3_13] : memref<100xf32, #tpu.memory_space<smem>>
    %48 = vector.broadcast %47 : f32 to vector<8x128xf32>
    %49 = arith.mulf %48, %46 : vector<8x128xf32>
    %50 = arith.addf %38, %49 : vector<8x128xf32>
    %c4 = arith.constant 4 : index
    %51 = memref.load %arg2[%c4] : memref<100xf32, #tpu.memory_space<smem>>
    %52 = vector.broadcast %51 : f32 to vector<8x128xf32>
    %53 = arith.mulf %0, %52 : vector<8x128xf32>
    %c4_14 = arith.constant 4 : index
    %54 = memref.load %arg3[%c4_14] : memref<100xf32, #tpu.memory_space<smem>>
    %55 = vector.broadcast %54 : f32 to vector<8x128xf32>
    %56 = arith.addf %53, %55 : vector<8x128xf32>
    %cst_15 = arith.constant 0.000000e+00 : f32
    %57 = vector.broadcast %cst_15 : f32 to vector<8x128xf32>
    %58 = arith.maximumf %56, %57 : vector<8x128xf32>
    %c4_16 = arith.constant 4 : index
    %59 = memref.load %arg4[%c4_16] : memref<100xf32, #tpu.memory_space<smem>>
    %60 = vector.broadcast %59 : f32 to vector<8x128xf32>
    %61 = arith.mulf %60, %58 : vector<8x128xf32>
    %62 = arith.addf %50, %61 : vector<8x128xf32>
    %c5 = arith.constant 5 : index
    %63 = memref.load %arg2[%c5] : memref<100xf32, #tpu.memory_space<smem>>
    %64 = vector.broadcast %63 : f32 to vector<8x128xf32>
    %65 = arith.mulf %0, %64 : vector<8x128xf32>
    %c5_17 = arith.constant 5 : index
    %66 = memref.load %arg3[%c5_17] : memref<100xf32, #tpu.memory_space<smem>>
    %67 = vector.broadcast %66 : f32 to vector<8x128xf32>
    %68 = arith.addf %65, %67 : vector<8x128xf32>
    %cst_18 = arith.constant 0.000000e+00 : f32
    %69 = vector.broadcast %cst_18 : f32 to vector<8x128xf32>
    %70 = arith.maximumf %68, %69 : vector<8x128xf32>
    %c5_19 = arith.constant 5 : index
    %71 = memref.load %arg4[%c5_19] : memref<100xf32, #tpu.memory_space<smem>>
    %72 = vector.broadcast %71 : f32 to vector<8x128xf32>
    %73 = arith.mulf %72, %70 : vector<8x128xf32>
    %74 = arith.addf %62, %73 : vector<8x128xf32>
    %c6 = arith.constant 6 : index
    %75 = memref.load %arg2[%c6] : memref<100xf32, #tpu.memory_space<smem>>
    %76 = vector.broadcast %75 : f32 to vector<8x128xf32>
    %77 = arith.mulf %0, %76 : vector<8x128xf32>
    %c6_20 = arith.constant 6 : index
    %78 = memref.load %arg3[%c6_20] : memref<100xf32, #tpu.memory_space<smem>>
    %79 = vector.broadcast %78 : f32 to vector<8x128xf32>
    %80 = arith.addf %77, %79 : vector<8x128xf32>
    %cst_21 = arith.constant 0.000000e+00 : f32
    %81 = vector.broadcast %cst_21 : f32 to vector<8x128xf32>
    %82 = arith.maximumf %80, %81 : vector<8x128xf32>
    %c6_22 = arith.constant 6 : index
    %83 = memref.load %arg4[%c6_22] : memref<100xf32, #tpu.memory_space<smem>>
    %84 = vector.broadcast %83 : f32 to vector<8x128xf32>
    %85 = arith.mulf %84, %82 : vector<8x128xf32>
    %86 = arith.addf %74, %85 : vector<8x128xf32>
    %c7 = arith.constant 7 : index
    %87 = memref.load %arg2[%c7] : memref<100xf32, #tpu.memory_space<smem>>
    %88 = vector.broadcast %87 : f32 to vector<8x128xf32>
    %89 = arith.mulf %0, %88 : vector<8x128xf32>
    %c7_23 = arith.constant 7 : index
    %90 = memref.load %arg3[%c7_23] : memref<100xf32, #tpu.memory_space<smem>>
    %91 = vector.broadcast %90 : f32 to vector<8x128xf32>
    %92 = arith.addf %89, %91 : vector<8x128xf32>
    %cst_24 = arith.constant 0.000000e+00 : f32
    %93 = vector.broadcast %cst_24 : f32 to vector<8x128xf32>
    %94 = arith.maximumf %92, %93 : vector<8x128xf32>
    %c7_25 = arith.constant 7 : index
    %95 = memref.load %arg4[%c7_25] : memref<100xf32, #tpu.memory_space<smem>>
    %96 = vector.broadcast %95 : f32 to vector<8x128xf32>
    %97 = arith.mulf %96, %94 : vector<8x128xf32>
    %98 = arith.addf %86, %97 : vector<8x128xf32>
    %c8 = arith.constant 8 : index
    %99 = memref.load %arg2[%c8] : memref<100xf32, #tpu.memory_space<smem>>
    %100 = vector.broadcast %99 : f32 to vector<8x128xf32>
    %101 = arith.mulf %0, %100 : vector<8x128xf32>
    %c8_26 = arith.constant 8 : index
    %102 = memref.load %arg3[%c8_26] : memref<100xf32, #tpu.memory_space<smem>>
    %103 = vector.broadcast %102 : f32 to vector<8x128xf32>
    %104 = arith.addf %101, %103 : vector<8x128xf32>
    %cst_27 = arith.constant 0.000000e+00 : f32
    %105 = vector.broadcast %cst_27 : f32 to vector<8x128xf32>
    %106 = arith.maximumf %104, %105 : vector<8x128xf32>
    %c8_28 = arith.constant 8 : index
    %107 = memref.load %arg4[%c8_28] : memref<100xf32, #tpu.memory_space<smem>>
    %108 = vector.broadcast %107 : f32 to vector<8x128xf32>
    %109 = arith.mulf %108, %106 : vector<8x128xf32>
    %110 = arith.addf %98, %109 : vector<8x128xf32>
    %c9 = arith.constant 9 : index
    %111 = memref.load %arg2[%c9] : memref<100xf32, #tpu.memory_space<smem>>
    %112 = vector.broadcast %111 : f32 to vector<8x128xf32>
    %113 = arith.mulf %0, %112 : vector<8x128xf32>
    %c9_29 = arith.constant 9 : index
    %114 = memref.load %arg3[%c9_29] : memref<100xf32, #tpu.memory_space<smem>>
    %115 = vector.broadcast %114 : f32 to vector<8x128xf32>
    %116 = arith.addf %113, %115 : vector<8x128xf32>
    %cst_30 = arith.constant 0.000000e+00 : f32
    %117 = vector.broadcast %cst_30 : f32 to vector<8x128xf32>
    %118 = arith.maximumf %116, %117 : vector<8x128xf32>
    %c9_31 = arith.constant 9 : index
    %119 = memref.load %arg4[%c9_31] : memref<100xf32, #tpu.memory_space<smem>>
    %120 = vector.broadcast %119 : f32 to vector<8x128xf32>
    %121 = arith.mulf %120, %118 : vector<8x128xf32>
    %122 = arith.addf %110, %121 : vector<8x128xf32>
    %c10 = arith.constant 10 : index
    %123 = memref.load %arg2[%c10] : memref<100xf32, #tpu.memory_space<smem>>
    %124 = vector.broadcast %123 : f32 to vector<8x128xf32>
    %125 = arith.mulf %0, %124 : vector<8x128xf32>
    %c10_32 = arith.constant 10 : index
    %126 = memref.load %arg3[%c10_32] : memref<100xf32, #tpu.memory_space<smem>>
    %127 = vector.broadcast %126 : f32 to vector<8x128xf32>
    %128 = arith.addf %125, %127 : vector<8x128xf32>
    %cst_33 = arith.constant 0.000000e+00 : f32
    %129 = vector.broadcast %cst_33 : f32 to vector<8x128xf32>
    %130 = arith.maximumf %128, %129 : vector<8x128xf32>
    %c10_34 = arith.constant 10 : index
    %131 = memref.load %arg4[%c10_34] : memref<100xf32, #tpu.memory_space<smem>>
    %132 = vector.broadcast %131 : f32 to vector<8x128xf32>
    %133 = arith.mulf %132, %130 : vector<8x128xf32>
    %134 = arith.addf %122, %133 : vector<8x128xf32>
    %c11 = arith.constant 11 : index
    %135 = memref.load %arg2[%c11] : memref<100xf32, #tpu.memory_space<smem>>
    %136 = vector.broadcast %135 : f32 to vector<8x128xf32>
    %137 = arith.mulf %0, %136 : vector<8x128xf32>
    %c11_35 = arith.constant 11 : index
    %138 = memref.load %arg3[%c11_35] : memref<100xf32, #tpu.memory_space<smem>>
    %139 = vector.broadcast %138 : f32 to vector<8x128xf32>
    %140 = arith.addf %137, %139 : vector<8x128xf32>
    %cst_36 = arith.constant 0.000000e+00 : f32
    %141 = vector.broadcast %cst_36 : f32 to vector<8x128xf32>
    %142 = arith.maximumf %140, %141 : vector<8x128xf32>
    %c11_37 = arith.constant 11 : index
    %143 = memref.load %arg4[%c11_37] : memref<100xf32, #tpu.memory_space<smem>>
    %144 = vector.broadcast %143 : f32 to vector<8x128xf32>
    %145 = arith.mulf %144, %142 : vector<8x128xf32>
    %146 = arith.addf %134, %145 : vector<8x128xf32>
    %c12 = arith.constant 12 : index
    %147 = memref.load %arg2[%c12] : memref<100xf32, #tpu.memory_space<smem>>
    %148 = vector.broadcast %147 : f32 to vector<8x128xf32>
    %149 = arith.mulf %0, %148 : vector<8x128xf32>
    %c12_38 = arith.constant 12 : index
    %150 = memref.load %arg3[%c12_38] : memref<100xf32, #tpu.memory_space<smem>>
    %151 = vector.broadcast %150 : f32 to vector<8x128xf32>
    %152 = arith.addf %149, %151 : vector<8x128xf32>
    %cst_39 = arith.constant 0.000000e+00 : f32
    %153 = vector.broadcast %cst_39 : f32 to vector<8x128xf32>
    %154 = arith.maximumf %152, %153 : vector<8x128xf32>
    %c12_40 = arith.constant 12 : index
    %155 = memref.load %arg4[%c12_40] : memref<100xf32, #tpu.memory_space<smem>>
    %156 = vector.broadcast %155 : f32 to vector<8x128xf32>
    %157 = arith.mulf %156, %154 : vector<8x128xf32>
    %158 = arith.addf %146, %157 : vector<8x128xf32>
    %c13 = arith.constant 13 : index
    %159 = memref.load %arg2[%c13] : memref<100xf32, #tpu.memory_space<smem>>
    %160 = vector.broadcast %159 : f32 to vector<8x128xf32>
    %161 = arith.mulf %0, %160 : vector<8x128xf32>
    %c13_41 = arith.constant 13 : index
    %162 = memref.load %arg3[%c13_41] : memref<100xf32, #tpu.memory_space<smem>>
    %163 = vector.broadcast %162 : f32 to vector<8x128xf32>
    %164 = arith.addf %161, %163 : vector<8x128xf32>
    %cst_42 = arith.constant 0.000000e+00 : f32
    %165 = vector.broadcast %cst_42 : f32 to vector<8x128xf32>
    %166 = arith.maximumf %164, %165 : vector<8x128xf32>
    %c13_43 = arith.constant 13 : index
    %167 = memref.load %arg4[%c13_43] : memref<100xf32, #tpu.memory_space<smem>>
    %168 = vector.broadcast %167 : f32 to vector<8x128xf32>
    %169 = arith.mulf %168, %166 : vector<8x128xf32>
    %170 = arith.addf %158, %169 : vector<8x128xf32>
    %c14 = arith.constant 14 : index
    %171 = memref.load %arg2[%c14] : memref<100xf32, #tpu.memory_space<smem>>
    %172 = vector.broadcast %171 : f32 to vector<8x128xf32>
    %173 = arith.mulf %0, %172 : vector<8x128xf32>
    %c14_44 = arith.constant 14 : index
    %174 = memref.load %arg3[%c14_44] : memref<100xf32, #tpu.memory_space<smem>>
    %175 = vector.broadcast %174 : f32 to vector<8x128xf32>
    %176 = arith.addf %173, %175 : vector<8x128xf32>
    %cst_45 = arith.constant 0.000000e+00 : f32
    %177 = vector.broadcast %cst_45 : f32 to vector<8x128xf32>
    %178 = arith.maximumf %176, %177 : vector<8x128xf32>
    %c14_46 = arith.constant 14 : index
    %179 = memref.load %arg4[%c14_46] : memref<100xf32, #tpu.memory_space<smem>>
    %180 = vector.broadcast %179 : f32 to vector<8x128xf32>
    %181 = arith.mulf %180, %178 : vector<8x128xf32>
    %182 = arith.addf %170, %181 : vector<8x128xf32>
    %c15 = arith.constant 15 : index
    %183 = memref.load %arg2[%c15] : memref<100xf32, #tpu.memory_space<smem>>
    %184 = vector.broadcast %183 : f32 to vector<8x128xf32>
    %185 = arith.mulf %0, %184 : vector<8x128xf32>
    %c15_47 = arith.constant 15 : index
    %186 = memref.load %arg3[%c15_47] : memref<100xf32, #tpu.memory_space<smem>>
    %187 = vector.broadcast %186 : f32 to vector<8x128xf32>
    %188 = arith.addf %185, %187 : vector<8x128xf32>
    %cst_48 = arith.constant 0.000000e+00 : f32
    %189 = vector.broadcast %cst_48 : f32 to vector<8x128xf32>
    %190 = arith.maximumf %188, %189 : vector<8x128xf32>
    %c15_49 = arith.constant 15 : index
    %191 = memref.load %arg4[%c15_49] : memref<100xf32, #tpu.memory_space<smem>>
    %192 = vector.broadcast %191 : f32 to vector<8x128xf32>
    %193 = arith.mulf %192, %190 : vector<8x128xf32>
    %194 = arith.addf %182, %193 : vector<8x128xf32>
    %c16 = arith.constant 16 : index
    %195 = memref.load %arg2[%c16] : memref<100xf32, #tpu.memory_space<smem>>
    %196 = vector.broadcast %195 : f32 to vector<8x128xf32>
    %197 = arith.mulf %0, %196 : vector<8x128xf32>
    %c16_50 = arith.constant 16 : index
    %198 = memref.load %arg3[%c16_50] : memref<100xf32, #tpu.memory_space<smem>>
    %199 = vector.broadcast %198 : f32 to vector<8x128xf32>
    %200 = arith.addf %197, %199 : vector<8x128xf32>
    %cst_51 = arith.constant 0.000000e+00 : f32
    %201 = vector.broadcast %cst_51 : f32 to vector<8x128xf32>
    %202 = arith.maximumf %200, %201 : vector<8x128xf32>
    %c16_52 = arith.constant 16 : index
    %203 = memref.load %arg4[%c16_52] : memref<100xf32, #tpu.memory_space<smem>>
    %204 = vector.broadcast %203 : f32 to vector<8x128xf32>
    %205 = arith.mulf %204, %202 : vector<8x128xf32>
    %206 = arith.addf %194, %205 : vector<8x128xf32>
    %c17 = arith.constant 17 : index
    %207 = memref.load %arg2[%c17] : memref<100xf32, #tpu.memory_space<smem>>
    %208 = vector.broadcast %207 : f32 to vector<8x128xf32>
    %209 = arith.mulf %0, %208 : vector<8x128xf32>
    %c17_53 = arith.constant 17 : index
    %210 = memref.load %arg3[%c17_53] : memref<100xf32, #tpu.memory_space<smem>>
    %211 = vector.broadcast %210 : f32 to vector<8x128xf32>
    %212 = arith.addf %209, %211 : vector<8x128xf32>
    %cst_54 = arith.constant 0.000000e+00 : f32
    %213 = vector.broadcast %cst_54 : f32 to vector<8x128xf32>
    %214 = arith.maximumf %212, %213 : vector<8x128xf32>
    %c17_55 = arith.constant 17 : index
    %215 = memref.load %arg4[%c17_55] : memref<100xf32, #tpu.memory_space<smem>>
    %216 = vector.broadcast %215 : f32 to vector<8x128xf32>
    %217 = arith.mulf %216, %214 : vector<8x128xf32>
    %218 = arith.addf %206, %217 : vector<8x128xf32>
    %c18 = arith.constant 18 : index
    %219 = memref.load %arg2[%c18] : memref<100xf32, #tpu.memory_space<smem>>
    %220 = vector.broadcast %219 : f32 to vector<8x128xf32>
    %221 = arith.mulf %0, %220 : vector<8x128xf32>
    %c18_56 = arith.constant 18 : index
    %222 = memref.load %arg3[%c18_56] : memref<100xf32, #tpu.memory_space<smem>>
    %223 = vector.broadcast %222 : f32 to vector<8x128xf32>
    %224 = arith.addf %221, %223 : vector<8x128xf32>
    %cst_57 = arith.constant 0.000000e+00 : f32
    %225 = vector.broadcast %cst_57 : f32 to vector<8x128xf32>
    %226 = arith.maximumf %224, %225 : vector<8x128xf32>
    %c18_58 = arith.constant 18 : index
    %227 = memref.load %arg4[%c18_58] : memref<100xf32, #tpu.memory_space<smem>>
    %228 = vector.broadcast %227 : f32 to vector<8x128xf32>
    %229 = arith.mulf %228, %226 : vector<8x128xf32>
    %230 = arith.addf %218, %229 : vector<8x128xf32>
    %c19 = arith.constant 19 : index
    %231 = memref.load %arg2[%c19] : memref<100xf32, #tpu.memory_space<smem>>
    %232 = vector.broadcast %231 : f32 to vector<8x128xf32>
    %233 = arith.mulf %0, %232 : vector<8x128xf32>
    %c19_59 = arith.constant 19 : index
    %234 = memref.load %arg3[%c19_59] : memref<100xf32, #tpu.memory_space<smem>>
    %235 = vector.broadcast %234 : f32 to vector<8x128xf32>
    %236 = arith.addf %233, %235 : vector<8x128xf32>
    %cst_60 = arith.constant 0.000000e+00 : f32
    %237 = vector.broadcast %cst_60 : f32 to vector<8x128xf32>
    %238 = arith.maximumf %236, %237 : vector<8x128xf32>
    %c19_61 = arith.constant 19 : index
    %239 = memref.load %arg4[%c19_61] : memref<100xf32, #tpu.memory_space<smem>>
    %240 = vector.broadcast %239 : f32 to vector<8x128xf32>
    %241 = arith.mulf %240, %238 : vector<8x128xf32>
    %242 = arith.addf %230, %241 : vector<8x128xf32>
    %c20 = arith.constant 20 : index
    %243 = memref.load %arg2[%c20] : memref<100xf32, #tpu.memory_space<smem>>
    %244 = vector.broadcast %243 : f32 to vector<8x128xf32>
    %245 = arith.mulf %0, %244 : vector<8x128xf32>
    %c20_62 = arith.constant 20 : index
    %246 = memref.load %arg3[%c20_62] : memref<100xf32, #tpu.memory_space<smem>>
    %247 = vector.broadcast %246 : f32 to vector<8x128xf32>
    %248 = arith.addf %245, %247 : vector<8x128xf32>
    %cst_63 = arith.constant 0.000000e+00 : f32
    %249 = vector.broadcast %cst_63 : f32 to vector<8x128xf32>
    %250 = arith.maximumf %248, %249 : vector<8x128xf32>
    %c20_64 = arith.constant 20 : index
    %251 = memref.load %arg4[%c20_64] : memref<100xf32, #tpu.memory_space<smem>>
    %252 = vector.broadcast %251 : f32 to vector<8x128xf32>
    %253 = arith.mulf %252, %250 : vector<8x128xf32>
    %254 = arith.addf %242, %253 : vector<8x128xf32>
    %c21 = arith.constant 21 : index
    %255 = memref.load %arg2[%c21] : memref<100xf32, #tpu.memory_space<smem>>
    %256 = vector.broadcast %255 : f32 to vector<8x128xf32>
    %257 = arith.mulf %0, %256 : vector<8x128xf32>
    %c21_65 = arith.constant 21 : index
    %258 = memref.load %arg3[%c21_65] : memref<100xf32, #tpu.memory_space<smem>>
    %259 = vector.broadcast %258 : f32 to vector<8x128xf32>
    %260 = arith.addf %257, %259 : vector<8x128xf32>
    %cst_66 = arith.constant 0.000000e+00 : f32
    %261 = vector.broadcast %cst_66 : f32 to vector<8x128xf32>
    %262 = arith.maximumf %260, %261 : vector<8x128xf32>
    %c21_67 = arith.constant 21 : index
    %263 = memref.load %arg4[%c21_67] : memref<100xf32, #tpu.memory_space<smem>>
    %264 = vector.broadcast %263 : f32 to vector<8x128xf32>
    %265 = arith.mulf %264, %262 : vector<8x128xf32>
    %266 = arith.addf %254, %265 : vector<8x128xf32>
    %c22 = arith.constant 22 : index
    %267 = memref.load %arg2[%c22] : memref<100xf32, #tpu.memory_space<smem>>
    %268 = vector.broadcast %267 : f32 to vector<8x128xf32>
    %269 = arith.mulf %0, %268 : vector<8x128xf32>
    %c22_68 = arith.constant 22 : index
    %270 = memref.load %arg3[%c22_68] : memref<100xf32, #tpu.memory_space<smem>>
    %271 = vector.broadcast %270 : f32 to vector<8x128xf32>
    %272 = arith.addf %269, %271 : vector<8x128xf32>
    %cst_69 = arith.constant 0.000000e+00 : f32
    %273 = vector.broadcast %cst_69 : f32 to vector<8x128xf32>
    %274 = arith.maximumf %272, %273 : vector<8x128xf32>
    %c22_70 = arith.constant 22 : index
    %275 = memref.load %arg4[%c22_70] : memref<100xf32, #tpu.memory_space<smem>>
    %276 = vector.broadcast %275 : f32 to vector<8x128xf32>
    %277 = arith.mulf %276, %274 : vector<8x128xf32>
    %278 = arith.addf %266, %277 : vector<8x128xf32>
    %c23 = arith.constant 23 : index
    %279 = memref.load %arg2[%c23] : memref<100xf32, #tpu.memory_space<smem>>
    %280 = vector.broadcast %279 : f32 to vector<8x128xf32>
    %281 = arith.mulf %0, %280 : vector<8x128xf32>
    %c23_71 = arith.constant 23 : index
    %282 = memref.load %arg3[%c23_71] : memref<100xf32, #tpu.memory_space<smem>>
    %283 = vector.broadcast %282 : f32 to vector<8x128xf32>
    %284 = arith.addf %281, %283 : vector<8x128xf32>
    %cst_72 = arith.constant 0.000000e+00 : f32
    %285 = vector.broadcast %cst_72 : f32 to vector<8x128xf32>
    %286 = arith.maximumf %284, %285 : vector<8x128xf32>
    %c23_73 = arith.constant 23 : index
    %287 = memref.load %arg4[%c23_73] : memref<100xf32, #tpu.memory_space<smem>>
    %288 = vector.broadcast %287 : f32 to vector<8x128xf32>
    %289 = arith.mulf %288, %286 : vector<8x128xf32>
    %290 = arith.addf %278, %289 : vector<8x128xf32>
    %c24 = arith.constant 24 : index
    %291 = memref.load %arg2[%c24] : memref<100xf32, #tpu.memory_space<smem>>
    %292 = vector.broadcast %291 : f32 to vector<8x128xf32>
    %293 = arith.mulf %0, %292 : vector<8x128xf32>
    %c24_74 = arith.constant 24 : index
    %294 = memref.load %arg3[%c24_74] : memref<100xf32, #tpu.memory_space<smem>>
    %295 = vector.broadcast %294 : f32 to vector<8x128xf32>
    %296 = arith.addf %293, %295 : vector<8x128xf32>
    %cst_75 = arith.constant 0.000000e+00 : f32
    %297 = vector.broadcast %cst_75 : f32 to vector<8x128xf32>
    %298 = arith.maximumf %296, %297 : vector<8x128xf32>
    %c24_76 = arith.constant 24 : index
    %299 = memref.load %arg4[%c24_76] : memref<100xf32, #tpu.memory_space<smem>>
    %300 = vector.broadcast %299 : f32 to vector<8x128xf32>
    %301 = arith.mulf %300, %298 : vector<8x128xf32>
    %302 = arith.addf %290, %301 : vector<8x128xf32>
    %c25 = arith.constant 25 : index
    %303 = memref.load %arg2[%c25] : memref<100xf32, #tpu.memory_space<smem>>
    %304 = vector.broadcast %303 : f32 to vector<8x128xf32>
    %305 = arith.mulf %0, %304 : vector<8x128xf32>
    %c25_77 = arith.constant 25 : index
    %306 = memref.load %arg3[%c25_77] : memref<100xf32, #tpu.memory_space<smem>>
    %307 = vector.broadcast %306 : f32 to vector<8x128xf32>
    %308 = arith.addf %305, %307 : vector<8x128xf32>
    %cst_78 = arith.constant 0.000000e+00 : f32
    %309 = vector.broadcast %cst_78 : f32 to vector<8x128xf32>
    %310 = arith.maximumf %308, %309 : vector<8x128xf32>
    %c25_79 = arith.constant 25 : index
    %311 = memref.load %arg4[%c25_79] : memref<100xf32, #tpu.memory_space<smem>>
    %312 = vector.broadcast %311 : f32 to vector<8x128xf32>
    %313 = arith.mulf %312, %310 : vector<8x128xf32>
    %314 = arith.addf %302, %313 : vector<8x128xf32>
    %c26 = arith.constant 26 : index
    %315 = memref.load %arg2[%c26] : memref<100xf32, #tpu.memory_space<smem>>
    %316 = vector.broadcast %315 : f32 to vector<8x128xf32>
    %317 = arith.mulf %0, %316 : vector<8x128xf32>
    %c26_80 = arith.constant 26 : index
    %318 = memref.load %arg3[%c26_80] : memref<100xf32, #tpu.memory_space<smem>>
    %319 = vector.broadcast %318 : f32 to vector<8x128xf32>
    %320 = arith.addf %317, %319 : vector<8x128xf32>
    %cst_81 = arith.constant 0.000000e+00 : f32
    %321 = vector.broadcast %cst_81 : f32 to vector<8x128xf32>
    %322 = arith.maximumf %320, %321 : vector<8x128xf32>
    %c26_82 = arith.constant 26 : index
    %323 = memref.load %arg4[%c26_82] : memref<100xf32, #tpu.memory_space<smem>>
    %324 = vector.broadcast %323 : f32 to vector<8x128xf32>
    %325 = arith.mulf %324, %322 : vector<8x128xf32>
    %326 = arith.addf %314, %325 : vector<8x128xf32>
    %c27 = arith.constant 27 : index
    %327 = memref.load %arg2[%c27] : memref<100xf32, #tpu.memory_space<smem>>
    %328 = vector.broadcast %327 : f32 to vector<8x128xf32>
    %329 = arith.mulf %0, %328 : vector<8x128xf32>
    %c27_83 = arith.constant 27 : index
    %330 = memref.load %arg3[%c27_83] : memref<100xf32, #tpu.memory_space<smem>>
    %331 = vector.broadcast %330 : f32 to vector<8x128xf32>
    %332 = arith.addf %329, %331 : vector<8x128xf32>
    %cst_84 = arith.constant 0.000000e+00 : f32
    %333 = vector.broadcast %cst_84 : f32 to vector<8x128xf32>
    %334 = arith.maximumf %332, %333 : vector<8x128xf32>
    %c27_85 = arith.constant 27 : index
    %335 = memref.load %arg4[%c27_85] : memref<100xf32, #tpu.memory_space<smem>>
    %336 = vector.broadcast %335 : f32 to vector<8x128xf32>
    %337 = arith.mulf %336, %334 : vector<8x128xf32>
    %338 = arith.addf %326, %337 : vector<8x128xf32>
    %c28 = arith.constant 28 : index
    %339 = memref.load %arg2[%c28] : memref<100xf32, #tpu.memory_space<smem>>
    %340 = vector.broadcast %339 : f32 to vector<8x128xf32>
    %341 = arith.mulf %0, %340 : vector<8x128xf32>
    %c28_86 = arith.constant 28 : index
    %342 = memref.load %arg3[%c28_86] : memref<100xf32, #tpu.memory_space<smem>>
    %343 = vector.broadcast %342 : f32 to vector<8x128xf32>
    %344 = arith.addf %341, %343 : vector<8x128xf32>
    %cst_87 = arith.constant 0.000000e+00 : f32
    %345 = vector.broadcast %cst_87 : f32 to vector<8x128xf32>
    %346 = arith.maximumf %344, %345 : vector<8x128xf32>
    %c28_88 = arith.constant 28 : index
    %347 = memref.load %arg4[%c28_88] : memref<100xf32, #tpu.memory_space<smem>>
    %348 = vector.broadcast %347 : f32 to vector<8x128xf32>
    %349 = arith.mulf %348, %346 : vector<8x128xf32>
    %350 = arith.addf %338, %349 : vector<8x128xf32>
    %c29 = arith.constant 29 : index
    %351 = memref.load %arg2[%c29] : memref<100xf32, #tpu.memory_space<smem>>
    %352 = vector.broadcast %351 : f32 to vector<8x128xf32>
    %353 = arith.mulf %0, %352 : vector<8x128xf32>
    %c29_89 = arith.constant 29 : index
    %354 = memref.load %arg3[%c29_89] : memref<100xf32, #tpu.memory_space<smem>>
    %355 = vector.broadcast %354 : f32 to vector<8x128xf32>
    %356 = arith.addf %353, %355 : vector<8x128xf32>
    %cst_90 = arith.constant 0.000000e+00 : f32
    %357 = vector.broadcast %cst_90 : f32 to vector<8x128xf32>
    %358 = arith.maximumf %356, %357 : vector<8x128xf32>
    %c29_91 = arith.constant 29 : index
    %359 = memref.load %arg4[%c29_91] : memref<100xf32, #tpu.memory_space<smem>>
    %360 = vector.broadcast %359 : f32 to vector<8x128xf32>
    %361 = arith.mulf %360, %358 : vector<8x128xf32>
    %362 = arith.addf %350, %361 : vector<8x128xf32>
    %c30 = arith.constant 30 : index
    %363 = memref.load %arg2[%c30] : memref<100xf32, #tpu.memory_space<smem>>
    %364 = vector.broadcast %363 : f32 to vector<8x128xf32>
    %365 = arith.mulf %0, %364 : vector<8x128xf32>
    %c30_92 = arith.constant 30 : index
    %366 = memref.load %arg3[%c30_92] : memref<100xf32, #tpu.memory_space<smem>>
    %367 = vector.broadcast %366 : f32 to vector<8x128xf32>
    %368 = arith.addf %365, %367 : vector<8x128xf32>
    %cst_93 = arith.constant 0.000000e+00 : f32
    %369 = vector.broadcast %cst_93 : f32 to vector<8x128xf32>
    %370 = arith.maximumf %368, %369 : vector<8x128xf32>
    %c30_94 = arith.constant 30 : index
    %371 = memref.load %arg4[%c30_94] : memref<100xf32, #tpu.memory_space<smem>>
    %372 = vector.broadcast %371 : f32 to vector<8x128xf32>
    %373 = arith.mulf %372, %370 : vector<8x128xf32>
    %374 = arith.addf %362, %373 : vector<8x128xf32>
    %c31 = arith.constant 31 : index
    %375 = memref.load %arg2[%c31] : memref<100xf32, #tpu.memory_space<smem>>
    %376 = vector.broadcast %375 : f32 to vector<8x128xf32>
    %377 = arith.mulf %0, %376 : vector<8x128xf32>
    %c31_95 = arith.constant 31 : index
    %378 = memref.load %arg3[%c31_95] : memref<100xf32, #tpu.memory_space<smem>>
    %379 = vector.broadcast %378 : f32 to vector<8x128xf32>
    %380 = arith.addf %377, %379 : vector<8x128xf32>
    %cst_96 = arith.constant 0.000000e+00 : f32
    %381 = vector.broadcast %cst_96 : f32 to vector<8x128xf32>
    %382 = arith.maximumf %380, %381 : vector<8x128xf32>
    %c31_97 = arith.constant 31 : index
    %383 = memref.load %arg4[%c31_97] : memref<100xf32, #tpu.memory_space<smem>>
    %384 = vector.broadcast %383 : f32 to vector<8x128xf32>
    %385 = arith.mulf %384, %382 : vector<8x128xf32>
    %386 = arith.addf %374, %385 : vector<8x128xf32>
    %c32 = arith.constant 32 : index
    %387 = memref.load %arg2[%c32] : memref<100xf32, #tpu.memory_space<smem>>
    %388 = vector.broadcast %387 : f32 to vector<8x128xf32>
    %389 = arith.mulf %0, %388 : vector<8x128xf32>
    %c32_98 = arith.constant 32 : index
    %390 = memref.load %arg3[%c32_98] : memref<100xf32, #tpu.memory_space<smem>>
    %391 = vector.broadcast %390 : f32 to vector<8x128xf32>
    %392 = arith.addf %389, %391 : vector<8x128xf32>
    %cst_99 = arith.constant 0.000000e+00 : f32
    %393 = vector.broadcast %cst_99 : f32 to vector<8x128xf32>
    %394 = arith.maximumf %392, %393 : vector<8x128xf32>
    %c32_100 = arith.constant 32 : index
    %395 = memref.load %arg4[%c32_100] : memref<100xf32, #tpu.memory_space<smem>>
    %396 = vector.broadcast %395 : f32 to vector<8x128xf32>
    %397 = arith.mulf %396, %394 : vector<8x128xf32>
    %398 = arith.addf %386, %397 : vector<8x128xf32>
    %c33 = arith.constant 33 : index
    %399 = memref.load %arg2[%c33] : memref<100xf32, #tpu.memory_space<smem>>
    %400 = vector.broadcast %399 : f32 to vector<8x128xf32>
    %401 = arith.mulf %0, %400 : vector<8x128xf32>
    %c33_101 = arith.constant 33 : index
    %402 = memref.load %arg3[%c33_101] : memref<100xf32, #tpu.memory_space<smem>>
    %403 = vector.broadcast %402 : f32 to vector<8x128xf32>
    %404 = arith.addf %401, %403 : vector<8x128xf32>
    %cst_102 = arith.constant 0.000000e+00 : f32
    %405 = vector.broadcast %cst_102 : f32 to vector<8x128xf32>
    %406 = arith.maximumf %404, %405 : vector<8x128xf32>
    %c33_103 = arith.constant 33 : index
    %407 = memref.load %arg4[%c33_103] : memref<100xf32, #tpu.memory_space<smem>>
    %408 = vector.broadcast %407 : f32 to vector<8x128xf32>
    %409 = arith.mulf %408, %406 : vector<8x128xf32>
    %410 = arith.addf %398, %409 : vector<8x128xf32>
    %c34 = arith.constant 34 : index
    %411 = memref.load %arg2[%c34] : memref<100xf32, #tpu.memory_space<smem>>
    %412 = vector.broadcast %411 : f32 to vector<8x128xf32>
    %413 = arith.mulf %0, %412 : vector<8x128xf32>
    %c34_104 = arith.constant 34 : index
    %414 = memref.load %arg3[%c34_104] : memref<100xf32, #tpu.memory_space<smem>>
    %415 = vector.broadcast %414 : f32 to vector<8x128xf32>
    %416 = arith.addf %413, %415 : vector<8x128xf32>
    %cst_105 = arith.constant 0.000000e+00 : f32
    %417 = vector.broadcast %cst_105 : f32 to vector<8x128xf32>
    %418 = arith.maximumf %416, %417 : vector<8x128xf32>
    %c34_106 = arith.constant 34 : index
    %419 = memref.load %arg4[%c34_106] : memref<100xf32, #tpu.memory_space<smem>>
    %420 = vector.broadcast %419 : f32 to vector<8x128xf32>
    %421 = arith.mulf %420, %418 : vector<8x128xf32>
    %422 = arith.addf %410, %421 : vector<8x128xf32>
    %c35 = arith.constant 35 : index
    %423 = memref.load %arg2[%c35] : memref<100xf32, #tpu.memory_space<smem>>
    %424 = vector.broadcast %423 : f32 to vector<8x128xf32>
    %425 = arith.mulf %0, %424 : vector<8x128xf32>
    %c35_107 = arith.constant 35 : index
    %426 = memref.load %arg3[%c35_107] : memref<100xf32, #tpu.memory_space<smem>>
    %427 = vector.broadcast %426 : f32 to vector<8x128xf32>
    %428 = arith.addf %425, %427 : vector<8x128xf32>
    %cst_108 = arith.constant 0.000000e+00 : f32
    %429 = vector.broadcast %cst_108 : f32 to vector<8x128xf32>
    %430 = arith.maximumf %428, %429 : vector<8x128xf32>
    %c35_109 = arith.constant 35 : index
    %431 = memref.load %arg4[%c35_109] : memref<100xf32, #tpu.memory_space<smem>>
    %432 = vector.broadcast %431 : f32 to vector<8x128xf32>
    %433 = arith.mulf %432, %430 : vector<8x128xf32>
    %434 = arith.addf %422, %433 : vector<8x128xf32>
    %c36 = arith.constant 36 : index
    %435 = memref.load %arg2[%c36] : memref<100xf32, #tpu.memory_space<smem>>
    %436 = vector.broadcast %435 : f32 to vector<8x128xf32>
    %437 = arith.mulf %0, %436 : vector<8x128xf32>
    %c36_110 = arith.constant 36 : index
    %438 = memref.load %arg3[%c36_110] : memref<100xf32, #tpu.memory_space<smem>>
    %439 = vector.broadcast %438 : f32 to vector<8x128xf32>
    %440 = arith.addf %437, %439 : vector<8x128xf32>
    %cst_111 = arith.constant 0.000000e+00 : f32
    %441 = vector.broadcast %cst_111 : f32 to vector<8x128xf32>
    %442 = arith.maximumf %440, %441 : vector<8x128xf32>
    %c36_112 = arith.constant 36 : index
    %443 = memref.load %arg4[%c36_112] : memref<100xf32, #tpu.memory_space<smem>>
    %444 = vector.broadcast %443 : f32 to vector<8x128xf32>
    %445 = arith.mulf %444, %442 : vector<8x128xf32>
    %446 = arith.addf %434, %445 : vector<8x128xf32>
    %c37 = arith.constant 37 : index
    %447 = memref.load %arg2[%c37] : memref<100xf32, #tpu.memory_space<smem>>
    %448 = vector.broadcast %447 : f32 to vector<8x128xf32>
    %449 = arith.mulf %0, %448 : vector<8x128xf32>
    %c37_113 = arith.constant 37 : index
    %450 = memref.load %arg3[%c37_113] : memref<100xf32, #tpu.memory_space<smem>>
    %451 = vector.broadcast %450 : f32 to vector<8x128xf32>
    %452 = arith.addf %449, %451 : vector<8x128xf32>
    %cst_114 = arith.constant 0.000000e+00 : f32
    %453 = vector.broadcast %cst_114 : f32 to vector<8x128xf32>
    %454 = arith.maximumf %452, %453 : vector<8x128xf32>
    %c37_115 = arith.constant 37 : index
    %455 = memref.load %arg4[%c37_115] : memref<100xf32, #tpu.memory_space<smem>>
    %456 = vector.broadcast %455 : f32 to vector<8x128xf32>
    %457 = arith.mulf %456, %454 : vector<8x128xf32>
    %458 = arith.addf %446, %457 : vector<8x128xf32>
    %c38 = arith.constant 38 : index
    %459 = memref.load %arg2[%c38] : memref<100xf32, #tpu.memory_space<smem>>
    %460 = vector.broadcast %459 : f32 to vector<8x128xf32>
    %461 = arith.mulf %0, %460 : vector<8x128xf32>
    %c38_116 = arith.constant 38 : index
    %462 = memref.load %arg3[%c38_116] : memref<100xf32, #tpu.memory_space<smem>>
    %463 = vector.broadcast %462 : f32 to vector<8x128xf32>
    %464 = arith.addf %461, %463 : vector<8x128xf32>
    %cst_117 = arith.constant 0.000000e+00 : f32
    %465 = vector.broadcast %cst_117 : f32 to vector<8x128xf32>
    %466 = arith.maximumf %464, %465 : vector<8x128xf32>
    %c38_118 = arith.constant 38 : index
    %467 = memref.load %arg4[%c38_118] : memref<100xf32, #tpu.memory_space<smem>>
    %468 = vector.broadcast %467 : f32 to vector<8x128xf32>
    %469 = arith.mulf %468, %466 : vector<8x128xf32>
    %470 = arith.addf %458, %469 : vector<8x128xf32>
    %c39 = arith.constant 39 : index
    %471 = memref.load %arg2[%c39] : memref<100xf32, #tpu.memory_space<smem>>
    %472 = vector.broadcast %471 : f32 to vector<8x128xf32>
    %473 = arith.mulf %0, %472 : vector<8x128xf32>
    %c39_119 = arith.constant 39 : index
    %474 = memref.load %arg3[%c39_119] : memref<100xf32, #tpu.memory_space<smem>>
    %475 = vector.broadcast %474 : f32 to vector<8x128xf32>
    %476 = arith.addf %473, %475 : vector<8x128xf32>
    %cst_120 = arith.constant 0.000000e+00 : f32
    %477 = vector.broadcast %cst_120 : f32 to vector<8x128xf32>
    %478 = arith.maximumf %476, %477 : vector<8x128xf32>
    %c39_121 = arith.constant 39 : index
    %479 = memref.load %arg4[%c39_121] : memref<100xf32, #tpu.memory_space<smem>>
    %480 = vector.broadcast %479 : f32 to vector<8x128xf32>
    %481 = arith.mulf %480, %478 : vector<8x128xf32>
    %482 = arith.addf %470, %481 : vector<8x128xf32>
    %c40 = arith.constant 40 : index
    %483 = memref.load %arg2[%c40] : memref<100xf32, #tpu.memory_space<smem>>
    %484 = vector.broadcast %483 : f32 to vector<8x128xf32>
    %485 = arith.mulf %0, %484 : vector<8x128xf32>
    %c40_122 = arith.constant 40 : index
    %486 = memref.load %arg3[%c40_122] : memref<100xf32, #tpu.memory_space<smem>>
    %487 = vector.broadcast %486 : f32 to vector<8x128xf32>
    %488 = arith.addf %485, %487 : vector<8x128xf32>
    %cst_123 = arith.constant 0.000000e+00 : f32
    %489 = vector.broadcast %cst_123 : f32 to vector<8x128xf32>
    %490 = arith.maximumf %488, %489 : vector<8x128xf32>
    %c40_124 = arith.constant 40 : index
    %491 = memref.load %arg4[%c40_124] : memref<100xf32, #tpu.memory_space<smem>>
    %492 = vector.broadcast %491 : f32 to vector<8x128xf32>
    %493 = arith.mulf %492, %490 : vector<8x128xf32>
    %494 = arith.addf %482, %493 : vector<8x128xf32>
    %c41 = arith.constant 41 : index
    %495 = memref.load %arg2[%c41] : memref<100xf32, #tpu.memory_space<smem>>
    %496 = vector.broadcast %495 : f32 to vector<8x128xf32>
    %497 = arith.mulf %0, %496 : vector<8x128xf32>
    %c41_125 = arith.constant 41 : index
    %498 = memref.load %arg3[%c41_125] : memref<100xf32, #tpu.memory_space<smem>>
    %499 = vector.broadcast %498 : f32 to vector<8x128xf32>
    %500 = arith.addf %497, %499 : vector<8x128xf32>
    %cst_126 = arith.constant 0.000000e+00 : f32
    %501 = vector.broadcast %cst_126 : f32 to vector<8x128xf32>
    %502 = arith.maximumf %500, %501 : vector<8x128xf32>
    %c41_127 = arith.constant 41 : index
    %503 = memref.load %arg4[%c41_127] : memref<100xf32, #tpu.memory_space<smem>>
    %504 = vector.broadcast %503 : f32 to vector<8x128xf32>
    %505 = arith.mulf %504, %502 : vector<8x128xf32>
    %506 = arith.addf %494, %505 : vector<8x128xf32>
    %c42 = arith.constant 42 : index
    %507 = memref.load %arg2[%c42] : memref<100xf32, #tpu.memory_space<smem>>
    %508 = vector.broadcast %507 : f32 to vector<8x128xf32>
    %509 = arith.mulf %0, %508 : vector<8x128xf32>
    %c42_128 = arith.constant 42 : index
    %510 = memref.load %arg3[%c42_128] : memref<100xf32, #tpu.memory_space<smem>>
    %511 = vector.broadcast %510 : f32 to vector<8x128xf32>
    %512 = arith.addf %509, %511 : vector<8x128xf32>
    %cst_129 = arith.constant 0.000000e+00 : f32
    %513 = vector.broadcast %cst_129 : f32 to vector<8x128xf32>
    %514 = arith.maximumf %512, %513 : vector<8x128xf32>
    %c42_130 = arith.constant 42 : index
    %515 = memref.load %arg4[%c42_130] : memref<100xf32, #tpu.memory_space<smem>>
    %516 = vector.broadcast %515 : f32 to vector<8x128xf32>
    %517 = arith.mulf %516, %514 : vector<8x128xf32>
    %518 = arith.addf %506, %517 : vector<8x128xf32>
    %c43 = arith.constant 43 : index
    %519 = memref.load %arg2[%c43] : memref<100xf32, #tpu.memory_space<smem>>
    %520 = vector.broadcast %519 : f32 to vector<8x128xf32>
    %521 = arith.mulf %0, %520 : vector<8x128xf32>
    %c43_131 = arith.constant 43 : index
    %522 = memref.load %arg3[%c43_131] : memref<100xf32, #tpu.memory_space<smem>>
    %523 = vector.broadcast %522 : f32 to vector<8x128xf32>
    %524 = arith.addf %521, %523 : vector<8x128xf32>
    %cst_132 = arith.constant 0.000000e+00 : f32
    %525 = vector.broadcast %cst_132 : f32 to vector<8x128xf32>
    %526 = arith.maximumf %524, %525 : vector<8x128xf32>
    %c43_133 = arith.constant 43 : index
    %527 = memref.load %arg4[%c43_133] : memref<100xf32, #tpu.memory_space<smem>>
    %528 = vector.broadcast %527 : f32 to vector<8x128xf32>
    %529 = arith.mulf %528, %526 : vector<8x128xf32>
    %530 = arith.addf %518, %529 : vector<8x128xf32>
    %c44 = arith.constant 44 : index
    %531 = memref.load %arg2[%c44] : memref<100xf32, #tpu.memory_space<smem>>
    %532 = vector.broadcast %531 : f32 to vector<8x128xf32>
    %533 = arith.mulf %0, %532 : vector<8x128xf32>
    %c44_134 = arith.constant 44 : index
    %534 = memref.load %arg3[%c44_134] : memref<100xf32, #tpu.memory_space<smem>>
    %535 = vector.broadcast %534 : f32 to vector<8x128xf32>
    %536 = arith.addf %533, %535 : vector<8x128xf32>
    %cst_135 = arith.constant 0.000000e+00 : f32
    %537 = vector.broadcast %cst_135 : f32 to vector<8x128xf32>
    %538 = arith.maximumf %536, %537 : vector<8x128xf32>
    %c44_136 = arith.constant 44 : index
    %539 = memref.load %arg4[%c44_136] : memref<100xf32, #tpu.memory_space<smem>>
    %540 = vector.broadcast %539 : f32 to vector<8x128xf32>
    %541 = arith.mulf %540, %538 : vector<8x128xf32>
    %542 = arith.addf %530, %541 : vector<8x128xf32>
    %c45 = arith.constant 45 : index
    %543 = memref.load %arg2[%c45] : memref<100xf32, #tpu.memory_space<smem>>
    %544 = vector.broadcast %543 : f32 to vector<8x128xf32>
    %545 = arith.mulf %0, %544 : vector<8x128xf32>
    %c45_137 = arith.constant 45 : index
    %546 = memref.load %arg3[%c45_137] : memref<100xf32, #tpu.memory_space<smem>>
    %547 = vector.broadcast %546 : f32 to vector<8x128xf32>
    %548 = arith.addf %545, %547 : vector<8x128xf32>
    %cst_138 = arith.constant 0.000000e+00 : f32
    %549 = vector.broadcast %cst_138 : f32 to vector<8x128xf32>
    %550 = arith.maximumf %548, %549 : vector<8x128xf32>
    %c45_139 = arith.constant 45 : index
    %551 = memref.load %arg4[%c45_139] : memref<100xf32, #tpu.memory_space<smem>>
    %552 = vector.broadcast %551 : f32 to vector<8x128xf32>
    %553 = arith.mulf %552, %550 : vector<8x128xf32>
    %554 = arith.addf %542, %553 : vector<8x128xf32>
    %c46 = arith.constant 46 : index
    %555 = memref.load %arg2[%c46] : memref<100xf32, #tpu.memory_space<smem>>
    %556 = vector.broadcast %555 : f32 to vector<8x128xf32>
    %557 = arith.mulf %0, %556 : vector<8x128xf32>
    %c46_140 = arith.constant 46 : index
    %558 = memref.load %arg3[%c46_140] : memref<100xf32, #tpu.memory_space<smem>>
    %559 = vector.broadcast %558 : f32 to vector<8x128xf32>
    %560 = arith.addf %557, %559 : vector<8x128xf32>
    %cst_141 = arith.constant 0.000000e+00 : f32
    %561 = vector.broadcast %cst_141 : f32 to vector<8x128xf32>
    %562 = arith.maximumf %560, %561 : vector<8x128xf32>
    %c46_142 = arith.constant 46 : index
    %563 = memref.load %arg4[%c46_142] : memref<100xf32, #tpu.memory_space<smem>>
    %564 = vector.broadcast %563 : f32 to vector<8x128xf32>
    %565 = arith.mulf %564, %562 : vector<8x128xf32>
    %566 = arith.addf %554, %565 : vector<8x128xf32>
    %c47 = arith.constant 47 : index
    %567 = memref.load %arg2[%c47] : memref<100xf32, #tpu.memory_space<smem>>
    %568 = vector.broadcast %567 : f32 to vector<8x128xf32>
    %569 = arith.mulf %0, %568 : vector<8x128xf32>
    %c47_143 = arith.constant 47 : index
    %570 = memref.load %arg3[%c47_143] : memref<100xf32, #tpu.memory_space<smem>>
    %571 = vector.broadcast %570 : f32 to vector<8x128xf32>
    %572 = arith.addf %569, %571 : vector<8x128xf32>
    %cst_144 = arith.constant 0.000000e+00 : f32
    %573 = vector.broadcast %cst_144 : f32 to vector<8x128xf32>
    %574 = arith.maximumf %572, %573 : vector<8x128xf32>
    %c47_145 = arith.constant 47 : index
    %575 = memref.load %arg4[%c47_145] : memref<100xf32, #tpu.memory_space<smem>>
    %576 = vector.broadcast %575 : f32 to vector<8x128xf32>
    %577 = arith.mulf %576, %574 : vector<8x128xf32>
    %578 = arith.addf %566, %577 : vector<8x128xf32>
    %c48 = arith.constant 48 : index
    %579 = memref.load %arg2[%c48] : memref<100xf32, #tpu.memory_space<smem>>
    %580 = vector.broadcast %579 : f32 to vector<8x128xf32>
    %581 = arith.mulf %0, %580 : vector<8x128xf32>
    %c48_146 = arith.constant 48 : index
    %582 = memref.load %arg3[%c48_146] : memref<100xf32, #tpu.memory_space<smem>>
    %583 = vector.broadcast %582 : f32 to vector<8x128xf32>
    %584 = arith.addf %581, %583 : vector<8x128xf32>
    %cst_147 = arith.constant 0.000000e+00 : f32
    %585 = vector.broadcast %cst_147 : f32 to vector<8x128xf32>
    %586 = arith.maximumf %584, %585 : vector<8x128xf32>
    %c48_148 = arith.constant 48 : index
    %587 = memref.load %arg4[%c48_148] : memref<100xf32, #tpu.memory_space<smem>>
    %588 = vector.broadcast %587 : f32 to vector<8x128xf32>
    %589 = arith.mulf %588, %586 : vector<8x128xf32>
    %590 = arith.addf %578, %589 : vector<8x128xf32>
    %c49 = arith.constant 49 : index
    %591 = memref.load %arg2[%c49] : memref<100xf32, #tpu.memory_space<smem>>
    %592 = vector.broadcast %591 : f32 to vector<8x128xf32>
    %593 = arith.mulf %0, %592 : vector<8x128xf32>
    %c49_149 = arith.constant 49 : index
    %594 = memref.load %arg3[%c49_149] : memref<100xf32, #tpu.memory_space<smem>>
    %595 = vector.broadcast %594 : f32 to vector<8x128xf32>
    %596 = arith.addf %593, %595 : vector<8x128xf32>
    %cst_150 = arith.constant 0.000000e+00 : f32
    %597 = vector.broadcast %cst_150 : f32 to vector<8x128xf32>
    %598 = arith.maximumf %596, %597 : vector<8x128xf32>
    %c49_151 = arith.constant 49 : index
    %599 = memref.load %arg4[%c49_151] : memref<100xf32, #tpu.memory_space<smem>>
    %600 = vector.broadcast %599 : f32 to vector<8x128xf32>
    %601 = arith.mulf %600, %598 : vector<8x128xf32>
    %602 = arith.addf %590, %601 : vector<8x128xf32>
    %c50 = arith.constant 50 : index
    %603 = memref.load %arg2[%c50] : memref<100xf32, #tpu.memory_space<smem>>
    %604 = vector.broadcast %603 : f32 to vector<8x128xf32>
    %605 = arith.mulf %0, %604 : vector<8x128xf32>
    %c50_152 = arith.constant 50 : index
    %606 = memref.load %arg3[%c50_152] : memref<100xf32, #tpu.memory_space<smem>>
    %607 = vector.broadcast %606 : f32 to vector<8x128xf32>
    %608 = arith.addf %605, %607 : vector<8x128xf32>
    %cst_153 = arith.constant 0.000000e+00 : f32
    %609 = vector.broadcast %cst_153 : f32 to vector<8x128xf32>
    %610 = arith.maximumf %608, %609 : vector<8x128xf32>
    %c50_154 = arith.constant 50 : index
    %611 = memref.load %arg4[%c50_154] : memref<100xf32, #tpu.memory_space<smem>>
    %612 = vector.broadcast %611 : f32 to vector<8x128xf32>
    %613 = arith.mulf %612, %610 : vector<8x128xf32>
    %614 = arith.addf %602, %613 : vector<8x128xf32>
    %c51 = arith.constant 51 : index
    %615 = memref.load %arg2[%c51] : memref<100xf32, #tpu.memory_space<smem>>
    %616 = vector.broadcast %615 : f32 to vector<8x128xf32>
    %617 = arith.mulf %0, %616 : vector<8x128xf32>
    %c51_155 = arith.constant 51 : index
    %618 = memref.load %arg3[%c51_155] : memref<100xf32, #tpu.memory_space<smem>>
    %619 = vector.broadcast %618 : f32 to vector<8x128xf32>
    %620 = arith.addf %617, %619 : vector<8x128xf32>
    %cst_156 = arith.constant 0.000000e+00 : f32
    %621 = vector.broadcast %cst_156 : f32 to vector<8x128xf32>
    %622 = arith.maximumf %620, %621 : vector<8x128xf32>
    %c51_157 = arith.constant 51 : index
    %623 = memref.load %arg4[%c51_157] : memref<100xf32, #tpu.memory_space<smem>>
    %624 = vector.broadcast %623 : f32 to vector<8x128xf32>
    %625 = arith.mulf %624, %622 : vector<8x128xf32>
    %626 = arith.addf %614, %625 : vector<8x128xf32>
    %c52 = arith.constant 52 : index
    %627 = memref.load %arg2[%c52] : memref<100xf32, #tpu.memory_space<smem>>
    %628 = vector.broadcast %627 : f32 to vector<8x128xf32>
    %629 = arith.mulf %0, %628 : vector<8x128xf32>
    %c52_158 = arith.constant 52 : index
    %630 = memref.load %arg3[%c52_158] : memref<100xf32, #tpu.memory_space<smem>>
    %631 = vector.broadcast %630 : f32 to vector<8x128xf32>
    %632 = arith.addf %629, %631 : vector<8x128xf32>
    %cst_159 = arith.constant 0.000000e+00 : f32
    %633 = vector.broadcast %cst_159 : f32 to vector<8x128xf32>
    %634 = arith.maximumf %632, %633 : vector<8x128xf32>
    %c52_160 = arith.constant 52 : index
    %635 = memref.load %arg4[%c52_160] : memref<100xf32, #tpu.memory_space<smem>>
    %636 = vector.broadcast %635 : f32 to vector<8x128xf32>
    %637 = arith.mulf %636, %634 : vector<8x128xf32>
    %638 = arith.addf %626, %637 : vector<8x128xf32>
    %c53 = arith.constant 53 : index
    %639 = memref.load %arg2[%c53] : memref<100xf32, #tpu.memory_space<smem>>
    %640 = vector.broadcast %639 : f32 to vector<8x128xf32>
    %641 = arith.mulf %0, %640 : vector<8x128xf32>
    %c53_161 = arith.constant 53 : index
    %642 = memref.load %arg3[%c53_161] : memref<100xf32, #tpu.memory_space<smem>>
    %643 = vector.broadcast %642 : f32 to vector<8x128xf32>
    %644 = arith.addf %641, %643 : vector<8x128xf32>
    %cst_162 = arith.constant 0.000000e+00 : f32
    %645 = vector.broadcast %cst_162 : f32 to vector<8x128xf32>
    %646 = arith.maximumf %644, %645 : vector<8x128xf32>
    %c53_163 = arith.constant 53 : index
    %647 = memref.load %arg4[%c53_163] : memref<100xf32, #tpu.memory_space<smem>>
    %648 = vector.broadcast %647 : f32 to vector<8x128xf32>
    %649 = arith.mulf %648, %646 : vector<8x128xf32>
    %650 = arith.addf %638, %649 : vector<8x128xf32>
    %c54 = arith.constant 54 : index
    %651 = memref.load %arg2[%c54] : memref<100xf32, #tpu.memory_space<smem>>
    %652 = vector.broadcast %651 : f32 to vector<8x128xf32>
    %653 = arith.mulf %0, %652 : vector<8x128xf32>
    %c54_164 = arith.constant 54 : index
    %654 = memref.load %arg3[%c54_164] : memref<100xf32, #tpu.memory_space<smem>>
    %655 = vector.broadcast %654 : f32 to vector<8x128xf32>
    %656 = arith.addf %653, %655 : vector<8x128xf32>
    %cst_165 = arith.constant 0.000000e+00 : f32
    %657 = vector.broadcast %cst_165 : f32 to vector<8x128xf32>
    %658 = arith.maximumf %656, %657 : vector<8x128xf32>
    %c54_166 = arith.constant 54 : index
    %659 = memref.load %arg4[%c54_166] : memref<100xf32, #tpu.memory_space<smem>>
    %660 = vector.broadcast %659 : f32 to vector<8x128xf32>
    %661 = arith.mulf %660, %658 : vector<8x128xf32>
    %662 = arith.addf %650, %661 : vector<8x128xf32>
    %c55 = arith.constant 55 : index
    %663 = memref.load %arg2[%c55] : memref<100xf32, #tpu.memory_space<smem>>
    %664 = vector.broadcast %663 : f32 to vector<8x128xf32>
    %665 = arith.mulf %0, %664 : vector<8x128xf32>
    %c55_167 = arith.constant 55 : index
    %666 = memref.load %arg3[%c55_167] : memref<100xf32, #tpu.memory_space<smem>>
    %667 = vector.broadcast %666 : f32 to vector<8x128xf32>
    %668 = arith.addf %665, %667 : vector<8x128xf32>
    %cst_168 = arith.constant 0.000000e+00 : f32
    %669 = vector.broadcast %cst_168 : f32 to vector<8x128xf32>
    %670 = arith.maximumf %668, %669 : vector<8x128xf32>
    %c55_169 = arith.constant 55 : index
    %671 = memref.load %arg4[%c55_169] : memref<100xf32, #tpu.memory_space<smem>>
    %672 = vector.broadcast %671 : f32 to vector<8x128xf32>
    %673 = arith.mulf %672, %670 : vector<8x128xf32>
    %674 = arith.addf %662, %673 : vector<8x128xf32>
    %c56 = arith.constant 56 : index
    %675 = memref.load %arg2[%c56] : memref<100xf32, #tpu.memory_space<smem>>
    %676 = vector.broadcast %675 : f32 to vector<8x128xf32>
    %677 = arith.mulf %0, %676 : vector<8x128xf32>
    %c56_170 = arith.constant 56 : index
    %678 = memref.load %arg3[%c56_170] : memref<100xf32, #tpu.memory_space<smem>>
    %679 = vector.broadcast %678 : f32 to vector<8x128xf32>
    %680 = arith.addf %677, %679 : vector<8x128xf32>
    %cst_171 = arith.constant 0.000000e+00 : f32
    %681 = vector.broadcast %cst_171 : f32 to vector<8x128xf32>
    %682 = arith.maximumf %680, %681 : vector<8x128xf32>
    %c56_172 = arith.constant 56 : index
    %683 = memref.load %arg4[%c56_172] : memref<100xf32, #tpu.memory_space<smem>>
    %684 = vector.broadcast %683 : f32 to vector<8x128xf32>
    %685 = arith.mulf %684, %682 : vector<8x128xf32>
    %686 = arith.addf %674, %685 : vector<8x128xf32>
    %c57 = arith.constant 57 : index
    %687 = memref.load %arg2[%c57] : memref<100xf32, #tpu.memory_space<smem>>
    %688 = vector.broadcast %687 : f32 to vector<8x128xf32>
    %689 = arith.mulf %0, %688 : vector<8x128xf32>
    %c57_173 = arith.constant 57 : index
    %690 = memref.load %arg3[%c57_173] : memref<100xf32, #tpu.memory_space<smem>>
    %691 = vector.broadcast %690 : f32 to vector<8x128xf32>
    %692 = arith.addf %689, %691 : vector<8x128xf32>
    %cst_174 = arith.constant 0.000000e+00 : f32
    %693 = vector.broadcast %cst_174 : f32 to vector<8x128xf32>
    %694 = arith.maximumf %692, %693 : vector<8x128xf32>
    %c57_175 = arith.constant 57 : index
    %695 = memref.load %arg4[%c57_175] : memref<100xf32, #tpu.memory_space<smem>>
    %696 = vector.broadcast %695 : f32 to vector<8x128xf32>
    %697 = arith.mulf %696, %694 : vector<8x128xf32>
    %698 = arith.addf %686, %697 : vector<8x128xf32>
    %c58 = arith.constant 58 : index
    %699 = memref.load %arg2[%c58] : memref<100xf32, #tpu.memory_space<smem>>
    %700 = vector.broadcast %699 : f32 to vector<8x128xf32>
    %701 = arith.mulf %0, %700 : vector<8x128xf32>
    %c58_176 = arith.constant 58 : index
    %702 = memref.load %arg3[%c58_176] : memref<100xf32, #tpu.memory_space<smem>>
    %703 = vector.broadcast %702 : f32 to vector<8x128xf32>
    %704 = arith.addf %701, %703 : vector<8x128xf32>
    %cst_177 = arith.constant 0.000000e+00 : f32
    %705 = vector.broadcast %cst_177 : f32 to vector<8x128xf32>
    %706 = arith.maximumf %704, %705 : vector<8x128xf32>
    %c58_178 = arith.constant 58 : index
    %707 = memref.load %arg4[%c58_178] : memref<100xf32, #tpu.memory_space<smem>>
    %708 = vector.broadcast %707 : f32 to vector<8x128xf32>
    %709 = arith.mulf %708, %706 : vector<8x128xf32>
    %710 = arith.addf %698, %709 : vector<8x128xf32>
    %c59 = arith.constant 59 : index
    %711 = memref.load %arg2[%c59] : memref<100xf32, #tpu.memory_space<smem>>
    %712 = vector.broadcast %711 : f32 to vector<8x128xf32>
    %713 = arith.mulf %0, %712 : vector<8x128xf32>
    %c59_179 = arith.constant 59 : index
    %714 = memref.load %arg3[%c59_179] : memref<100xf32, #tpu.memory_space<smem>>
    %715 = vector.broadcast %714 : f32 to vector<8x128xf32>
    %716 = arith.addf %713, %715 : vector<8x128xf32>
    %cst_180 = arith.constant 0.000000e+00 : f32
    %717 = vector.broadcast %cst_180 : f32 to vector<8x128xf32>
    %718 = arith.maximumf %716, %717 : vector<8x128xf32>
    %c59_181 = arith.constant 59 : index
    %719 = memref.load %arg4[%c59_181] : memref<100xf32, #tpu.memory_space<smem>>
    %720 = vector.broadcast %719 : f32 to vector<8x128xf32>
    %721 = arith.mulf %720, %718 : vector<8x128xf32>
    %722 = arith.addf %710, %721 : vector<8x128xf32>
    %c60 = arith.constant 60 : index
    %723 = memref.load %arg2[%c60] : memref<100xf32, #tpu.memory_space<smem>>
    %724 = vector.broadcast %723 : f32 to vector<8x128xf32>
    %725 = arith.mulf %0, %724 : vector<8x128xf32>
    %c60_182 = arith.constant 60 : index
    %726 = memref.load %arg3[%c60_182] : memref<100xf32, #tpu.memory_space<smem>>
    %727 = vector.broadcast %726 : f32 to vector<8x128xf32>
    %728 = arith.addf %725, %727 : vector<8x128xf32>
    %cst_183 = arith.constant 0.000000e+00 : f32
    %729 = vector.broadcast %cst_183 : f32 to vector<8x128xf32>
    %730 = arith.maximumf %728, %729 : vector<8x128xf32>
    %c60_184 = arith.constant 60 : index
    %731 = memref.load %arg4[%c60_184] : memref<100xf32, #tpu.memory_space<smem>>
    %732 = vector.broadcast %731 : f32 to vector<8x128xf32>
    %733 = arith.mulf %732, %730 : vector<8x128xf32>
    %734 = arith.addf %722, %733 : vector<8x128xf32>
    %c61 = arith.constant 61 : index
    %735 = memref.load %arg2[%c61] : memref<100xf32, #tpu.memory_space<smem>>
    %736 = vector.broadcast %735 : f32 to vector<8x128xf32>
    %737 = arith.mulf %0, %736 : vector<8x128xf32>
    %c61_185 = arith.constant 61 : index
    %738 = memref.load %arg3[%c61_185] : memref<100xf32, #tpu.memory_space<smem>>
    %739 = vector.broadcast %738 : f32 to vector<8x128xf32>
    %740 = arith.addf %737, %739 : vector<8x128xf32>
    %cst_186 = arith.constant 0.000000e+00 : f32
    %741 = vector.broadcast %cst_186 : f32 to vector<8x128xf32>
    %742 = arith.maximumf %740, %741 : vector<8x128xf32>
    %c61_187 = arith.constant 61 : index
    %743 = memref.load %arg4[%c61_187] : memref<100xf32, #tpu.memory_space<smem>>
    %744 = vector.broadcast %743 : f32 to vector<8x128xf32>
    %745 = arith.mulf %744, %742 : vector<8x128xf32>
    %746 = arith.addf %734, %745 : vector<8x128xf32>
    %c62 = arith.constant 62 : index
    %747 = memref.load %arg2[%c62] : memref<100xf32, #tpu.memory_space<smem>>
    %748 = vector.broadcast %747 : f32 to vector<8x128xf32>
    %749 = arith.mulf %0, %748 : vector<8x128xf32>
    %c62_188 = arith.constant 62 : index
    %750 = memref.load %arg3[%c62_188] : memref<100xf32, #tpu.memory_space<smem>>
    %751 = vector.broadcast %750 : f32 to vector<8x128xf32>
    %752 = arith.addf %749, %751 : vector<8x128xf32>
    %cst_189 = arith.constant 0.000000e+00 : f32
    %753 = vector.broadcast %cst_189 : f32 to vector<8x128xf32>
    %754 = arith.maximumf %752, %753 : vector<8x128xf32>
    %c62_190 = arith.constant 62 : index
    %755 = memref.load %arg4[%c62_190] : memref<100xf32, #tpu.memory_space<smem>>
    %756 = vector.broadcast %755 : f32 to vector<8x128xf32>
    %757 = arith.mulf %756, %754 : vector<8x128xf32>
    %758 = arith.addf %746, %757 : vector<8x128xf32>
    %c63 = arith.constant 63 : index
    %759 = memref.load %arg2[%c63] : memref<100xf32, #tpu.memory_space<smem>>
    %760 = vector.broadcast %759 : f32 to vector<8x128xf32>
    %761 = arith.mulf %0, %760 : vector<8x128xf32>
    %c63_191 = arith.constant 63 : index
    %762 = memref.load %arg3[%c63_191] : memref<100xf32, #tpu.memory_space<smem>>
    %763 = vector.broadcast %762 : f32 to vector<8x128xf32>
    %764 = arith.addf %761, %763 : vector<8x128xf32>
    %cst_192 = arith.constant 0.000000e+00 : f32
    %765 = vector.broadcast %cst_192 : f32 to vector<8x128xf32>
    %766 = arith.maximumf %764, %765 : vector<8x128xf32>
    %c63_193 = arith.constant 63 : index
    %767 = memref.load %arg4[%c63_193] : memref<100xf32, #tpu.memory_space<smem>>
    %768 = vector.broadcast %767 : f32 to vector<8x128xf32>
    %769 = arith.mulf %768, %766 : vector<8x128xf32>
    %770 = arith.addf %758, %769 : vector<8x128xf32>
    %c64 = arith.constant 64 : index
    %771 = memref.load %arg2[%c64] : memref<100xf32, #tpu.memory_space<smem>>
    %772 = vector.broadcast %771 : f32 to vector<8x128xf32>
    %773 = arith.mulf %0, %772 : vector<8x128xf32>
    %c64_194 = arith.constant 64 : index
    %774 = memref.load %arg3[%c64_194] : memref<100xf32, #tpu.memory_space<smem>>
    %775 = vector.broadcast %774 : f32 to vector<8x128xf32>
    %776 = arith.addf %773, %775 : vector<8x128xf32>
    %cst_195 = arith.constant 0.000000e+00 : f32
    %777 = vector.broadcast %cst_195 : f32 to vector<8x128xf32>
    %778 = arith.maximumf %776, %777 : vector<8x128xf32>
    %c64_196 = arith.constant 64 : index
    %779 = memref.load %arg4[%c64_196] : memref<100xf32, #tpu.memory_space<smem>>
    %780 = vector.broadcast %779 : f32 to vector<8x128xf32>
    %781 = arith.mulf %780, %778 : vector<8x128xf32>
    %782 = arith.addf %770, %781 : vector<8x128xf32>
    %c65 = arith.constant 65 : index
    %783 = memref.load %arg2[%c65] : memref<100xf32, #tpu.memory_space<smem>>
    %784 = vector.broadcast %783 : f32 to vector<8x128xf32>
    %785 = arith.mulf %0, %784 : vector<8x128xf32>
    %c65_197 = arith.constant 65 : index
    %786 = memref.load %arg3[%c65_197] : memref<100xf32, #tpu.memory_space<smem>>
    %787 = vector.broadcast %786 : f32 to vector<8x128xf32>
    %788 = arith.addf %785, %787 : vector<8x128xf32>
    %cst_198 = arith.constant 0.000000e+00 : f32
    %789 = vector.broadcast %cst_198 : f32 to vector<8x128xf32>
    %790 = arith.maximumf %788, %789 : vector<8x128xf32>
    %c65_199 = arith.constant 65 : index
    %791 = memref.load %arg4[%c65_199] : memref<100xf32, #tpu.memory_space<smem>>
    %792 = vector.broadcast %791 : f32 to vector<8x128xf32>
    %793 = arith.mulf %792, %790 : vector<8x128xf32>
    %794 = arith.addf %782, %793 : vector<8x128xf32>
    %c66 = arith.constant 66 : index
    %795 = memref.load %arg2[%c66] : memref<100xf32, #tpu.memory_space<smem>>
    %796 = vector.broadcast %795 : f32 to vector<8x128xf32>
    %797 = arith.mulf %0, %796 : vector<8x128xf32>
    %c66_200 = arith.constant 66 : index
    %798 = memref.load %arg3[%c66_200] : memref<100xf32, #tpu.memory_space<smem>>
    %799 = vector.broadcast %798 : f32 to vector<8x128xf32>
    %800 = arith.addf %797, %799 : vector<8x128xf32>
    %cst_201 = arith.constant 0.000000e+00 : f32
    %801 = vector.broadcast %cst_201 : f32 to vector<8x128xf32>
    %802 = arith.maximumf %800, %801 : vector<8x128xf32>
    %c66_202 = arith.constant 66 : index
    %803 = memref.load %arg4[%c66_202] : memref<100xf32, #tpu.memory_space<smem>>
    %804 = vector.broadcast %803 : f32 to vector<8x128xf32>
    %805 = arith.mulf %804, %802 : vector<8x128xf32>
    %806 = arith.addf %794, %805 : vector<8x128xf32>
    %c67 = arith.constant 67 : index
    %807 = memref.load %arg2[%c67] : memref<100xf32, #tpu.memory_space<smem>>
    %808 = vector.broadcast %807 : f32 to vector<8x128xf32>
    %809 = arith.mulf %0, %808 : vector<8x128xf32>
    %c67_203 = arith.constant 67 : index
    %810 = memref.load %arg3[%c67_203] : memref<100xf32, #tpu.memory_space<smem>>
    %811 = vector.broadcast %810 : f32 to vector<8x128xf32>
    %812 = arith.addf %809, %811 : vector<8x128xf32>
    %cst_204 = arith.constant 0.000000e+00 : f32
    %813 = vector.broadcast %cst_204 : f32 to vector<8x128xf32>
    %814 = arith.maximumf %812, %813 : vector<8x128xf32>
    %c67_205 = arith.constant 67 : index
    %815 = memref.load %arg4[%c67_205] : memref<100xf32, #tpu.memory_space<smem>>
    %816 = vector.broadcast %815 : f32 to vector<8x128xf32>
    %817 = arith.mulf %816, %814 : vector<8x128xf32>
    %818 = arith.addf %806, %817 : vector<8x128xf32>
    %c68 = arith.constant 68 : index
    %819 = memref.load %arg2[%c68] : memref<100xf32, #tpu.memory_space<smem>>
    %820 = vector.broadcast %819 : f32 to vector<8x128xf32>
    %821 = arith.mulf %0, %820 : vector<8x128xf32>
    %c68_206 = arith.constant 68 : index
    %822 = memref.load %arg3[%c68_206] : memref<100xf32, #tpu.memory_space<smem>>
    %823 = vector.broadcast %822 : f32 to vector<8x128xf32>
    %824 = arith.addf %821, %823 : vector<8x128xf32>
    %cst_207 = arith.constant 0.000000e+00 : f32
    %825 = vector.broadcast %cst_207 : f32 to vector<8x128xf32>
    %826 = arith.maximumf %824, %825 : vector<8x128xf32>
    %c68_208 = arith.constant 68 : index
    %827 = memref.load %arg4[%c68_208] : memref<100xf32, #tpu.memory_space<smem>>
    %828 = vector.broadcast %827 : f32 to vector<8x128xf32>
    %829 = arith.mulf %828, %826 : vector<8x128xf32>
    %830 = arith.addf %818, %829 : vector<8x128xf32>
    %c69 = arith.constant 69 : index
    %831 = memref.load %arg2[%c69] : memref<100xf32, #tpu.memory_space<smem>>
    %832 = vector.broadcast %831 : f32 to vector<8x128xf32>
    %833 = arith.mulf %0, %832 : vector<8x128xf32>
    %c69_209 = arith.constant 69 : index
    %834 = memref.load %arg3[%c69_209] : memref<100xf32, #tpu.memory_space<smem>>
    %835 = vector.broadcast %834 : f32 to vector<8x128xf32>
    %836 = arith.addf %833, %835 : vector<8x128xf32>
    %cst_210 = arith.constant 0.000000e+00 : f32
    %837 = vector.broadcast %cst_210 : f32 to vector<8x128xf32>
    %838 = arith.maximumf %836, %837 : vector<8x128xf32>
    %c69_211 = arith.constant 69 : index
    %839 = memref.load %arg4[%c69_211] : memref<100xf32, #tpu.memory_space<smem>>
    %840 = vector.broadcast %839 : f32 to vector<8x128xf32>
    %841 = arith.mulf %840, %838 : vector<8x128xf32>
    %842 = arith.addf %830, %841 : vector<8x128xf32>
    %c70 = arith.constant 70 : index
    %843 = memref.load %arg2[%c70] : memref<100xf32, #tpu.memory_space<smem>>
    %844 = vector.broadcast %843 : f32 to vector<8x128xf32>
    %845 = arith.mulf %0, %844 : vector<8x128xf32>
    %c70_212 = arith.constant 70 : index
    %846 = memref.load %arg3[%c70_212] : memref<100xf32, #tpu.memory_space<smem>>
    %847 = vector.broadcast %846 : f32 to vector<8x128xf32>
    %848 = arith.addf %845, %847 : vector<8x128xf32>
    %cst_213 = arith.constant 0.000000e+00 : f32
    %849 = vector.broadcast %cst_213 : f32 to vector<8x128xf32>
    %850 = arith.maximumf %848, %849 : vector<8x128xf32>
    %c70_214 = arith.constant 70 : index
    %851 = memref.load %arg4[%c70_214] : memref<100xf32, #tpu.memory_space<smem>>
    %852 = vector.broadcast %851 : f32 to vector<8x128xf32>
    %853 = arith.mulf %852, %850 : vector<8x128xf32>
    %854 = arith.addf %842, %853 : vector<8x128xf32>
    %c71 = arith.constant 71 : index
    %855 = memref.load %arg2[%c71] : memref<100xf32, #tpu.memory_space<smem>>
    %856 = vector.broadcast %855 : f32 to vector<8x128xf32>
    %857 = arith.mulf %0, %856 : vector<8x128xf32>
    %c71_215 = arith.constant 71 : index
    %858 = memref.load %arg3[%c71_215] : memref<100xf32, #tpu.memory_space<smem>>
    %859 = vector.broadcast %858 : f32 to vector<8x128xf32>
    %860 = arith.addf %857, %859 : vector<8x128xf32>
    %cst_216 = arith.constant 0.000000e+00 : f32
    %861 = vector.broadcast %cst_216 : f32 to vector<8x128xf32>
    %862 = arith.maximumf %860, %861 : vector<8x128xf32>
    %c71_217 = arith.constant 71 : index
    %863 = memref.load %arg4[%c71_217] : memref<100xf32, #tpu.memory_space<smem>>
    %864 = vector.broadcast %863 : f32 to vector<8x128xf32>
    %865 = arith.mulf %864, %862 : vector<8x128xf32>
    %866 = arith.addf %854, %865 : vector<8x128xf32>
    %c72 = arith.constant 72 : index
    %867 = memref.load %arg2[%c72] : memref<100xf32, #tpu.memory_space<smem>>
    %868 = vector.broadcast %867 : f32 to vector<8x128xf32>
    %869 = arith.mulf %0, %868 : vector<8x128xf32>
    %c72_218 = arith.constant 72 : index
    %870 = memref.load %arg3[%c72_218] : memref<100xf32, #tpu.memory_space<smem>>
    %871 = vector.broadcast %870 : f32 to vector<8x128xf32>
    %872 = arith.addf %869, %871 : vector<8x128xf32>
    %cst_219 = arith.constant 0.000000e+00 : f32
    %873 = vector.broadcast %cst_219 : f32 to vector<8x128xf32>
    %874 = arith.maximumf %872, %873 : vector<8x128xf32>
    %c72_220 = arith.constant 72 : index
    %875 = memref.load %arg4[%c72_220] : memref<100xf32, #tpu.memory_space<smem>>
    %876 = vector.broadcast %875 : f32 to vector<8x128xf32>
    %877 = arith.mulf %876, %874 : vector<8x128xf32>
    %878 = arith.addf %866, %877 : vector<8x128xf32>
    %c73 = arith.constant 73 : index
    %879 = memref.load %arg2[%c73] : memref<100xf32, #tpu.memory_space<smem>>
    %880 = vector.broadcast %879 : f32 to vector<8x128xf32>
    %881 = arith.mulf %0, %880 : vector<8x128xf32>
    %c73_221 = arith.constant 73 : index
    %882 = memref.load %arg3[%c73_221] : memref<100xf32, #tpu.memory_space<smem>>
    %883 = vector.broadcast %882 : f32 to vector<8x128xf32>
    %884 = arith.addf %881, %883 : vector<8x128xf32>
    %cst_222 = arith.constant 0.000000e+00 : f32
    %885 = vector.broadcast %cst_222 : f32 to vector<8x128xf32>
    %886 = arith.maximumf %884, %885 : vector<8x128xf32>
    %c73_223 = arith.constant 73 : index
    %887 = memref.load %arg4[%c73_223] : memref<100xf32, #tpu.memory_space<smem>>
    %888 = vector.broadcast %887 : f32 to vector<8x128xf32>
    %889 = arith.mulf %888, %886 : vector<8x128xf32>
    %890 = arith.addf %878, %889 : vector<8x128xf32>
    %c74 = arith.constant 74 : index
    %891 = memref.load %arg2[%c74] : memref<100xf32, #tpu.memory_space<smem>>
    %892 = vector.broadcast %891 : f32 to vector<8x128xf32>
    %893 = arith.mulf %0, %892 : vector<8x128xf32>
    %c74_224 = arith.constant 74 : index
    %894 = memref.load %arg3[%c74_224] : memref<100xf32, #tpu.memory_space<smem>>
    %895 = vector.broadcast %894 : f32 to vector<8x128xf32>
    %896 = arith.addf %893, %895 : vector<8x128xf32>
    %cst_225 = arith.constant 0.000000e+00 : f32
    %897 = vector.broadcast %cst_225 : f32 to vector<8x128xf32>
    %898 = arith.maximumf %896, %897 : vector<8x128xf32>
    %c74_226 = arith.constant 74 : index
    %899 = memref.load %arg4[%c74_226] : memref<100xf32, #tpu.memory_space<smem>>
    %900 = vector.broadcast %899 : f32 to vector<8x128xf32>
    %901 = arith.mulf %900, %898 : vector<8x128xf32>
    %902 = arith.addf %890, %901 : vector<8x128xf32>
    %c75 = arith.constant 75 : index
    %903 = memref.load %arg2[%c75] : memref<100xf32, #tpu.memory_space<smem>>
    %904 = vector.broadcast %903 : f32 to vector<8x128xf32>
    %905 = arith.mulf %0, %904 : vector<8x128xf32>
    %c75_227 = arith.constant 75 : index
    %906 = memref.load %arg3[%c75_227] : memref<100xf32, #tpu.memory_space<smem>>
    %907 = vector.broadcast %906 : f32 to vector<8x128xf32>
    %908 = arith.addf %905, %907 : vector<8x128xf32>
    %cst_228 = arith.constant 0.000000e+00 : f32
    %909 = vector.broadcast %cst_228 : f32 to vector<8x128xf32>
    %910 = arith.maximumf %908, %909 : vector<8x128xf32>
    %c75_229 = arith.constant 75 : index
    %911 = memref.load %arg4[%c75_229] : memref<100xf32, #tpu.memory_space<smem>>
    %912 = vector.broadcast %911 : f32 to vector<8x128xf32>
    %913 = arith.mulf %912, %910 : vector<8x128xf32>
    %914 = arith.addf %902, %913 : vector<8x128xf32>
    %c76 = arith.constant 76 : index
    %915 = memref.load %arg2[%c76] : memref<100xf32, #tpu.memory_space<smem>>
    %916 = vector.broadcast %915 : f32 to vector<8x128xf32>
    %917 = arith.mulf %0, %916 : vector<8x128xf32>
    %c76_230 = arith.constant 76 : index
    %918 = memref.load %arg3[%c76_230] : memref<100xf32, #tpu.memory_space<smem>>
    %919 = vector.broadcast %918 : f32 to vector<8x128xf32>
    %920 = arith.addf %917, %919 : vector<8x128xf32>
    %cst_231 = arith.constant 0.000000e+00 : f32
    %921 = vector.broadcast %cst_231 : f32 to vector<8x128xf32>
    %922 = arith.maximumf %920, %921 : vector<8x128xf32>
    %c76_232 = arith.constant 76 : index
    %923 = memref.load %arg4[%c76_232] : memref<100xf32, #tpu.memory_space<smem>>
    %924 = vector.broadcast %923 : f32 to vector<8x128xf32>
    %925 = arith.mulf %924, %922 : vector<8x128xf32>
    %926 = arith.addf %914, %925 : vector<8x128xf32>
    %c77 = arith.constant 77 : index
    %927 = memref.load %arg2[%c77] : memref<100xf32, #tpu.memory_space<smem>>
    %928 = vector.broadcast %927 : f32 to vector<8x128xf32>
    %929 = arith.mulf %0, %928 : vector<8x128xf32>
    %c77_233 = arith.constant 77 : index
    %930 = memref.load %arg3[%c77_233] : memref<100xf32, #tpu.memory_space<smem>>
    %931 = vector.broadcast %930 : f32 to vector<8x128xf32>
    %932 = arith.addf %929, %931 : vector<8x128xf32>
    %cst_234 = arith.constant 0.000000e+00 : f32
    %933 = vector.broadcast %cst_234 : f32 to vector<8x128xf32>
    %934 = arith.maximumf %932, %933 : vector<8x128xf32>
    %c77_235 = arith.constant 77 : index
    %935 = memref.load %arg4[%c77_235] : memref<100xf32, #tpu.memory_space<smem>>
    %936 = vector.broadcast %935 : f32 to vector<8x128xf32>
    %937 = arith.mulf %936, %934 : vector<8x128xf32>
    %938 = arith.addf %926, %937 : vector<8x128xf32>
    %c78 = arith.constant 78 : index
    %939 = memref.load %arg2[%c78] : memref<100xf32, #tpu.memory_space<smem>>
    %940 = vector.broadcast %939 : f32 to vector<8x128xf32>
    %941 = arith.mulf %0, %940 : vector<8x128xf32>
    %c78_236 = arith.constant 78 : index
    %942 = memref.load %arg3[%c78_236] : memref<100xf32, #tpu.memory_space<smem>>
    %943 = vector.broadcast %942 : f32 to vector<8x128xf32>
    %944 = arith.addf %941, %943 : vector<8x128xf32>
    %cst_237 = arith.constant 0.000000e+00 : f32
    %945 = vector.broadcast %cst_237 : f32 to vector<8x128xf32>
    %946 = arith.maximumf %944, %945 : vector<8x128xf32>
    %c78_238 = arith.constant 78 : index
    %947 = memref.load %arg4[%c78_238] : memref<100xf32, #tpu.memory_space<smem>>
    %948 = vector.broadcast %947 : f32 to vector<8x128xf32>
    %949 = arith.mulf %948, %946 : vector<8x128xf32>
    %950 = arith.addf %938, %949 : vector<8x128xf32>
    %c79 = arith.constant 79 : index
    %951 = memref.load %arg2[%c79] : memref<100xf32, #tpu.memory_space<smem>>
    %952 = vector.broadcast %951 : f32 to vector<8x128xf32>
    %953 = arith.mulf %0, %952 : vector<8x128xf32>
    %c79_239 = arith.constant 79 : index
    %954 = memref.load %arg3[%c79_239] : memref<100xf32, #tpu.memory_space<smem>>
    %955 = vector.broadcast %954 : f32 to vector<8x128xf32>
    %956 = arith.addf %953, %955 : vector<8x128xf32>
    %cst_240 = arith.constant 0.000000e+00 : f32
    %957 = vector.broadcast %cst_240 : f32 to vector<8x128xf32>
    %958 = arith.maximumf %956, %957 : vector<8x128xf32>
    %c79_241 = arith.constant 79 : index
    %959 = memref.load %arg4[%c79_241] : memref<100xf32, #tpu.memory_space<smem>>
    %960 = vector.broadcast %959 : f32 to vector<8x128xf32>
    %961 = arith.mulf %960, %958 : vector<8x128xf32>
    %962 = arith.addf %950, %961 : vector<8x128xf32>
    %c80 = arith.constant 80 : index
    %963 = memref.load %arg2[%c80] : memref<100xf32, #tpu.memory_space<smem>>
    %964 = vector.broadcast %963 : f32 to vector<8x128xf32>
    %965 = arith.mulf %0, %964 : vector<8x128xf32>
    %c80_242 = arith.constant 80 : index
    %966 = memref.load %arg3[%c80_242] : memref<100xf32, #tpu.memory_space<smem>>
    %967 = vector.broadcast %966 : f32 to vector<8x128xf32>
    %968 = arith.addf %965, %967 : vector<8x128xf32>
    %cst_243 = arith.constant 0.000000e+00 : f32
    %969 = vector.broadcast %cst_243 : f32 to vector<8x128xf32>
    %970 = arith.maximumf %968, %969 : vector<8x128xf32>
    %c80_244 = arith.constant 80 : index
    %971 = memref.load %arg4[%c80_244] : memref<100xf32, #tpu.memory_space<smem>>
    %972 = vector.broadcast %971 : f32 to vector<8x128xf32>
    %973 = arith.mulf %972, %970 : vector<8x128xf32>
    %974 = arith.addf %962, %973 : vector<8x128xf32>
    %c81 = arith.constant 81 : index
    %975 = memref.load %arg2[%c81] : memref<100xf32, #tpu.memory_space<smem>>
    %976 = vector.broadcast %975 : f32 to vector<8x128xf32>
    %977 = arith.mulf %0, %976 : vector<8x128xf32>
    %c81_245 = arith.constant 81 : index
    %978 = memref.load %arg3[%c81_245] : memref<100xf32, #tpu.memory_space<smem>>
    %979 = vector.broadcast %978 : f32 to vector<8x128xf32>
    %980 = arith.addf %977, %979 : vector<8x128xf32>
    %cst_246 = arith.constant 0.000000e+00 : f32
    %981 = vector.broadcast %cst_246 : f32 to vector<8x128xf32>
    %982 = arith.maximumf %980, %981 : vector<8x128xf32>
    %c81_247 = arith.constant 81 : index
    %983 = memref.load %arg4[%c81_247] : memref<100xf32, #tpu.memory_space<smem>>
    %984 = vector.broadcast %983 : f32 to vector<8x128xf32>
    %985 = arith.mulf %984, %982 : vector<8x128xf32>
    %986 = arith.addf %974, %985 : vector<8x128xf32>
    %c82 = arith.constant 82 : index
    %987 = memref.load %arg2[%c82] : memref<100xf32, #tpu.memory_space<smem>>
    %988 = vector.broadcast %987 : f32 to vector<8x128xf32>
    %989 = arith.mulf %0, %988 : vector<8x128xf32>
    %c82_248 = arith.constant 82 : index
    %990 = memref.load %arg3[%c82_248] : memref<100xf32, #tpu.memory_space<smem>>
    %991 = vector.broadcast %990 : f32 to vector<8x128xf32>
    %992 = arith.addf %989, %991 : vector<8x128xf32>
    %cst_249 = arith.constant 0.000000e+00 : f32
    %993 = vector.broadcast %cst_249 : f32 to vector<8x128xf32>
    %994 = arith.maximumf %992, %993 : vector<8x128xf32>
    %c82_250 = arith.constant 82 : index
    %995 = memref.load %arg4[%c82_250] : memref<100xf32, #tpu.memory_space<smem>>
    %996 = vector.broadcast %995 : f32 to vector<8x128xf32>
    %997 = arith.mulf %996, %994 : vector<8x128xf32>
    %998 = arith.addf %986, %997 : vector<8x128xf32>
    %c83 = arith.constant 83 : index
    %999 = memref.load %arg2[%c83] : memref<100xf32, #tpu.memory_space<smem>>
    %1000 = vector.broadcast %999 : f32 to vector<8x128xf32>
    %1001 = arith.mulf %0, %1000 : vector<8x128xf32>
    %c83_251 = arith.constant 83 : index
    %1002 = memref.load %arg3[%c83_251] : memref<100xf32, #tpu.memory_space<smem>>
    %1003 = vector.broadcast %1002 : f32 to vector<8x128xf32>
    %1004 = arith.addf %1001, %1003 : vector<8x128xf32>
    %cst_252 = arith.constant 0.000000e+00 : f32
    %1005 = vector.broadcast %cst_252 : f32 to vector<8x128xf32>
    %1006 = arith.maximumf %1004, %1005 : vector<8x128xf32>
    %c83_253 = arith.constant 83 : index
    %1007 = memref.load %arg4[%c83_253] : memref<100xf32, #tpu.memory_space<smem>>
    %1008 = vector.broadcast %1007 : f32 to vector<8x128xf32>
    %1009 = arith.mulf %1008, %1006 : vector<8x128xf32>
    %1010 = arith.addf %998, %1009 : vector<8x128xf32>
    %c84 = arith.constant 84 : index
    %1011 = memref.load %arg2[%c84] : memref<100xf32, #tpu.memory_space<smem>>
    %1012 = vector.broadcast %1011 : f32 to vector<8x128xf32>
    %1013 = arith.mulf %0, %1012 : vector<8x128xf32>
    %c84_254 = arith.constant 84 : index
    %1014 = memref.load %arg3[%c84_254] : memref<100xf32, #tpu.memory_space<smem>>
    %1015 = vector.broadcast %1014 : f32 to vector<8x128xf32>
    %1016 = arith.addf %1013, %1015 : vector<8x128xf32>
    %cst_255 = arith.constant 0.000000e+00 : f32
    %1017 = vector.broadcast %cst_255 : f32 to vector<8x128xf32>
    %1018 = arith.maximumf %1016, %1017 : vector<8x128xf32>
    %c84_256 = arith.constant 84 : index
    %1019 = memref.load %arg4[%c84_256] : memref<100xf32, #tpu.memory_space<smem>>
    %1020 = vector.broadcast %1019 : f32 to vector<8x128xf32>
    %1021 = arith.mulf %1020, %1018 : vector<8x128xf32>
    %1022 = arith.addf %1010, %1021 : vector<8x128xf32>
    %c85 = arith.constant 85 : index
    %1023 = memref.load %arg2[%c85] : memref<100xf32, #tpu.memory_space<smem>>
    %1024 = vector.broadcast %1023 : f32 to vector<8x128xf32>
    %1025 = arith.mulf %0, %1024 : vector<8x128xf32>
    %c85_257 = arith.constant 85 : index
    %1026 = memref.load %arg3[%c85_257] : memref<100xf32, #tpu.memory_space<smem>>
    %1027 = vector.broadcast %1026 : f32 to vector<8x128xf32>
    %1028 = arith.addf %1025, %1027 : vector<8x128xf32>
    %cst_258 = arith.constant 0.000000e+00 : f32
    %1029 = vector.broadcast %cst_258 : f32 to vector<8x128xf32>
    %1030 = arith.maximumf %1028, %1029 : vector<8x128xf32>
    %c85_259 = arith.constant 85 : index
    %1031 = memref.load %arg4[%c85_259] : memref<100xf32, #tpu.memory_space<smem>>
    %1032 = vector.broadcast %1031 : f32 to vector<8x128xf32>
    %1033 = arith.mulf %1032, %1030 : vector<8x128xf32>
    %1034 = arith.addf %1022, %1033 : vector<8x128xf32>
    %c86 = arith.constant 86 : index
    %1035 = memref.load %arg2[%c86] : memref<100xf32, #tpu.memory_space<smem>>
    %1036 = vector.broadcast %1035 : f32 to vector<8x128xf32>
    %1037 = arith.mulf %0, %1036 : vector<8x128xf32>
    %c86_260 = arith.constant 86 : index
    %1038 = memref.load %arg3[%c86_260] : memref<100xf32, #tpu.memory_space<smem>>
    %1039 = vector.broadcast %1038 : f32 to vector<8x128xf32>
    %1040 = arith.addf %1037, %1039 : vector<8x128xf32>
    %cst_261 = arith.constant 0.000000e+00 : f32
    %1041 = vector.broadcast %cst_261 : f32 to vector<8x128xf32>
    %1042 = arith.maximumf %1040, %1041 : vector<8x128xf32>
    %c86_262 = arith.constant 86 : index
    %1043 = memref.load %arg4[%c86_262] : memref<100xf32, #tpu.memory_space<smem>>
    %1044 = vector.broadcast %1043 : f32 to vector<8x128xf32>
    %1045 = arith.mulf %1044, %1042 : vector<8x128xf32>
    %1046 = arith.addf %1034, %1045 : vector<8x128xf32>
    %c87 = arith.constant 87 : index
    %1047 = memref.load %arg2[%c87] : memref<100xf32, #tpu.memory_space<smem>>
    %1048 = vector.broadcast %1047 : f32 to vector<8x128xf32>
    %1049 = arith.mulf %0, %1048 : vector<8x128xf32>
    %c87_263 = arith.constant 87 : index
    %1050 = memref.load %arg3[%c87_263] : memref<100xf32, #tpu.memory_space<smem>>
    %1051 = vector.broadcast %1050 : f32 to vector<8x128xf32>
    %1052 = arith.addf %1049, %1051 : vector<8x128xf32>
    %cst_264 = arith.constant 0.000000e+00 : f32
    %1053 = vector.broadcast %cst_264 : f32 to vector<8x128xf32>
    %1054 = arith.maximumf %1052, %1053 : vector<8x128xf32>
    %c87_265 = arith.constant 87 : index
    %1055 = memref.load %arg4[%c87_265] : memref<100xf32, #tpu.memory_space<smem>>
    %1056 = vector.broadcast %1055 : f32 to vector<8x128xf32>
    %1057 = arith.mulf %1056, %1054 : vector<8x128xf32>
    %1058 = arith.addf %1046, %1057 : vector<8x128xf32>
    %c88 = arith.constant 88 : index
    %1059 = memref.load %arg2[%c88] : memref<100xf32, #tpu.memory_space<smem>>
    %1060 = vector.broadcast %1059 : f32 to vector<8x128xf32>
    %1061 = arith.mulf %0, %1060 : vector<8x128xf32>
    %c88_266 = arith.constant 88 : index
    %1062 = memref.load %arg3[%c88_266] : memref<100xf32, #tpu.memory_space<smem>>
    %1063 = vector.broadcast %1062 : f32 to vector<8x128xf32>
    %1064 = arith.addf %1061, %1063 : vector<8x128xf32>
    %cst_267 = arith.constant 0.000000e+00 : f32
    %1065 = vector.broadcast %cst_267 : f32 to vector<8x128xf32>
    %1066 = arith.maximumf %1064, %1065 : vector<8x128xf32>
    %c88_268 = arith.constant 88 : index
    %1067 = memref.load %arg4[%c88_268] : memref<100xf32, #tpu.memory_space<smem>>
    %1068 = vector.broadcast %1067 : f32 to vector<8x128xf32>
    %1069 = arith.mulf %1068, %1066 : vector<8x128xf32>
    %1070 = arith.addf %1058, %1069 : vector<8x128xf32>
    %c89 = arith.constant 89 : index
    %1071 = memref.load %arg2[%c89] : memref<100xf32, #tpu.memory_space<smem>>
    %1072 = vector.broadcast %1071 : f32 to vector<8x128xf32>
    %1073 = arith.mulf %0, %1072 : vector<8x128xf32>
    %c89_269 = arith.constant 89 : index
    %1074 = memref.load %arg3[%c89_269] : memref<100xf32, #tpu.memory_space<smem>>
    %1075 = vector.broadcast %1074 : f32 to vector<8x128xf32>
    %1076 = arith.addf %1073, %1075 : vector<8x128xf32>
    %cst_270 = arith.constant 0.000000e+00 : f32
    %1077 = vector.broadcast %cst_270 : f32 to vector<8x128xf32>
    %1078 = arith.maximumf %1076, %1077 : vector<8x128xf32>
    %c89_271 = arith.constant 89 : index
    %1079 = memref.load %arg4[%c89_271] : memref<100xf32, #tpu.memory_space<smem>>
    %1080 = vector.broadcast %1079 : f32 to vector<8x128xf32>
    %1081 = arith.mulf %1080, %1078 : vector<8x128xf32>
    %1082 = arith.addf %1070, %1081 : vector<8x128xf32>
    %c90 = arith.constant 90 : index
    %1083 = memref.load %arg2[%c90] : memref<100xf32, #tpu.memory_space<smem>>
    %1084 = vector.broadcast %1083 : f32 to vector<8x128xf32>
    %1085 = arith.mulf %0, %1084 : vector<8x128xf32>
    %c90_272 = arith.constant 90 : index
    %1086 = memref.load %arg3[%c90_272] : memref<100xf32, #tpu.memory_space<smem>>
    %1087 = vector.broadcast %1086 : f32 to vector<8x128xf32>
    %1088 = arith.addf %1085, %1087 : vector<8x128xf32>
    %cst_273 = arith.constant 0.000000e+00 : f32
    %1089 = vector.broadcast %cst_273 : f32 to vector<8x128xf32>
    %1090 = arith.maximumf %1088, %1089 : vector<8x128xf32>
    %c90_274 = arith.constant 90 : index
    %1091 = memref.load %arg4[%c90_274] : memref<100xf32, #tpu.memory_space<smem>>
    %1092 = vector.broadcast %1091 : f32 to vector<8x128xf32>
    %1093 = arith.mulf %1092, %1090 : vector<8x128xf32>
    %1094 = arith.addf %1082, %1093 : vector<8x128xf32>
    %c91 = arith.constant 91 : index
    %1095 = memref.load %arg2[%c91] : memref<100xf32, #tpu.memory_space<smem>>
    %1096 = vector.broadcast %1095 : f32 to vector<8x128xf32>
    %1097 = arith.mulf %0, %1096 : vector<8x128xf32>
    %c91_275 = arith.constant 91 : index
    %1098 = memref.load %arg3[%c91_275] : memref<100xf32, #tpu.memory_space<smem>>
    %1099 = vector.broadcast %1098 : f32 to vector<8x128xf32>
    %1100 = arith.addf %1097, %1099 : vector<8x128xf32>
    %cst_276 = arith.constant 0.000000e+00 : f32
    %1101 = vector.broadcast %cst_276 : f32 to vector<8x128xf32>
    %1102 = arith.maximumf %1100, %1101 : vector<8x128xf32>
    %c91_277 = arith.constant 91 : index
    %1103 = memref.load %arg4[%c91_277] : memref<100xf32, #tpu.memory_space<smem>>
    %1104 = vector.broadcast %1103 : f32 to vector<8x128xf32>
    %1105 = arith.mulf %1104, %1102 : vector<8x128xf32>
    %1106 = arith.addf %1094, %1105 : vector<8x128xf32>
    %c92 = arith.constant 92 : index
    %1107 = memref.load %arg2[%c92] : memref<100xf32, #tpu.memory_space<smem>>
    %1108 = vector.broadcast %1107 : f32 to vector<8x128xf32>
    %1109 = arith.mulf %0, %1108 : vector<8x128xf32>
    %c92_278 = arith.constant 92 : index
    %1110 = memref.load %arg3[%c92_278] : memref<100xf32, #tpu.memory_space<smem>>
    %1111 = vector.broadcast %1110 : f32 to vector<8x128xf32>
    %1112 = arith.addf %1109, %1111 : vector<8x128xf32>
    %cst_279 = arith.constant 0.000000e+00 : f32
    %1113 = vector.broadcast %cst_279 : f32 to vector<8x128xf32>
    %1114 = arith.maximumf %1112, %1113 : vector<8x128xf32>
    %c92_280 = arith.constant 92 : index
    %1115 = memref.load %arg4[%c92_280] : memref<100xf32, #tpu.memory_space<smem>>
    %1116 = vector.broadcast %1115 : f32 to vector<8x128xf32>
    %1117 = arith.mulf %1116, %1114 : vector<8x128xf32>
    %1118 = arith.addf %1106, %1117 : vector<8x128xf32>
    %c93 = arith.constant 93 : index
    %1119 = memref.load %arg2[%c93] : memref<100xf32, #tpu.memory_space<smem>>
    %1120 = vector.broadcast %1119 : f32 to vector<8x128xf32>
    %1121 = arith.mulf %0, %1120 : vector<8x128xf32>
    %c93_281 = arith.constant 93 : index
    %1122 = memref.load %arg3[%c93_281] : memref<100xf32, #tpu.memory_space<smem>>
    %1123 = vector.broadcast %1122 : f32 to vector<8x128xf32>
    %1124 = arith.addf %1121, %1123 : vector<8x128xf32>
    %cst_282 = arith.constant 0.000000e+00 : f32
    %1125 = vector.broadcast %cst_282 : f32 to vector<8x128xf32>
    %1126 = arith.maximumf %1124, %1125 : vector<8x128xf32>
    %c93_283 = arith.constant 93 : index
    %1127 = memref.load %arg4[%c93_283] : memref<100xf32, #tpu.memory_space<smem>>
    %1128 = vector.broadcast %1127 : f32 to vector<8x128xf32>
    %1129 = arith.mulf %1128, %1126 : vector<8x128xf32>
    %1130 = arith.addf %1118, %1129 : vector<8x128xf32>
    %c94 = arith.constant 94 : index
    %1131 = memref.load %arg2[%c94] : memref<100xf32, #tpu.memory_space<smem>>
    %1132 = vector.broadcast %1131 : f32 to vector<8x128xf32>
    %1133 = arith.mulf %0, %1132 : vector<8x128xf32>
    %c94_284 = arith.constant 94 : index
    %1134 = memref.load %arg3[%c94_284] : memref<100xf32, #tpu.memory_space<smem>>
    %1135 = vector.broadcast %1134 : f32 to vector<8x128xf32>
    %1136 = arith.addf %1133, %1135 : vector<8x128xf32>
    %cst_285 = arith.constant 0.000000e+00 : f32
    %1137 = vector.broadcast %cst_285 : f32 to vector<8x128xf32>
    %1138 = arith.maximumf %1136, %1137 : vector<8x128xf32>
    %c94_286 = arith.constant 94 : index
    %1139 = memref.load %arg4[%c94_286] : memref<100xf32, #tpu.memory_space<smem>>
    %1140 = vector.broadcast %1139 : f32 to vector<8x128xf32>
    %1141 = arith.mulf %1140, %1138 : vector<8x128xf32>
    %1142 = arith.addf %1130, %1141 : vector<8x128xf32>
    %c95 = arith.constant 95 : index
    %1143 = memref.load %arg2[%c95] : memref<100xf32, #tpu.memory_space<smem>>
    %1144 = vector.broadcast %1143 : f32 to vector<8x128xf32>
    %1145 = arith.mulf %0, %1144 : vector<8x128xf32>
    %c95_287 = arith.constant 95 : index
    %1146 = memref.load %arg3[%c95_287] : memref<100xf32, #tpu.memory_space<smem>>
    %1147 = vector.broadcast %1146 : f32 to vector<8x128xf32>
    %1148 = arith.addf %1145, %1147 : vector<8x128xf32>
    %cst_288 = arith.constant 0.000000e+00 : f32
    %1149 = vector.broadcast %cst_288 : f32 to vector<8x128xf32>
    %1150 = arith.maximumf %1148, %1149 : vector<8x128xf32>
    %c95_289 = arith.constant 95 : index
    %1151 = memref.load %arg4[%c95_289] : memref<100xf32, #tpu.memory_space<smem>>
    %1152 = vector.broadcast %1151 : f32 to vector<8x128xf32>
    %1153 = arith.mulf %1152, %1150 : vector<8x128xf32>
    %1154 = arith.addf %1142, %1153 : vector<8x128xf32>
    %c96 = arith.constant 96 : index
    %1155 = memref.load %arg2[%c96] : memref<100xf32, #tpu.memory_space<smem>>
    %1156 = vector.broadcast %1155 : f32 to vector<8x128xf32>
    %1157 = arith.mulf %0, %1156 : vector<8x128xf32>
    %c96_290 = arith.constant 96 : index
    %1158 = memref.load %arg3[%c96_290] : memref<100xf32, #tpu.memory_space<smem>>
    %1159 = vector.broadcast %1158 : f32 to vector<8x128xf32>
    %1160 = arith.addf %1157, %1159 : vector<8x128xf32>
    %cst_291 = arith.constant 0.000000e+00 : f32
    %1161 = vector.broadcast %cst_291 : f32 to vector<8x128xf32>
    %1162 = arith.maximumf %1160, %1161 : vector<8x128xf32>
    %c96_292 = arith.constant 96 : index
    %1163 = memref.load %arg4[%c96_292] : memref<100xf32, #tpu.memory_space<smem>>
    %1164 = vector.broadcast %1163 : f32 to vector<8x128xf32>
    %1165 = arith.mulf %1164, %1162 : vector<8x128xf32>
    %1166 = arith.addf %1154, %1165 : vector<8x128xf32>
    %c97 = arith.constant 97 : index
    %1167 = memref.load %arg2[%c97] : memref<100xf32, #tpu.memory_space<smem>>
    %1168 = vector.broadcast %1167 : f32 to vector<8x128xf32>
    %1169 = arith.mulf %0, %1168 : vector<8x128xf32>
    %c97_293 = arith.constant 97 : index
    %1170 = memref.load %arg3[%c97_293] : memref<100xf32, #tpu.memory_space<smem>>
    %1171 = vector.broadcast %1170 : f32 to vector<8x128xf32>
    %1172 = arith.addf %1169, %1171 : vector<8x128xf32>
    %cst_294 = arith.constant 0.000000e+00 : f32
    %1173 = vector.broadcast %cst_294 : f32 to vector<8x128xf32>
    %1174 = arith.maximumf %1172, %1173 : vector<8x128xf32>
    %c97_295 = arith.constant 97 : index
    %1175 = memref.load %arg4[%c97_295] : memref<100xf32, #tpu.memory_space<smem>>
    %1176 = vector.broadcast %1175 : f32 to vector<8x128xf32>
    %1177 = arith.mulf %1176, %1174 : vector<8x128xf32>
    %1178 = arith.addf %1166, %1177 : vector<8x128xf32>
    %c98 = arith.constant 98 : index
    %1179 = memref.load %arg2[%c98] : memref<100xf32, #tpu.memory_space<smem>>
    %1180 = vector.broadcast %1179 : f32 to vector<8x128xf32>
    %1181 = arith.mulf %0, %1180 : vector<8x128xf32>
    %c98_296 = arith.constant 98 : index
    %1182 = memref.load %arg3[%c98_296] : memref<100xf32, #tpu.memory_space<smem>>
    %1183 = vector.broadcast %1182 : f32 to vector<8x128xf32>
    %1184 = arith.addf %1181, %1183 : vector<8x128xf32>
    %cst_297 = arith.constant 0.000000e+00 : f32
    %1185 = vector.broadcast %cst_297 : f32 to vector<8x128xf32>
    %1186 = arith.maximumf %1184, %1185 : vector<8x128xf32>
    %c98_298 = arith.constant 98 : index
    %1187 = memref.load %arg4[%c98_298] : memref<100xf32, #tpu.memory_space<smem>>
    %1188 = vector.broadcast %1187 : f32 to vector<8x128xf32>
    %1189 = arith.mulf %1188, %1186 : vector<8x128xf32>
    %1190 = arith.addf %1178, %1189 : vector<8x128xf32>
    %c99 = arith.constant 99 : index
    %1191 = memref.load %arg2[%c99] : memref<100xf32, #tpu.memory_space<smem>>
    %1192 = vector.broadcast %1191 : f32 to vector<8x128xf32>
    %1193 = arith.mulf %0, %1192 : vector<8x128xf32>
    %c99_299 = arith.constant 99 : index
    %1194 = memref.load %arg3[%c99_299] : memref<100xf32, #tpu.memory_space<smem>>
    %1195 = vector.broadcast %1194 : f32 to vector<8x128xf32>
    %1196 = arith.addf %1193, %1195 : vector<8x128xf32>
    %cst_300 = arith.constant 0.000000e+00 : f32
    %1197 = vector.broadcast %cst_300 : f32 to vector<8x128xf32>
    %1198 = arith.maximumf %1196, %1197 : vector<8x128xf32>
    %c99_301 = arith.constant 99 : index
    %1199 = memref.load %arg4[%c99_301] : memref<100xf32, #tpu.memory_space<smem>>
    %1200 = vector.broadcast %1199 : f32 to vector<8x128xf32>
    %1201 = arith.mulf %1200, %1198 : vector<8x128xf32>
    %1202 = arith.addf %1190, %1201 : vector<8x128xf32>
    %c0_302 = arith.constant 0 : index
    %c0_303 = arith.constant 0 : index
    %1203 = vector.load %arg6[%c0_302, %c0_303] : memref<8x128xf32, #tpu.memory_space<vmem>>, vector<8x128xf32>
    tpu.vector_store %arg6[%c0_302, %c0_303], %1202 {strides = array<i32>} : memref<8x128xf32, #tpu.memory_space<vmem>>, vector<8x128xf32>,
    return
  }
  func.func @transform_0(%arg0: i32) -> (i32, i32) {
    %c0_i32 = arith.constant 0 : i32
    %c0_i32_0 = arith.constant 0 : i32
    return %arg0, %c0_i32 : i32, i32
  }
  func.func @transform_1(%arg0: i32) -> i32 {
    %c0_i32 = arith.constant 0 : i32
    %c0_i32_0 = arith.constant 0 : i32
    return %c0_i32 : i32
  }
  func.func @transform_2(%arg0: i32) -> i32 {
    %c0_i32 = arith.constant 0 : i32
    %c0_i32_0 = arith.constant 0 : i32
    return %c0_i32 : i32
  }
  func.func @transform_3(%arg0: i32) -> i32 {
    %c0_i32 = arith.constant 0 : i32
    %c0_i32_0 = arith.constant 0 : i32
    return %c0_i32 : i32
  }
  func.func @transform_4(%arg0: i32) -> i32 {
    %c0_i32 = arith.constant 0 : i32
    %c0_i32_0 = arith.constant 0 : i32
    return %c0_i32 : i32
  }
  func.func @transform_5(%arg0: i32) -> (i32, i32) {
    %c0_i32 = arith.constant 0 : i32
    %c0_i32_0 = arith.constant 0 : i32
    return %arg0, %c0_i32 : i32, i32
  }
}

</mosaic_0001>

<bundles_post_ra>
// kernel: tpu_custom_call.1
= control target key start
LH: loop header
LB: loop body
LE: loop exit
PB: predicated region body
PF: predicated region fallthrough
CT: control target
= control target key end

     0   :  { %11 = vsyncpa [#allocation4], 0  ;;  %s2021_s0 = inlined_call_operand.hbm [shape: f32[8,128], index: 0, kind: input, shape index: {}]   ;;  %s2022_s1 = inlined_call_operand.vmem [shape: f32[100], index: 1, kind: input, shape index: {}]   ;;  %s2023_s2 = inlined_call_operand.vmem [shape: f32[100], index: 2, kind: input, shape index: {}]   ;;  %s2024_s3 = inlined_call_operand.vmem [shape: f32[100], index: 3, kind: input, shape index: {}]   ;;  %s2025_s4 = inlined_call_operand.<no memory space> [shape: f32[1], index: 4, kind: input, shape index: {}]   ;;  %s2026_s5 = inlined_call_operand.hbm [shape: f32[8,128], index: 5, kind: output, shape index: {}]  }
   0x1   :  { %12 = vsyncpa [#allocation6], 0 }
   0x2   :  { %13 = vsyncpa [#allocation9], 0  ;;  %s41_s20 = sshll.u32 %s2023_s2, 4  ;;  %s42_s20 = int_to_ptr.vmem [resolvable:$true] %s41_s20 }
   0x3   :  { %14 = vsyncpa [#allocation5], 0  ;;  %s1495_s21 = scalar_lea.vmem %s42_s20, 16  ;;  %p1500_p1 = scmp.lt.s32.totalorder %s42_s20, %s42_s20 }
   0x4   :  { %p1496_p0 = scmp.ne.s32.totalorder %s42_s20, %s1495_s21  ;;  %p1501_p2 = scmp.lt.s32.totalorder %s1495_s21, %s1495_s21 }
   0x6   :  { %p1502_p3 = por %p1501_p2, %p1500_p1 }
   0x8   :  { %p1503_p4 = pnand %p1502_p3, %p1496_p0 }
   0xa   :  { %1506 = shalt.err (!%p1503_p4)
}
   0xb   :  { %s1579_s22 = smov [#allocation8]   ;;  %s1580_s23 = smov [#allocation3]  }
   0xc   :  { %44 = dma.vmem_to_smem %s42_s20, 16, %s1579_s22, [#allocation9]  }
   0xd   :  { %s21_s24 = sshll.u32 %s1580_s23, 4  ;;  %s31_s27 = sshll.u32 %s2022_s1, 4  ;;  %s22_s24 = int_to_ptr.vmem [resolvable:$true] %s21_s24  ;;  %s32_s27 = int_to_ptr.vmem [resolvable:$true] %s31_s27 }
   0xe   :  { %s1515_s2 = scalar_lea.vmem %s22_s24, 128  ;;  %p1520_p6 = scmp.lt.s32.totalorder %s22_s24, %s22_s24 }
   0xf   :  { %p1516_p5 = scmp.ne.s32.totalorder %s22_s24, %s1515_s2  ;;  %p1521_p7 = scmp.lt.s32.totalorder %s1515_s2, %s1515_s2 }
  0x11   :  { %p1522_p8 = por %p1521_p7, %p1520_p6 }
  0x13   :  { %p1523_p9 = pnand %p1522_p8, %p1516_p5 }
  0x15   :  { %1526 = shalt.err (!%p1523_p9)
}
  0x16   :  { %24 = dma.hbm_to_vmem [thread:$0]  %s2021_s0, 128, %s22_s24, [#allocation4]  }
  0x17   :  { %s51_s7 = sshll.u32 %s2024_s3, 4  ;;  %s1527_s8 = scalar_lea.vmem %s32_s27, 16  ;;  %s52_s7 = int_to_ptr.vmem [resolvable:$true] %s51_s7 }
  0x18   :  { %p1528_p10 = scmp.ne.s32.totalorder %s32_s27, %s1527_s8  ;;  %p1532_p11 = scmp.lt.s32.totalorder %s32_s27, %s32_s27 }
  0x19   :  { %p1533_p12 = scmp.lt.s32.totalorder %s1527_s8, %s1527_s8 }
  0x1b   :  { %p1534_p13 = por %p1533_p12, %p1532_p11 }
  0x1d   :  { %p1535_p0 = pnand %p1534_p13, %p1528_p10 }
  0x1f   :  { %1538 = shalt.err (!%p1535_p0)
}
  0x20   :  { %s1581_s1 = smov [#allocation7]   ;;  %s1539_s9 = scalar_lea.vmem %s52_s7, 16 }
  0x21   :  { %34 = dma.vmem_to_smem %s32_s27, 16, %s1581_s1, [#allocation6]  }
  0x22   :  { %p1540_p1 = scmp.ne.s32.totalorder %s52_s7, %s1539_s9  ;;  %p1544_p2 = scmp.lt.s32.totalorder %s52_s7, %s52_s7 }
  0x23   :  { %p1545_p3 = scmp.lt.s32.totalorder %s1539_s9, %s1539_s9 }
  0x25   :  { %p1546_p4 = por %p1545_p3, %p1544_p2 }
  0x27   :  { %p1547_p5 = pnand %p1546_p4, %p1540_p1 }
  0x29   :  { %1550 = shalt.err (!%p1547_p5)
}
  0x2a   :  { %s1582_s0 = smov [#allocation10]  }
  0x2b   :  { %54 = dma.vmem_to_smem %s52_s7, 16, %s1582_s0, [#allocation9]  }
  0x2c   :  { %1571 = dma.done.wait [#allocation4], 128  }
  0x2d   :  { %1572 = vsyncadd [#allocation4], 4294967168 }
  0x2e   :  { %1573 = dma.done.wait [#allocation6], 16  }
  0x2f   :  { %1574 = vsyncadd [#allocation6], 4294967280 }
  0x30   :  { %1575 = dma.done.wait [#allocation9], 32  }
  0x31   :  { %1576 = vsyncadd [#allocation9], 4294967264 }
  0x32   :  { %69 = sfence }
  0x33   :  { %s73_s3 = sld [smem:[#allocation7]]  ;;  %v1626_v0 = vld [vmem:[#allocation3] sm:$0xff]  ;;  %v72_v10 = vstv %s2025_s4 }
  0x34   :  { %s76_s10 = sld [smem:[#allocation8]] }
  0x35   :  { %s80_s11 = sld [smem:[#allocation10]] }
  0x36   :  { %s1191_s12 = sld [smem:[#allocation7 + $0x1]] }
  0x37   :  { %s1192_s13 = sld [smem:[#allocation8 + $0x1]] }
  0x38   :  { %s1628_s14 = sld [smem:[#allocation10 + $0x1]] }
  0x39   :  { %v74_v1 = vstv %s73_s3  ;;  %s1194_s15 = sld [smem:[#allocation7 + $0x2]] }
  0x3a   :  { %v75_v2 = vmul.f32 %v74_v1, %v1626_v0  ;;  %v77_v3 = vstv %s76_s10  ;;  %s1195_s16 = sld [smem:[#allocation8 + $0x2]] }
  0x3b   :  { %s1631_s17 = sld [smem:[#allocation10 + $0x2]]  ;;  %v81_v6 = vstv %s80_s11 }
  0x3c   :  { %v78_v4 = vadd.f32 %v77_v3, %v75_v2  ;;  %v85_v5 = vstv %s1191_s12  ;;  %s1197_s18 = sld [smem:[#allocation7 + $0x3]] }
  0x3d   :  { %v86_v7 = vmul.f32 %v85_v5, %v1626_v0  ;;  %v88_v8 = vstv %s1192_s13  ;;  %s1198_s19 = sld [smem:[#allocation8 + $0x3]] }
  0x3e   :  { %v79_v9 = vmax.f32 %v78_v4, 0.0  ;;  %s1634_s20 = sld [smem:[#allocation10 + $0x3]]  ;;  %v92_v14 = vstv %s1628_s14 }
  0x3f   :  { %v89_v11 = vadd.f32 %v88_v8, %v86_v7  ;;  %v96_v12 = vstv %s1194_s15  ;;  %s1200_s23 = sld [smem:[#allocation7 + $0x4]] }
  0x40   :  { %v82_v13 = vmul.f32 %v81_v6, %v79_v9  ;;  %v97_v15 = vmul.f32 %v96_v12, %v1626_v0  ;;  %v99_v16 = vstv %s1195_s16  ;;  %s1201_s24 = sld [smem:[#allocation8 + $0x4]] }
  0x41   :  { %v90_v17 = vmax.f32 %v89_v11, 0.0  ;;  %s1641_s25 = sld [smem:[#allocation10 + $0x4]]  ;;  %v103_v22 = vstv %s1631_s17 }
  0x42   :  { %v83_v18 = vadd.f32 %v82_v13, %v72_v10  ;;  %v100_v19 = vadd.f32 %v99_v16, %v97_v15  ;;  %v107_v20 = vstv %s1197_s18  ;;  %s1203_s26 = sld [smem:[#allocation7 + $0x5]] }
  0x43   :  { %v93_v21 = vmul.f32 %v92_v14, %v90_v17  ;;  %v108_v23 = vmul.f32 %v107_v20, %v1626_v0  ;;  %v110_v24 = vstv %s1198_s19  ;;  %s1204_s4 = sld [smem:[#allocation8 + $0x5]] }
  0x44   :  { %v101_v25 = vmax.f32 %v100_v19, 0.0  ;;  %s1645_s27 = sld [smem:[#allocation10 + $0x5]]  ;;  %v114_v30 = vstv %s1634_s20 }
  0x45   :  { %v94_v26 = vadd.f32 %v93_v21, %v83_v18  ;;  %v111_v27 = vadd.f32 %v110_v24, %v108_v23  ;;  %v118_v28 = vstv %s1200_s23  ;;  %s1206_s2 = sld [smem:[#allocation7 + $0x6]] }
  0x46   :  { %v104_v29 = vmul.f32 %v103_v22, %v101_v25  ;;  %v119_v31 = vmul.f32 %v118_v28, %v1626_v0  ;;  %v121_v32 = vstv %s1201_s24  ;;  %s1207_s28 = sld [smem:[#allocation8 + $0x6]] }
  0x47   :  { %v112_v33 = vmax.f32 %v111_v27, 0.0  ;;  %s1649_s29 = sld [smem:[#allocation10 + $0x6]]  ;;  %v125_v38 = vstv %s1641_s25 }
  0x48   :  { %v105_v34 = vadd.f32 %v104_v29, %v94_v26  ;;  %v122_v35 = vadd.f32 %v121_v32, %v119_v31  ;;  %v129_v36 = vstv %s1203_s26  ;;  %s1209_s30 = sld [smem:[#allocation7 + $0x7]] }
  0x49   :  { %v115_v37 = vmul.f32 %v114_v30, %v112_v33  ;;  %v130_v39 = vmul.f32 %v129_v36, %v1626_v0  ;;  %v132_v40 = vstv %s1204_s4  ;;  %s1210_s6 = sld [smem:[#allocation8 + $0x7]] }
  0x4a   :  { %v123_v41 = vmax.f32 %v122_v35, 0.0  ;;  %s1653_s7 = sld [smem:[#allocation10 + $0x7]]  ;;  %v136_v46 = vstv %s1645_s27 }
  0x4b   :  { %v116_v42 = vadd.f32 %v115_v37, %v105_v34  ;;  %v133_v43 = vadd.f32 %v132_v40, %v130_v39  ;;  %v140_v44 = vstv %s1206_s2  ;;  %s1212_s8 = sld [smem:[#allocation7 + $0x8]] }
  0x4c   :  { %v126_v45 = vmul.f32 %v125_v38, %v123_v41  ;;  %v141_v47 = vmul.f32 %v140_v44, %v1626_v0  ;;  %v143_v48 = vstv %s1207_s28  ;;  %s1213_s1 = sld [smem:[#allocation8 + $0x8]] }
  0x4d   :  { %v134_v49 = vmax.f32 %v133_v43, 0.0  ;;  %s1657_s9 = sld [smem:[#allocation10 + $0x8]]  ;;  %v147_v54 = vstv %s1649_s29 }
  0x4e   :  { %v127_v50 = vadd.f32 %v126_v45, %v116_v42  ;;  %v144_v51 = vadd.f32 %v143_v48, %v141_v47  ;;  %v151_v52 = vstv %s1209_s30  ;;  %s1215_s0 = sld [smem:[#allocation7 + $0x9]] }
  0x4f   :  { %v137_v53 = vmul.f32 %v136_v46, %v134_v49  ;;  %v152_v55 = vmul.f32 %v151_v52, %v1626_v0  ;;  %v154_v56 = vstv %s1210_s6  ;;  %s1216_s3 = sld [smem:[#allocation8 + $0x9]] }
  0x50   :  { %v145_v57 = vmax.f32 %v144_v51, 0.0  ;;  %s1661_s10 = sld [smem:[#allocation10 + $0x9]]  ;;  %v158_v62 = vstv %s1653_s7 }
  0x51   :  { %v138_v58 = vadd.f32 %v137_v53, %v127_v50  ;;  %v155_v59 = vadd.f32 %v154_v56, %v152_v55  ;;  %v162_v60 = vstv %s1212_s8  ;;  %s1218_s11 = sld [smem:[#allocation7 + $0xa]] }
  0x52   :  { %v148_v61 = vmul.f32 %v147_v54, %v145_v57  ;;  %v163_v63 = vmul.f32 %v162_v60, %v1626_v0  ;;  %v165_v1 = vstv %s1213_s1  ;;  %s1219_s12 = sld [smem:[#allocation8 + $0xa]] }
  0x53   :  { %v156_v2 = vmax.f32 %v155_v59, 0.0  ;;  %s1665_s13 = sld [smem:[#allocation10 + $0xa]]  ;;  %v169_v7 = vstv %s1657_s9 }
  0x54   :  { %v149_v3 = vadd.f32 %v148_v61, %v138_v58  ;;  %v166_v4 = vadd.f32 %v165_v1, %v163_v63  ;;  %v173_v5 = vstv %s1215_s0  ;;  %s1221_s14 = sld [smem:[#allocation7 + $0xb]] }
  0x55   :  { %v159_v6 = vmul.f32 %v158_v62, %v156_v2  ;;  %v174_v8 = vmul.f32 %v173_v5, %v1626_v0  ;;  %v176_v9 = vstv %s1216_s3  ;;  %s1222_s15 = sld [smem:[#allocation8 + $0xb]] }
  0x56   :  { %v167_v10 = vmax.f32 %v166_v4, 0.0  ;;  %s1669_s16 = sld [smem:[#allocation10 + $0xb]]  ;;  %v180_v15 = vstv %s1661_s10 }
  0x57   :  { %v160_v11 = vadd.f32 %v159_v6, %v149_v3  ;;  %v177_v12 = vadd.f32 %v176_v9, %v174_v8  ;;  %v184_v13 = vstv %s1218_s11  ;;  %s1224_s17 = sld [smem:[#allocation7 + $0xc]] }
  0x58   :  { %v170_v14 = vmul.f32 %v169_v7, %v167_v10  ;;  %v185_v16 = vmul.f32 %v184_v13, %v1626_v0  ;;  %v187_v17 = vstv %s1219_s12  ;;  %s1225_s18 = sld [smem:[#allocation8 + $0xc]] }
  0x59   :  { %v178_v18 = vmax.f32 %v177_v12, 0.0  ;;  %s1673_s19 = sld [smem:[#allocation10 + $0xc]]  ;;  %v191_v23 = vstv %s1665_s13 }
  0x5a   :  { %v171_v19 = vadd.f32 %v170_v14, %v160_v11  ;;  %v188_v20 = vadd.f32 %v187_v17, %v185_v16  ;;  %v195_v21 = vstv %s1221_s14  ;;  %s1227_s20 = sld [smem:[#allocation7 + $0xd]] }
  0x5b   :  { %v181_v22 = vmul.f32 %v180_v15, %v178_v18  ;;  %v196_v24 = vmul.f32 %v195_v21, %v1626_v0  ;;  %v198_v25 = vstv %s1222_s15  ;;  %s1228_s21 = sld [smem:[#allocation8 + $0xd]] }
  0x5c   :  { %v189_v26 = vmax.f32 %v188_v20, 0.0  ;;  %s1677_s22 = sld [smem:[#allocation10 + $0xd]]  ;;  %v202_v31 = vstv %s1669_s16 }
  0x5d   :  { %v182_v27 = vadd.f32 %v181_v22, %v171_v19  ;;  %v199_v28 = vadd.f32 %v198_v25, %v196_v24  ;;  %v206_v29 = vstv %s1224_s17  ;;  %s1230_s23 = sld [smem:[#allocation7 + $0xe]] }
  0x5e   :  { %v192_v30 = vmul.f32 %v191_v23, %v189_v26  ;;  %v207_v32 = vmul.f32 %v206_v29, %v1626_v0  ;;  %v209_v33 = vstv %s1225_s18  ;;  %s1231_s24 = sld [smem:[#allocation8 + $0xe]] }
  0x5f   :  { %v200_v34 = vmax.f32 %v199_v28, 0.0  ;;  %s1681_s25 = sld [smem:[#allocation10 + $0xe]]  ;;  %v213_v39 = vstv %s1673_s19 }
  0x60   :  { %v193_v35 = vadd.f32 %v192_v30, %v182_v27  ;;  %v210_v36 = vadd.f32 %v209_v33, %v207_v32  ;;  %v217_v37 = vstv %s1227_s20  ;;  %s1233_s26 = sld [smem:[#allocation7 + $0xf]] }
  0x61   :  { %v203_v38 = vmul.f32 %v202_v31, %v200_v34  ;;  %v218_v40 = vmul.f32 %v217_v37, %v1626_v0  ;;  %v220_v41 = vstv %s1228_s21  ;;  %s1234_s4 = sld [smem:[#allocation8 + $0xf]] }
  0x62   :  { %v211_v42 = vmax.f32 %v210_v36, 0.0  ;;  %s1685_s27 = sld [smem:[#allocation10 + $0xf]]  ;;  %v224_v47 = vstv %s1677_s22 }
  0x63   :  { %v204_v43 = vadd.f32 %v203_v38, %v193_v35  ;;  %v221_v44 = vadd.f32 %v220_v41, %v218_v40  ;;  %v228_v45 = vstv %s1230_s23  ;;  %s1236_s2 = sld [smem:[#allocation7 + $0x10]] }
  0x64   :  { %v214_v46 = vmul.f32 %v213_v39, %v211_v42  ;;  %v229_v48 = vmul.f32 %v228_v45, %v1626_v0  ;;  %v231_v49 = vstv %s1231_s24  ;;  %s1237_s28 = sld [smem:[#allocation8 + $0x10]] }
  0x65   :  { %v222_v50 = vmax.f32 %v221_v44, 0.0  ;;  %s1689_s29 = sld [smem:[#allocation10 + $0x10]]  ;;  %v235_v55 = vstv %s1681_s25 }
  0x66   :  { %v215_v51 = vadd.f32 %v214_v46, %v204_v43  ;;  %v232_v52 = vadd.f32 %v231_v49, %v229_v48  ;;  %v239_v53 = vstv %s1233_s26  ;;  %s1239_s30 = sld [smem:[#allocation7 + $0x11]] }
  0x67   :  { %v225_v54 = vmul.f32 %v224_v47, %v222_v50  ;;  %v240_v56 = vmul.f32 %v239_v53, %v1626_v0  ;;  %v242_v57 = vstv %s1234_s4  ;;  %s1240_s6 = sld [smem:[#allocation8 + $0x11]] }
  0x68   :  { %v233_v58 = vmax.f32 %v232_v52, 0.0  ;;  %s1693_s7 = sld [smem:[#allocation10 + $0x11]]  ;;  %v246_v63 = vstv %s1685_s27 }
  0x69   :  { %v226_v59 = vadd.f32 %v225_v54, %v215_v51  ;;  %v243_v60 = vadd.f32 %v242_v57, %v240_v56  ;;  %v250_v61 = vstv %s1236_s2  ;;  %s1242_s8 = sld [smem:[#allocation7 + $0x12]] }
  0x6a   :  { %v236_v62 = vmul.f32 %v235_v55, %v233_v58  ;;  %v251_v1 = vmul.f32 %v250_v61, %v1626_v0  ;;  %v253_v2 = vstv %s1237_s28  ;;  %s1243_s1 = sld [smem:[#allocation8 + $0x12]] }
  0x6b   :  { %v244_v3 = vmax.f32 %v243_v60, 0.0  ;;  %s1697_s9 = sld [smem:[#allocation10 + $0x12]]  ;;  %v257_v8 = vstv %s1689_s29 }
  0x6c   :  { %v237_v4 = vadd.f32 %v236_v62, %v226_v59  ;;  %v254_v5 = vadd.f32 %v253_v2, %v251_v1  ;;  %v261_v6 = vstv %s1239_s30  ;;  %s1245_s0 = sld [smem:[#allocation7 + $0x13]] }
  0x6d   :  { %v247_v7 = vmul.f32 %v246_v63, %v244_v3  ;;  %v262_v9 = vmul.f32 %v261_v6, %v1626_v0  ;;  %v264_v10 = vstv %s1240_s6  ;;  %s1246_s3 = sld [smem:[#allocation8 + $0x13]] }
  0x6e   :  { %v255_v11 = vmax.f32 %v254_v5, 0.0  ;;  %s1701_s10 = sld [smem:[#allocation10 + $0x13]]  ;;  %v268_v16 = vstv %s1693_s7 }
  0x6f   :  { %v248_v12 = vadd.f32 %v247_v7, %v237_v4  ;;  %v265_v13 = vadd.f32 %v264_v10, %v262_v9  ;;  %v272_v14 = vstv %s1242_s8  ;;  %s1248_s11 = sld [smem:[#allocation7 + $0x14]] }
  0x70   :  { %v258_v15 = vmul.f32 %v257_v8, %v255_v11  ;;  %v273_v17 = vmul.f32 %v272_v14, %v1626_v0  ;;  %v275_v18 = vstv %s1243_s1  ;;  %s1249_s12 = sld [smem:[#allocation8 + $0x14]] }
  0x71   :  { %v266_v19 = vmax.f32 %v265_v13, 0.0  ;;  %s1705_s13 = sld [smem:[#allocation10 + $0x14]]  ;;  %v279_v24 = vstv %s1697_s9 }
  0x72   :  { %v259_v20 = vadd.f32 %v258_v15, %v248_v12  ;;  %v276_v21 = vadd.f32 %v275_v18, %v273_v17  ;;  %v283_v22 = vstv %s1245_s0  ;;  %s1251_s14 = sld [smem:[#allocation7 + $0x15]] }
  0x73   :  { %v269_v23 = vmul.f32 %v268_v16, %v266_v19  ;;  %v284_v25 = vmul.f32 %v283_v22, %v1626_v0  ;;  %v286_v26 = vstv %s1246_s3  ;;  %s1252_s15 = sld [smem:[#allocation8 + $0x15]] }
  0x74   :  { %v277_v27 = vmax.f32 %v276_v21, 0.0  ;;  %s1709_s16 = sld [smem:[#allocation10 + $0x15]]  ;;  %v290_v32 = vstv %s1701_s10 }
  0x75   :  { %v270_v28 = vadd.f32 %v269_v23, %v259_v20  ;;  %v287_v29 = vadd.f32 %v286_v26, %v284_v25  ;;  %v294_v30 = vstv %s1248_s11  ;;  %s1254_s17 = sld [smem:[#allocation7 + $0x16]] }
  0x76   :  { %v280_v31 = vmul.f32 %v279_v24, %v277_v27  ;;  %v295_v33 = vmul.f32 %v294_v30, %v1626_v0  ;;  %v297_v34 = vstv %s1249_s12  ;;  %s1255_s18 = sld [smem:[#allocation8 + $0x16]] }
  0x77   :  { %v288_v35 = vmax.f32 %v287_v29, 0.0  ;;  %s1713_s19 = sld [smem:[#allocation10 + $0x16]]  ;;  %v301_v40 = vstv %s1705_s13 }
  0x78   :  { %v281_v36 = vadd.f32 %v280_v31, %v270_v28  ;;  %v298_v37 = vadd.f32 %v297_v34, %v295_v33  ;;  %v305_v38 = vstv %s1251_s14  ;;  %s1257_s20 = sld [smem:[#allocation7 + $0x17]] }
  0x79   :  { %v291_v39 = vmul.f32 %v290_v32, %v288_v35  ;;  %v306_v41 = vmul.f32 %v305_v38, %v1626_v0  ;;  %v308_v42 = vstv %s1252_s15  ;;  %s1258_s21 = sld [smem:[#allocation8 + $0x17]] }
  0x7a   :  { %v299_v43 = vmax.f32 %v298_v37, 0.0  ;;  %s1717_s22 = sld [smem:[#allocation10 + $0x17]]  ;;  %v312_v48 = vstv %s1709_s16 }
  0x7b   :  { %v292_v44 = vadd.f32 %v291_v39, %v281_v36  ;;  %v309_v45 = vadd.f32 %v308_v42, %v306_v41  ;;  %v316_v46 = vstv %s1254_s17  ;;  %s1260_s23 = sld [smem:[#allocation7 + $0x18]] }
  0x7c   :  { %v302_v47 = vmul.f32 %v301_v40, %v299_v43  ;;  %v317_v49 = vmul.f32 %v316_v46, %v1626_v0  ;;  %v319_v50 = vstv %s1255_s18  ;;  %s1261_s24 = sld [smem:[#allocation8 + $0x18]] }
  0x7d   :  { %v310_v51 = vmax.f32 %v309_v45, 0.0  ;;  %s1721_s25 = sld [smem:[#allocation10 + $0x18]]  ;;  %v323_v56 = vstv %s1713_s19 }
  0x7e   :  { %v303_v52 = vadd.f32 %v302_v47, %v292_v44  ;;  %v320_v53 = vadd.f32 %v319_v50, %v317_v49  ;;  %v327_v54 = vstv %s1257_s20  ;;  %s1263_s26 = sld [smem:[#allocation7 + $0x19]] }
  0x7f   :  { %v313_v55 = vmul.f32 %v312_v48, %v310_v51  ;;  %v328_v57 = vmul.f32 %v327_v54, %v1626_v0  ;;  %v330_v58 = vstv %s1258_s21  ;;  %s1264_s4 = sld [smem:[#allocation8 + $0x19]] }
  0x80   :  { %v321_v59 = vmax.f32 %v320_v53, 0.0  ;;  %s1725_s27 = sld [smem:[#allocation10 + $0x19]]  ;;  %v334_v1 = vstv %s1717_s22 }
  0x81   :  { %v314_v60 = vadd.f32 %v313_v55, %v303_v52  ;;  %v331_v61 = vadd.f32 %v330_v58, %v328_v57  ;;  %v338_v62 = vstv %s1260_s23  ;;  %s1266_s2 = sld [smem:[#allocation7 + $0x1a]] }
  0x82   :  { %v324_v63 = vmul.f32 %v323_v56, %v321_v59  ;;  %v339_v2 = vmul.f32 %v338_v62, %v1626_v0  ;;  %v341_v3 = vstv %s1261_s24  ;;  %s1267_s28 = sld [smem:[#allocation8 + $0x1a]] }
  0x83   :  { %v332_v4 = vmax.f32 %v331_v61, 0.0  ;;  %s1729_s29 = sld [smem:[#allocation10 + $0x1a]]  ;;  %v345_v9 = vstv %s1721_s25 }
  0x84   :  { %v325_v5 = vadd.f32 %v324_v63, %v314_v60  ;;  %v342_v6 = vadd.f32 %v341_v3, %v339_v2  ;;  %v349_v7 = vstv %s1263_s26  ;;  %s1269_s30 = sld [smem:[#allocation7 + $0x1b]] }
  0x85   :  { %v335_v8 = vmul.f32 %v334_v1, %v332_v4  ;;  %v350_v10 = vmul.f32 %v349_v7, %v1626_v0  ;;  %v352_v11 = vstv %s1264_s4  ;;  %s1270_s6 = sld [smem:[#allocation8 + $0x1b]] }
  0x86   :  { %v343_v12 = vmax.f32 %v342_v6, 0.0  ;;  %s1733_s7 = sld [smem:[#allocation10 + $0x1b]]  ;;  %v356_v17 = vstv %s1725_s27 }
  0x87   :  { %v336_v13 = vadd.f32 %v335_v8, %v325_v5  ;;  %v353_v14 = vadd.f32 %v352_v11, %v350_v10  ;;  %v360_v15 = vstv %s1266_s2  ;;  %s1272_s8 = sld [smem:[#allocation7 + $0x1c]] }
  0x88   :  { %v346_v16 = vmul.f32 %v345_v9, %v343_v12  ;;  %v361_v18 = vmul.f32 %v360_v15, %v1626_v0  ;;  %v363_v19 = vstv %s1267_s28  ;;  %s1273_s1 = sld [smem:[#allocation8 + $0x1c]] }
  0x89   :  { %v354_v20 = vmax.f32 %v353_v14, 0.0  ;;  %s1737_s9 = sld [smem:[#allocation10 + $0x1c]]  ;;  %v367_v25 = vstv %s1729_s29 }
  0x8a   :  { %v347_v21 = vadd.f32 %v346_v16, %v336_v13  ;;  %v364_v22 = vadd.f32 %v363_v19, %v361_v18  ;;  %v371_v23 = vstv %s1269_s30  ;;  %s1275_s0 = sld [smem:[#allocation7 + $0x1d]] }
  0x8b   :  { %v357_v24 = vmul.f32 %v356_v17, %v354_v20  ;;  %v372_v26 = vmul.f32 %v371_v23, %v1626_v0  ;;  %v374_v27 = vstv %s1270_s6  ;;  %s1276_s3 = sld [smem:[#allocation8 + $0x1d]] }
  0x8c   :  { %v365_v28 = vmax.f32 %v364_v22, 0.0  ;;  %s1741_s10 = sld [smem:[#allocation10 + $0x1d]]  ;;  %v378_v33 = vstv %s1733_s7 }
  0x8d   :  { %v358_v29 = vadd.f32 %v357_v24, %v347_v21  ;;  %v375_v30 = vadd.f32 %v374_v27, %v372_v26  ;;  %v382_v31 = vstv %s1272_s8  ;;  %s1278_s11 = sld [smem:[#allocation7 + $0x1e]] }
  0x8e   :  { %v368_v32 = vmul.f32 %v367_v25, %v365_v28  ;;  %v383_v34 = vmul.f32 %v382_v31, %v1626_v0  ;;  %v385_v35 = vstv %s1273_s1  ;;  %s1279_s12 = sld [smem:[#allocation8 + $0x1e]] }
  0x8f   :  { %v376_v36 = vmax.f32 %v375_v30, 0.0  ;;  %s1745_s13 = sld [smem:[#allocation10 + $0x1e]]  ;;  %v389_v41 = vstv %s1737_s9 }
  0x90   :  { %v369_v37 = vadd.f32 %v368_v32, %v358_v29  ;;  %v386_v38 = vadd.f32 %v385_v35, %v383_v34  ;;  %v393_v39 = vstv %s1275_s0  ;;  %s1281_s14 = sld [smem:[#allocation7 + $0x1f]] }
  0x91   :  { %v379_v40 = vmul.f32 %v378_v33, %v376_v36  ;;  %v394_v42 = vmul.f32 %v393_v39, %v1626_v0  ;;  %v396_v43 = vstv %s1276_s3  ;;  %s1282_s15 = sld [smem:[#allocation8 + $0x1f]] }
  0x92   :  { %v387_v44 = vmax.f32 %v386_v38, 0.0  ;;  %s1749_s16 = sld [smem:[#allocation10 + $0x1f]]  ;;  %v400_v49 = vstv %s1741_s10 }
  0x93   :  { %v380_v45 = vadd.f32 %v379_v40, %v369_v37  ;;  %v397_v46 = vadd.f32 %v396_v43, %v394_v42  ;;  %v404_v47 = vstv %s1278_s11  ;;  %s1284_s17 = sld [smem:[#allocation7 + $0x20]] }
  0x94   :  { %v390_v48 = vmul.f32 %v389_v41, %v387_v44  ;;  %v405_v50 = vmul.f32 %v404_v47, %v1626_v0  ;;  %v407_v51 = vstv %s1279_s12  ;;  %s1285_s18 = sld [smem:[#allocation8 + $0x20]] }
  0x95   :  { %v398_v52 = vmax.f32 %v397_v46, 0.0  ;;  %s1753_s19 = sld [smem:[#allocation10 + $0x20]]  ;;  %v411_v57 = vstv %s1745_s13 }
  0x96   :  { %v391_v53 = vadd.f32 %v390_v48, %v380_v45  ;;  %v408_v54 = vadd.f32 %v407_v51, %v405_v50  ;;  %v415_v55 = vstv %s1281_s14  ;;  %s1287_s20 = sld [smem:[#allocation7 + $0x21]] }
  0x97   :  { %v401_v56 = vmul.f32 %v400_v49, %v398_v52  ;;  %v416_v58 = vmul.f32 %v415_v55, %v1626_v0  ;;  %v418_v59 = vstv %s1282_s15  ;;  %s1288_s21 = sld [smem:[#allocation8 + $0x21]] }
  0x98   :  { %v409_v60 = vmax.f32 %v408_v54, 0.0  ;;  %s1757_s22 = sld [smem:[#allocation10 + $0x21]]  ;;  %v422_v2 = vstv %s1749_s16 }
  0x99   :  { %v402_v61 = vadd.f32 %v401_v56, %v391_v53  ;;  %v419_v62 = vadd.f32 %v418_v59, %v416_v58  ;;  %v426_v63 = vstv %s1284_s17  ;;  %s1290_s23 = sld [smem:[#allocation7 + $0x22]] }
  0x9a   :  { %v412_v1 = vmul.f32 %v411_v57, %v409_v60  ;;  %v427_v3 = vmul.f32 %v426_v63, %v1626_v0  ;;  %v429_v4 = vstv %s1285_s18  ;;  %s1291_s24 = sld [smem:[#allocation8 + $0x22]] }
  0x9b   :  { %v420_v5 = vmax.f32 %v419_v62, 0.0  ;;  %s1761_s25 = sld [smem:[#allocation10 + $0x22]]  ;;  %v433_v10 = vstv %s1753_s19 }
  0x9c   :  { %v413_v6 = vadd.f32 %v412_v1, %v402_v61  ;;  %v430_v7 = vadd.f32 %v429_v4, %v427_v3  ;;  %v437_v8 = vstv %s1287_s20  ;;  %s1293_s26 = sld [smem:[#allocation7 + $0x23]] }
  0x9d   :  { %v423_v9 = vmul.f32 %v422_v2, %v420_v5  ;;  %v438_v11 = vmul.f32 %v437_v8, %v1626_v0  ;;  %v440_v12 = vstv %s1288_s21  ;;  %s1294_s4 = sld [smem:[#allocation8 + $0x23]] }
  0x9e   :  { %v431_v13 = vmax.f32 %v430_v7, 0.0  ;;  %s1765_s27 = sld [smem:[#allocation10 + $0x23]]  ;;  %v444_v18 = vstv %s1757_s22 }
  0x9f   :  { %v424_v14 = vadd.f32 %v423_v9, %v413_v6  ;;  %v441_v15 = vadd.f32 %v440_v12, %v438_v11  ;;  %v448_v16 = vstv %s1290_s23  ;;  %s1296_s2 = sld [smem:[#allocation7 + $0x24]] }
  0xa0   :  { %v434_v17 = vmul.f32 %v433_v10, %v431_v13  ;;  %v449_v19 = vmul.f32 %v448_v16, %v1626_v0  ;;  %v451_v20 = vstv %s1291_s24  ;;  %s1297_s28 = sld [smem:[#allocation8 + $0x24]] }
  0xa1   :  { %v442_v21 = vmax.f32 %v441_v15, 0.0  ;;  %s1769_s29 = sld [smem:[#allocation10 + $0x24]]  ;;  %v455_v26 = vstv %s1761_s25 }
  0xa2   :  { %v435_v22 = vadd.f32 %v434_v17, %v424_v14  ;;  %v452_v23 = vadd.f32 %v451_v20, %v449_v19  ;;  %v459_v24 = vstv %s1293_s26  ;;  %s1299_s30 = sld [smem:[#allocation7 + $0x25]] }
  0xa3   :  { %v445_v25 = vmul.f32 %v444_v18, %v442_v21  ;;  %v460_v27 = vmul.f32 %v459_v24, %v1626_v0  ;;  %v462_v28 = vstv %s1294_s4  ;;  %s1300_s6 = sld [smem:[#allocation8 + $0x25]] }
  0xa4   :  { %v453_v29 = vmax.f32 %v452_v23, 0.0  ;;  %s1773_s7 = sld [smem:[#allocation10 + $0x25]]  ;;  %v466_v34 = vstv %s1765_s27 }
  0xa5   :  { %v446_v30 = vadd.f32 %v445_v25, %v435_v22  ;;  %v463_v31 = vadd.f32 %v462_v28, %v460_v27  ;;  %v470_v32 = vstv %s1296_s2  ;;  %s1302_s8 = sld [smem:[#allocation7 + $0x26]] }
  0xa6   :  { %v456_v33 = vmul.f32 %v455_v26, %v453_v29  ;;  %v471_v35 = vmul.f32 %v470_v32, %v1626_v0  ;;  %v473_v36 = vstv %s1297_s28  ;;  %s1303_s1 = sld [smem:[#allocation8 + $0x26]] }
  0xa7   :  { %v464_v37 = vmax.f32 %v463_v31, 0.0  ;;  %s1777_s9 = sld [smem:[#allocation10 + $0x26]]  ;;  %v477_v42 = vstv %s1769_s29 }
  0xa8   :  { %v457_v38 = vadd.f32 %v456_v33, %v446_v30  ;;  %v474_v39 = vadd.f32 %v473_v36, %v471_v35  ;;  %v481_v40 = vstv %s1299_s30  ;;  %s1305_s0 = sld [smem:[#allocation7 + $0x27]] }
  0xa9   :  { %v467_v41 = vmul.f32 %v466_v34, %v464_v37  ;;  %v482_v43 = vmul.f32 %v481_v40, %v1626_v0  ;;  %v484_v44 = vstv %s1300_s6  ;;  %s1306_s3 = sld [smem:[#allocation8 + $0x27]] }
  0xaa   :  { %v475_v45 = vmax.f32 %v474_v39, 0.0  ;;  %s1781_s10 = sld [smem:[#allocation10 + $0x27]]  ;;  %v488_v50 = vstv %s1773_s7 }
  0xab   :  { %v468_v46 = vadd.f32 %v467_v41, %v457_v38  ;;  %v485_v47 = vadd.f32 %v484_v44, %v482_v43  ;;  %v492_v48 = vstv %s1302_s8  ;;  %s1308_s11 = sld [smem:[#allocation7 + $0x28]] }
  0xac   :  { %v478_v49 = vmul.f32 %v477_v42, %v475_v45  ;;  %v493_v51 = vmul.f32 %v492_v48, %v1626_v0  ;;  %v495_v52 = vstv %s1303_s1  ;;  %s1309_s12 = sld [smem:[#allocation8 + $0x28]] }
  0xad   :  { %v486_v53 = vmax.f32 %v485_v47, 0.0  ;;  %s1785_s13 = sld [smem:[#allocation10 + $0x28]]  ;;  %v499_v58 = vstv %s1777_s9 }
  0xae   :  { %v479_v54 = vadd.f32 %v478_v49, %v468_v46  ;;  %v496_v55 = vadd.f32 %v495_v52, %v493_v51  ;;  %v503_v56 = vstv %s1305_s0  ;;  %s1311_s14 = sld [smem:[#allocation7 + $0x29]] }
  0xaf   :  { %v489_v57 = vmul.f32 %v488_v50, %v486_v53  ;;  %v504_v59 = vmul.f32 %v503_v56, %v1626_v0  ;;  %v506_v60 = vstv %s1306_s3  ;;  %s1312_s15 = sld [smem:[#allocation8 + $0x29]] }
  0xb0   :  { %v497_v61 = vmax.f32 %v496_v55, 0.0  ;;  %s1789_s16 = sld [smem:[#allocation10 + $0x29]]  ;;  %v510_v3 = vstv %s1781_s10 }
  0xb1   :  { %v490_v62 = vadd.f32 %v489_v57, %v479_v54  ;;  %v507_v63 = vadd.f32 %v506_v60, %v504_v59  ;;  %v514_v1 = vstv %s1308_s11  ;;  %s1314_s17 = sld [smem:[#allocation7 + $0x2a]]  ;;  %v1820_v60 = vld [vmem:[#allocation3] sm:$0xff] }
  0xb2   :  { %v500_v2 = vmul.f32 %v499_v58, %v497_v61  ;;  %v515_v4 = vmul.f32 %v514_v1, %v1626_v0  ;;  %v517_v5 = vstv %s1309_s12  ;;  %s1315_s18 = sld [smem:[#allocation8 + $0x2a]] }
  0xb3   :  { %v508_v6 = vmax.f32 %v507_v63, 0.0  ;;  %s1793_s19 = sld [smem:[#allocation10 + $0x2a]]  ;;  %v521_v11 = vstv %s1785_s13 }
  0xb4   :  { %v501_v7 = vadd.f32 %v500_v2, %v490_v62  ;;  %v518_v8 = vadd.f32 %v517_v5, %v515_v4  ;;  %v525_v9 = vstv %s1311_s14  ;;  %s1317_s20 = sld [smem:[#allocation7 + $0x2b]] }
  0xb5   :  { %v511_v10 = vmul.f32 %v510_v3, %v508_v6  ;;  %v526_v12 = vmul.f32 %v525_v9, %v1626_v0  ;;  %v528_v13 = vstv %s1312_s15  ;;  %s1318_s21 = sld [smem:[#allocation8 + $0x2b]] }
  0xb6   :  { %v519_v14 = vmax.f32 %v518_v8, 0.0  ;;  %s1797_s22 = sld [smem:[#allocation10 + $0x2b]]  ;;  %v532_v19 = vstv %s1789_s16 }
  0xb7   :  { %v512_v15 = vadd.f32 %v511_v10, %v501_v7  ;;  %v529_v16 = vadd.f32 %v528_v13, %v526_v12  ;;  %v536_v17 = vstv %s1314_s17  ;;  %s1320_s23 = sld [smem:[#allocation7 + $0x2c]] }
  0xb8   :  { %v522_v18 = vmul.f32 %v521_v11, %v519_v14  ;;  %v537_v20 = vmul.f32 %v536_v17, %v1626_v0  ;;  %v539_v21 = vstv %s1315_s18  ;;  %s1321_s24 = sld [smem:[#allocation8 + $0x2c]] }
  0xb9   :  { %v530_v22 = vmax.f32 %v529_v16, 0.0  ;;  %s1801_s25 = sld [smem:[#allocation10 + $0x2c]]  ;;  %v543_v27 = vstv %s1793_s19 }
  0xba   :  { %v523_v23 = vadd.f32 %v522_v18, %v512_v15  ;;  %v540_v24 = vadd.f32 %v539_v21, %v537_v20  ;;  %v547_v25 = vstv %s1317_s20  ;;  %s1323_s26 = sld [smem:[#allocation7 + $0x2d]] }
  0xbb   :  { %v533_v26 = vmul.f32 %v532_v19, %v530_v22  ;;  %v548_v28 = vmul.f32 %v547_v25, %v1626_v0  ;;  %v550_v29 = vstv %s1318_s21  ;;  %s1324_s4 = sld [smem:[#allocation8 + $0x2d]] }
  0xbc   :  { %v541_v30 = vmax.f32 %v540_v24, 0.0  ;;  %s1805_s27 = sld [smem:[#allocation10 + $0x2d]]  ;;  %v554_v35 = vstv %s1797_s22 }
  0xbd   :  { %v534_v31 = vadd.f32 %v533_v26, %v523_v23  ;;  %v551_v32 = vadd.f32 %v550_v29, %v548_v28  ;;  %v558_v33 = vstv %s1320_s23  ;;  %s1326_s2 = sld [smem:[#allocation7 + $0x2e]] }
  0xbe   :  { %v544_v34 = vmul.f32 %v543_v27, %v541_v30  ;;  %v559_v36 = vmul.f32 %v558_v33, %v1626_v0  ;;  %v561_v37 = vstv %s1321_s24  ;;  %s1327_s28 = sld [smem:[#allocation8 + $0x2e]] }
  0xbf   :  { %v552_v38 = vmax.f32 %v551_v32, 0.0  ;;  %s1809_s29 = sld [smem:[#allocation10 + $0x2e]]  ;;  %v565_v43 = vstv %s1801_s25 }
  0xc0   :  { %v545_v39 = vadd.f32 %v544_v34, %v534_v31  ;;  %v562_v40 = vadd.f32 %v561_v37, %v559_v36  ;;  %v569_v41 = vstv %s1323_s26  ;;  %s1329_s30 = sld [smem:[#allocation7 + $0x2f]] }
  0xc1   :  { %v555_v42 = vmul.f32 %v554_v35, %v552_v38  ;;  %v570_v44 = vmul.f32 %v569_v41, %v1626_v0  ;;  %v572_v45 = vstv %s1324_s4  ;;  %s1330_s6 = sld [smem:[#allocation8 + $0x2f]] }
  0xc2   :  { %v563_v46 = vmax.f32 %v562_v40, 0.0  ;;  %s1813_s7 = sld [smem:[#allocation10 + $0x2f]]  ;;  %v576_v51 = vstv %s1805_s27 }
  0xc3   :  { %v556_v47 = vadd.f32 %v555_v42, %v545_v39  ;;  %v573_v48 = vadd.f32 %v572_v45, %v570_v44  ;;  %v580_v49 = vstv %s1326_s2  ;;  %s1332_s8 = sld [smem:[#allocation7 + $0x30]] }
  0xc4   :  { %v566_v50 = vmul.f32 %v565_v43, %v563_v46  ;;  %v581_v52 = vmul.f32 %v580_v49, %v1626_v0  ;;  %v583_v53 = vstv %s1327_s28  ;;  %s1333_s1 = sld [smem:[#allocation8 + $0x30]] }
  0xc5   :  { %v574_v54 = vmax.f32 %v573_v48, 0.0  ;;  %s1817_s9 = sld [smem:[#allocation10 + $0x30]]  ;;  %v587_v59 = vstv %s1809_s29 }
  0xc6   :  { %v567_v55 = vadd.f32 %v566_v50, %v556_v47  ;;  %v584_v56 = vadd.f32 %v583_v53, %v581_v52  ;;  %v591_v57 = vstv %s1329_s30  ;;  %s1335_s0 = sld [smem:[#allocation7 + $0x31]] }
  0xc7   :  { %v577_v58 = vmul.f32 %v576_v51, %v574_v54  ;;  %v592_v61 = vmul.f32 %v1820_v60, %v591_v57  ;;  %v594_v62 = vstv %s1330_s6  ;;  %s1336_s3 = sld [smem:[#allocation8 + $0x31]] }
  0xc8   :  { %v585_v63 = vmax.f32 %v584_v56, 0.0  ;;  %s1823_s10 = sld [smem:[#allocation10 + $0x31]]  ;;  %v598_v4 = vstv %s1813_s7 }
  0xc9   :  { %v578_v0 = vadd.f32 %v577_v58, %v567_v55  ;;  %v595_v1 = vadd.f32 %v594_v62, %v592_v61  ;;  %v602_v2 = vstv %s1332_s8  ;;  %s1338_s11 = sld [smem:[#allocation7 + $0x32]] }
  0xca   :  { %v588_v3 = vmul.f32 %v587_v59, %v585_v63  ;;  %v603_v5 = vmul.f32 %v1820_v60, %v602_v2  ;;  %v605_v6 = vstv %s1333_s1  ;;  %s1339_s12 = sld [smem:[#allocation8 + $0x32]] }
  0xcb   :  { %v596_v7 = vmax.f32 %v595_v1, 0.0  ;;  %s1827_s13 = sld [smem:[#allocation10 + $0x32]]  ;;  %v609_v12 = vstv %s1817_s9 }
  0xcc   :  { %v589_v8 = vadd.f32 %v588_v3, %v578_v0  ;;  %v606_v9 = vadd.f32 %v605_v6, %v603_v5  ;;  %v613_v10 = vstv %s1335_s0  ;;  %s1341_s14 = sld [smem:[#allocation7 + $0x33]] }
  0xcd   :  { %v599_v11 = vmul.f32 %v598_v4, %v596_v7  ;;  %v614_v13 = vmul.f32 %v1820_v60, %v613_v10  ;;  %v616_v14 = vstv %s1336_s3  ;;  %s1342_s15 = sld [smem:[#allocation8 + $0x33]] }
  0xce   :  { %v607_v15 = vmax.f32 %v606_v9, 0.0  ;;  %s1831_s16 = sld [smem:[#allocation10 + $0x33]]  ;;  %v620_v20 = vstv %s1823_s10 }
  0xcf   :  { %v600_v16 = vadd.f32 %v599_v11, %v589_v8  ;;  %v617_v17 = vadd.f32 %v616_v14, %v614_v13  ;;  %v624_v18 = vstv %s1338_s11  ;;  %s1344_s17 = sld [smem:[#allocation7 + $0x34]] }
  0xd0   :  { %v610_v19 = vmul.f32 %v609_v12, %v607_v15  ;;  %v625_v21 = vmul.f32 %v1820_v60, %v624_v18  ;;  %v627_v22 = vstv %s1339_s12  ;;  %s1345_s18 = sld [smem:[#allocation8 + $0x34]] }
  0xd1   :  { %v618_v23 = vmax.f32 %v617_v17, 0.0  ;;  %s1835_s19 = sld [smem:[#allocation10 + $0x34]]  ;;  %v631_v28 = vstv %s1827_s13 }
  0xd2   :  { %v611_v24 = vadd.f32 %v610_v19, %v600_v16  ;;  %v628_v25 = vadd.f32 %v627_v22, %v625_v21  ;;  %v635_v26 = vstv %s1341_s14  ;;  %s1347_s20 = sld [smem:[#allocation7 + $0x35]] }
  0xd3   :  { %v621_v27 = vmul.f32 %v620_v20, %v618_v23  ;;  %v636_v29 = vmul.f32 %v1820_v60, %v635_v26  ;;  %v638_v30 = vstv %s1342_s15  ;;  %s1348_s21 = sld [smem:[#allocation8 + $0x35]] }
  0xd4   :  { %v629_v31 = vmax.f32 %v628_v25, 0.0  ;;  %s1839_s22 = sld [smem:[#allocation10 + $0x35]]  ;;  %v642_v36 = vstv %s1831_s16 }
  0xd5   :  { %v622_v32 = vadd.f32 %v621_v27, %v611_v24  ;;  %v639_v33 = vadd.f32 %v638_v30, %v636_v29  ;;  %v646_v34 = vstv %s1344_s17  ;;  %s1350_s23 = sld [smem:[#allocation7 + $0x36]] }
  0xd6   :  { %v632_v35 = vmul.f32 %v631_v28, %v629_v31  ;;  %v647_v37 = vmul.f32 %v1820_v60, %v646_v34  ;;  %v649_v38 = vstv %s1345_s18  ;;  %s1351_s24 = sld [smem:[#allocation8 + $0x36]] }
  0xd7   :  { %v640_v39 = vmax.f32 %v639_v33, 0.0  ;;  %s1843_s25 = sld [smem:[#allocation10 + $0x36]]  ;;  %v653_v44 = vstv %s1835_s19 }
  0xd8   :  { %v633_v40 = vadd.f32 %v632_v35, %v622_v32  ;;  %v650_v41 = vadd.f32 %v649_v38, %v647_v37  ;;  %v657_v42 = vstv %s1347_s20  ;;  %s1353_s26 = sld [smem:[#allocation7 + $0x37]] }
  0xd9   :  { %v643_v43 = vmul.f32 %v642_v36, %v640_v39  ;;  %v658_v45 = vmul.f32 %v1820_v60, %v657_v42  ;;  %v660_v46 = vstv %s1348_s21  ;;  %s1354_s4 = sld [smem:[#allocation8 + $0x37]] }
  0xda   :  { %v651_v47 = vmax.f32 %v650_v41, 0.0  ;;  %s1847_s27 = sld [smem:[#allocation10 + $0x37]]  ;;  %v664_v52 = vstv %s1839_s22 }
  0xdb   :  { %v644_v48 = vadd.f32 %v643_v43, %v633_v40  ;;  %v661_v49 = vadd.f32 %v660_v46, %v658_v45  ;;  %v668_v50 = vstv %s1350_s23  ;;  %s1356_s2 = sld [smem:[#allocation7 + $0x38]] }
  0xdc   :  { %v654_v51 = vmul.f32 %v653_v44, %v651_v47  ;;  %v669_v53 = vmul.f32 %v1820_v60, %v668_v50  ;;  %v671_v54 = vstv %s1351_s24  ;;  %s1357_s28 = sld [smem:[#allocation8 + $0x38]] }
  0xdd   :  { %v662_v55 = vmax.f32 %v661_v49, 0.0  ;;  %s1851_s29 = sld [smem:[#allocation10 + $0x38]]  ;;  %v675_v61 = vstv %s1843_s25 }
  0xde   :  { %v655_v56 = vadd.f32 %v654_v51, %v644_v48  ;;  %v672_v57 = vadd.f32 %v671_v54, %v669_v53  ;;  %v679_v58 = vstv %s1353_s26  ;;  %s1359_s30 = sld [smem:[#allocation7 + $0x39]] }
  0xdf   :  { %v665_v59 = vmul.f32 %v664_v52, %v662_v55  ;;  %v680_v62 = vmul.f32 %v1820_v60, %v679_v58  ;;  %v682_v63 = vstv %s1354_s4  ;;  %s1360_s6 = sld [smem:[#allocation8 + $0x39]] }
  0xe0   :  { %v673_v0 = vmax.f32 %v672_v57, 0.0  ;;  %s1855_s7 = sld [smem:[#allocation10 + $0x39]]  ;;  %v686_v5 = vstv %s1847_s27 }
  0xe1   :  { %v666_v1 = vadd.f32 %v665_v59, %v655_v56  ;;  %v683_v2 = vadd.f32 %v682_v63, %v680_v62  ;;  %v690_v3 = vstv %s1356_s2  ;;  %s1362_s8 = sld [smem:[#allocation7 + $0x3a]] }
  0xe2   :  { %v676_v4 = vmul.f32 %v675_v61, %v673_v0  ;;  %v691_v6 = vmul.f32 %v1820_v60, %v690_v3  ;;  %v693_v7 = vstv %s1357_s28  ;;  %s1363_s1 = sld [smem:[#allocation8 + $0x3a]] }
  0xe3   :  { %v684_v8 = vmax.f32 %v683_v2, 0.0  ;;  %s1859_s9 = sld [smem:[#allocation10 + $0x3a]]  ;;  %v697_v13 = vstv %s1851_s29 }
  0xe4   :  { %v677_v9 = vadd.f32 %v676_v4, %v666_v1  ;;  %v694_v10 = vadd.f32 %v693_v7, %v691_v6  ;;  %v701_v11 = vstv %s1359_s30  ;;  %s1365_s0 = sld [smem:[#allocation7 + $0x3b]] }
  0xe5   :  { %v687_v12 = vmul.f32 %v686_v5, %v684_v8  ;;  %v702_v14 = vmul.f32 %v1820_v60, %v701_v11  ;;  %v704_v15 = vstv %s1360_s6  ;;  %s1366_s3 = sld [smem:[#allocation8 + $0x3b]] }
  0xe6   :  { %v695_v16 = vmax.f32 %v694_v10, 0.0  ;;  %s1863_s10 = sld [smem:[#allocation10 + $0x3b]]  ;;  %v708_v21 = vstv %s1855_s7 }
  0xe7   :  { %v688_v17 = vadd.f32 %v687_v12, %v677_v9  ;;  %v705_v18 = vadd.f32 %v704_v15, %v702_v14  ;;  %v712_v19 = vstv %s1362_s8  ;;  %s1368_s11 = sld [smem:[#allocation7 + $0x3c]] }
  0xe8   :  { %v698_v20 = vmul.f32 %v697_v13, %v695_v16  ;;  %v713_v22 = vmul.f32 %v1820_v60, %v712_v19  ;;  %v715_v23 = vstv %s1363_s1  ;;  %s1369_s12 = sld [smem:[#allocation8 + $0x3c]] }
  0xe9   :  { %v706_v24 = vmax.f32 %v705_v18, 0.0  ;;  %s1867_s13 = sld [smem:[#allocation10 + $0x3c]]  ;;  %v719_v29 = vstv %s1859_s9 }
  0xea   :  { %v699_v25 = vadd.f32 %v698_v20, %v688_v17  ;;  %v716_v26 = vadd.f32 %v715_v23, %v713_v22  ;;  %v723_v27 = vstv %s1365_s0  ;;  %s1371_s14 = sld [smem:[#allocation7 + $0x3d]] }
  0xeb   :  { %v709_v28 = vmul.f32 %v708_v21, %v706_v24  ;;  %v724_v30 = vmul.f32 %v1820_v60, %v723_v27  ;;  %v726_v31 = vstv %s1366_s3  ;;  %s1372_s15 = sld [smem:[#allocation8 + $0x3d]] }
  0xec   :  { %v717_v32 = vmax.f32 %v716_v26, 0.0  ;;  %s1871_s16 = sld [smem:[#allocation10 + $0x3d]]  ;;  %v730_v37 = vstv %s1863_s10 }
  0xed   :  { %v710_v33 = vadd.f32 %v709_v28, %v699_v25  ;;  %v727_v34 = vadd.f32 %v726_v31, %v724_v30  ;;  %v734_v35 = vstv %s1368_s11  ;;  %s1374_s17 = sld [smem:[#allocation7 + $0x3e]] }
  0xee   :  { %v720_v36 = vmul.f32 %v719_v29, %v717_v32  ;;  %v735_v38 = vmul.f32 %v1820_v60, %v734_v35  ;;  %v737_v39 = vstv %s1369_s12  ;;  %s1375_s18 = sld [smem:[#allocation8 + $0x3e]] }
  0xef   :  { %v728_v40 = vmax.f32 %v727_v34, 0.0  ;;  %s1875_s19 = sld [smem:[#allocation10 + $0x3e]]  ;;  %v741_v45 = vstv %s1867_s13 }
  0xf0   :  { %v721_v41 = vadd.f32 %v720_v36, %v710_v33  ;;  %v738_v42 = vadd.f32 %v737_v39, %v735_v38  ;;  %v745_v43 = vstv %s1371_s14  ;;  %s1377_s20 = sld [smem:[#allocation7 + $0x3f]] }
  0xf1   :  { %v731_v44 = vmul.f32 %v730_v37, %v728_v40  ;;  %v746_v46 = vmul.f32 %v1820_v60, %v745_v43  ;;  %v748_v47 = vstv %s1372_s15  ;;  %s1378_s21 = sld [smem:[#allocation8 + $0x3f]] }
  0xf2   :  { %v739_v48 = vmax.f32 %v738_v42, 0.0  ;;  %s1879_s22 = sld [smem:[#allocation10 + $0x3f]]  ;;  %v752_v53 = vstv %s1871_s16 }
  0xf3   :  { %v732_v49 = vadd.f32 %v731_v44, %v721_v41  ;;  %v749_v50 = vadd.f32 %v748_v47, %v746_v46  ;;  %v756_v51 = vstv %s1374_s17  ;;  %s1380_s23 = sld [smem:[#allocation7 + $0x40]] }
  0xf4   :  { %v742_v52 = vmul.f32 %v741_v45, %v739_v48  ;;  %v757_v54 = vmul.f32 %v1820_v60, %v756_v51  ;;  %v759_v55 = vstv %s1375_s18  ;;  %s1381_s24 = sld [smem:[#allocation8 + $0x40]] }
  0xf5   :  { %v750_v56 = vmax.f32 %v749_v50, 0.0  ;;  %s1883_s25 = sld [smem:[#allocation10 + $0x40]]  ;;  %v763_v62 = vstv %s1875_s19 }
  0xf6   :  { %v743_v57 = vadd.f32 %v742_v52, %v732_v49  ;;  %v760_v58 = vadd.f32 %v759_v55, %v757_v54  ;;  %v767_v59 = vstv %s1377_s20  ;;  %s1383_s26 = sld [smem:[#allocation7 + $0x41]] }
  0xf7   :  { %v753_v61 = vmul.f32 %v752_v53, %v750_v56  ;;  %v768_v63 = vmul.f32 %v1820_v60, %v767_v59  ;;  %v770_v0 = vstv %s1378_s21  ;;  %s1384_s4 = sld [smem:[#allocation8 + $0x41]] }
  0xf8   :  { %v761_v1 = vmax.f32 %v760_v58, 0.0  ;;  %s1887_s27 = sld [smem:[#allocation10 + $0x41]]  ;;  %v774_v6 = vstv %s1879_s22 }
  0xf9   :  { %v754_v2 = vadd.f32 %v753_v61, %v743_v57  ;;  %v771_v3 = vadd.f32 %v770_v0, %v768_v63  ;;  %v778_v4 = vstv %s1380_s23  ;;  %s1386_s2 = sld [smem:[#allocation7 + $0x42]] }
  0xfa   :  { %v764_v5 = vmul.f32 %v763_v62, %v761_v1  ;;  %v779_v7 = vmul.f32 %v1820_v60, %v778_v4  ;;  %v781_v8 = vstv %s1381_s24  ;;  %s1387_s28 = sld [smem:[#allocation8 + $0x42]] }
  0xfb   :  { %v772_v9 = vmax.f32 %v771_v3, 0.0  ;;  %s1891_s29 = sld [smem:[#allocation10 + $0x42]]  ;;  %v785_v14 = vstv %s1883_s25 }
  0xfc   :  { %v765_v10 = vadd.f32 %v764_v5, %v754_v2  ;;  %v782_v11 = vadd.f32 %v781_v8, %v779_v7  ;;  %v789_v12 = vstv %s1383_s26  ;;  %s1389_s30 = sld [smem:[#allocation7 + $0x43]] }
  0xfd   :  { %v775_v13 = vmul.f32 %v774_v6, %v772_v9  ;;  %v790_v15 = vmul.f32 %v1820_v60, %v789_v12  ;;  %v792_v16 = vstv %s1384_s4  ;;  %s1390_s6 = sld [smem:[#allocation8 + $0x43]] }
  0xfe   :  { %v783_v17 = vmax.f32 %v782_v11, 0.0  ;;  %s1895_s7 = sld [smem:[#allocation10 + $0x43]]  ;;  %v796_v22 = vstv %s1887_s27 }
  0xff   :  { %v776_v18 = vadd.f32 %v775_v13, %v765_v10  ;;  %v793_v19 = vadd.f32 %v792_v16, %v790_v15  ;;  %v800_v20 = vstv %s1386_s2  ;;  %s1392_s8 = sld [smem:[#allocation7 + $0x44]] }
 0x100   :  { %v786_v21 = vmul.f32 %v785_v14, %v783_v17  ;;  %v801_v23 = vmul.f32 %v1820_v60, %v800_v20  ;;  %v803_v24 = vstv %s1387_s28  ;;  %s1393_s1 = sld [smem:[#allocation8 + $0x44]] }
 0x101   :  { %v794_v25 = vmax.f32 %v793_v19, 0.0  ;;  %s1899_s9 = sld [smem:[#allocation10 + $0x44]]  ;;  %v807_v30 = vstv %s1891_s29 }
 0x102   :  { %v787_v26 = vadd.f32 %v786_v21, %v776_v18  ;;  %v804_v27 = vadd.f32 %v803_v24, %v801_v23  ;;  %v811_v28 = vstv %s1389_s30  ;;  %s1395_s0 = sld [smem:[#allocation7 + $0x45]] }
 0x103   :  { %v797_v29 = vmul.f32 %v796_v22, %v794_v25  ;;  %v812_v31 = vmul.f32 %v1820_v60, %v811_v28  ;;  %v814_v32 = vstv %s1390_s6  ;;  %s1396_s3 = sld [smem:[#allocation8 + $0x45]] }
 0x104   :  { %v805_v33 = vmax.f32 %v804_v27, 0.0  ;;  %s1903_s10 = sld [smem:[#allocation10 + $0x45]]  ;;  %v818_v38 = vstv %s1895_s7 }
 0x105   :  { %v798_v34 = vadd.f32 %v797_v29, %v787_v26  ;;  %v815_v35 = vadd.f32 %v814_v32, %v812_v31  ;;  %v822_v36 = vstv %s1392_s8  ;;  %s1398_s11 = sld [smem:[#allocation7 + $0x46]] }
 0x106   :  { %v808_v37 = vmul.f32 %v807_v30, %v805_v33  ;;  %v823_v39 = vmul.f32 %v1820_v60, %v822_v36  ;;  %v825_v40 = vstv %s1393_s1  ;;  %s1399_s12 = sld [smem:[#allocation8 + $0x46]] }
 0x107   :  { %v816_v41 = vmax.f32 %v815_v35, 0.0  ;;  %s1907_s13 = sld [smem:[#allocation10 + $0x46]]  ;;  %v829_v46 = vstv %s1899_s9 }
 0x108   :  { %v809_v42 = vadd.f32 %v808_v37, %v798_v34  ;;  %v826_v43 = vadd.f32 %v825_v40, %v823_v39  ;;  %v833_v44 = vstv %s1395_s0  ;;  %s1401_s14 = sld [smem:[#allocation7 + $0x47]] }
 0x109   :  { %v819_v45 = vmul.f32 %v818_v38, %v816_v41  ;;  %v834_v47 = vmul.f32 %v1820_v60, %v833_v44  ;;  %v836_v48 = vstv %s1396_s3  ;;  %s1402_s15 = sld [smem:[#allocation8 + $0x47]] }
 0x10a   :  { %v827_v49 = vmax.f32 %v826_v43, 0.0  ;;  %s1911_s16 = sld [smem:[#allocation10 + $0x47]]  ;;  %v840_v54 = vstv %s1903_s10 }
 0x10b   :  { %v820_v50 = vadd.f32 %v819_v45, %v809_v42  ;;  %v837_v51 = vadd.f32 %v836_v48, %v834_v47  ;;  %v844_v52 = vstv %s1398_s11  ;;  %s1404_s17 = sld [smem:[#allocation7 + $0x48]] }
 0x10c   :  { %v830_v53 = vmul.f32 %v829_v46, %v827_v49  ;;  %v845_v55 = vmul.f32 %v1820_v60, %v844_v52  ;;  %v847_v56 = vstv %s1399_s12  ;;  %s1405_s18 = sld [smem:[#allocation8 + $0x48]] }
 0x10d   :  { %v838_v57 = vmax.f32 %v837_v51, 0.0  ;;  %s1915_s19 = sld [smem:[#allocation10 + $0x48]]  ;;  %v851_v63 = vstv %s1907_s13 }
 0x10e   :  { %v831_v58 = vadd.f32 %v830_v53, %v820_v50  ;;  %v848_v59 = vadd.f32 %v847_v56, %v845_v55  ;;  %v855_v61 = vstv %s1401_s14  ;;  %s1407_s20 = sld [smem:[#allocation7 + $0x49]] }
 0x10f   :  { %v841_v62 = vmul.f32 %v840_v54, %v838_v57  ;;  %v856_v0 = vmul.f32 %v1820_v60, %v855_v61  ;;  %v858_v1 = vstv %s1402_s15  ;;  %s1408_s21 = sld [smem:[#allocation8 + $0x49]] }
 0x110   :  { %v849_v2 = vmax.f32 %v848_v59, 0.0  ;;  %s1919_s22 = sld [smem:[#allocation10 + $0x49]]  ;;  %v862_v7 = vstv %s1911_s16 }
 0x111   :  { %v842_v3 = vadd.f32 %v841_v62, %v831_v58  ;;  %v859_v4 = vadd.f32 %v858_v1, %v856_v0  ;;  %v866_v5 = vstv %s1404_s17  ;;  %s1410_s23 = sld [smem:[#allocation7 + $0x4a]] }
 0x112   :  { %v852_v6 = vmul.f32 %v851_v63, %v849_v2  ;;  %v867_v8 = vmul.f32 %v1820_v60, %v866_v5  ;;  %v869_v9 = vstv %s1405_s18  ;;  %s1411_s24 = sld [smem:[#allocation8 + $0x4a]] }
 0x113   :  { %v860_v10 = vmax.f32 %v859_v4, 0.0  ;;  %s1923_s25 = sld [smem:[#allocation10 + $0x4a]]  ;;  %v873_v15 = vstv %s1915_s19 }
 0x114   :  { %v853_v11 = vadd.f32 %v852_v6, %v842_v3  ;;  %v870_v12 = vadd.f32 %v869_v9, %v867_v8  ;;  %v877_v13 = vstv %s1407_s20  ;;  %s1413_s26 = sld [smem:[#allocation7 + $0x4b]] }
 0x115   :  { %v863_v14 = vmul.f32 %v862_v7, %v860_v10  ;;  %v878_v16 = vmul.f32 %v1820_v60, %v877_v13  ;;  %v880_v17 = vstv %s1408_s21  ;;  %s1414_s4 = sld [smem:[#allocation8 + $0x4b]] }
 0x116   :  { %v871_v18 = vmax.f32 %v870_v12, 0.0  ;;  %s1927_s27 = sld [smem:[#allocation10 + $0x4b]]  ;;  %v884_v23 = vstv %s1919_s22 }
 0x117   :  { %v864_v19 = vadd.f32 %v863_v14, %v853_v11  ;;  %v881_v20 = vadd.f32 %v880_v17, %v878_v16  ;;  %v888_v21 = vstv %s1410_s23  ;;  %s1416_s2 = sld [smem:[#allocation7 + $0x4c]] }
 0x118   :  { %v874_v22 = vmul.f32 %v873_v15, %v871_v18  ;;  %v889_v24 = vmul.f32 %v1820_v60, %v888_v21  ;;  %v891_v25 = vstv %s1411_s24  ;;  %s1417_s28 = sld [smem:[#allocation8 + $0x4c]] }
 0x119   :  { %v882_v26 = vmax.f32 %v881_v20, 0.0  ;;  %s1931_s29 = sld [smem:[#allocation10 + $0x4c]]  ;;  %v895_v31 = vstv %s1923_s25 }
 0x11a   :  { %v875_v27 = vadd.f32 %v874_v22, %v864_v19  ;;  %v892_v28 = vadd.f32 %v891_v25, %v889_v24  ;;  %v899_v29 = vstv %s1413_s26  ;;  %s1419_s30 = sld [smem:[#allocation7 + $0x4d]] }
 0x11b   :  { %v885_v30 = vmul.f32 %v884_v23, %v882_v26  ;;  %v900_v32 = vmul.f32 %v1820_v60, %v899_v29  ;;  %v902_v33 = vstv %s1414_s4  ;;  %s1420_s6 = sld [smem:[#allocation8 + $0x4d]] }
 0x11c   :  { %v893_v34 = vmax.f32 %v892_v28, 0.0  ;;  %s1935_s7 = sld [smem:[#allocation10 + $0x4d]]  ;;  %v906_v39 = vstv %s1927_s27 }
 0x11d   :  { %v886_v35 = vadd.f32 %v885_v30, %v875_v27  ;;  %v903_v36 = vadd.f32 %v902_v33, %v900_v32  ;;  %v910_v37 = vstv %s1416_s2  ;;  %s1422_s8 = sld [smem:[#allocation7 + $0x4e]] }
 0x11e   :  { %v896_v38 = vmul.f32 %v895_v31, %v893_v34  ;;  %v911_v40 = vmul.f32 %v1820_v60, %v910_v37  ;;  %v913_v41 = vstv %s1417_s28  ;;  %s1423_s1 = sld [smem:[#allocation8 + $0x4e]] }
 0x11f   :  { %v904_v42 = vmax.f32 %v903_v36, 0.0  ;;  %s1939_s9 = sld [smem:[#allocation10 + $0x4e]]  ;;  %v917_v47 = vstv %s1931_s29 }
 0x120   :  { %v897_v43 = vadd.f32 %v896_v38, %v886_v35  ;;  %v914_v44 = vadd.f32 %v913_v41, %v911_v40  ;;  %v921_v45 = vstv %s1419_s30  ;;  %s1425_s0 = sld [smem:[#allocation7 + $0x4f]] }
 0x121   :  { %v907_v46 = vmul.f32 %v906_v39, %v904_v42  ;;  %v922_v48 = vmul.f32 %v1820_v60, %v921_v45  ;;  %v924_v49 = vstv %s1420_s6  ;;  %s1426_s3 = sld [smem:[#allocation8 + $0x4f]] }
 0x122   :  { %v915_v50 = vmax.f32 %v914_v44, 0.0  ;;  %s1943_s10 = sld [smem:[#allocation10 + $0x4f]]  ;;  %v928_v55 = vstv %s1935_s7 }
 0x123   :  { %v908_v51 = vadd.f32 %v907_v46, %v897_v43  ;;  %v925_v52 = vadd.f32 %v924_v49, %v922_v48  ;;  %v932_v53 = vstv %s1422_s8  ;;  %s1428_s11 = sld [smem:[#allocation7 + $0x50]] }
 0x124   :  { %v918_v54 = vmul.f32 %v917_v47, %v915_v50  ;;  %v933_v56 = vmul.f32 %v1820_v60, %v932_v53  ;;  %v935_v57 = vstv %s1423_s1  ;;  %s1429_s12 = sld [smem:[#allocation8 + $0x50]] }
 0x125   :  { %v926_v58 = vmax.f32 %v925_v52, 0.0  ;;  %s1947_s13 = sld [smem:[#allocation10 + $0x50]]  ;;  %v939_v0 = vstv %s1939_s9 }
 0x126   :  { %v919_v59 = vadd.f32 %v918_v54, %v908_v51  ;;  %v936_v61 = vadd.f32 %v935_v57, %v933_v56  ;;  %v943_v62 = vstv %s1425_s0  ;;  %s1431_s14 = sld [smem:[#allocation7 + $0x51]] }
 0x127   :  { %v929_v63 = vmul.f32 %v928_v55, %v926_v58  ;;  %v944_v1 = vmul.f32 %v1820_v60, %v943_v62  ;;  %v946_v2 = vstv %s1426_s3  ;;  %s1432_s15 = sld [smem:[#allocation8 + $0x51]] }
 0x128   :  { %v937_v3 = vmax.f32 %v936_v61, 0.0  ;;  %s1951_s16 = sld [smem:[#allocation10 + $0x51]]  ;;  %v950_v8 = vstv %s1943_s10 }
 0x129   :  { %v930_v4 = vadd.f32 %v929_v63, %v919_v59  ;;  %v947_v5 = vadd.f32 %v946_v2, %v944_v1  ;;  %v954_v6 = vstv %s1428_s11  ;;  %s1434_s17 = sld [smem:[#allocation7 + $0x52]] }
 0x12a   :  { %v940_v7 = vmul.f32 %v939_v0, %v937_v3  ;;  %v955_v9 = vmul.f32 %v1820_v60, %v954_v6  ;;  %v957_v10 = vstv %s1429_s12  ;;  %s1435_s18 = sld [smem:[#allocation8 + $0x52]] }
 0x12b   :  { %v948_v11 = vmax.f32 %v947_v5, 0.0  ;;  %s1955_s19 = sld [smem:[#allocation10 + $0x52]]  ;;  %v961_v16 = vstv %s1947_s13 }
 0x12c   :  { %v941_v12 = vadd.f32 %v940_v7, %v930_v4  ;;  %v958_v13 = vadd.f32 %v957_v10, %v955_v9  ;;  %v965_v14 = vstv %s1431_s14  ;;  %s1437_s20 = sld [smem:[#allocation7 + $0x53]] }
 0x12d   :  { %v951_v15 = vmul.f32 %v950_v8, %v948_v11  ;;  %v966_v17 = vmul.f32 %v1820_v60, %v965_v14  ;;  %v968_v18 = vstv %s1432_s15  ;;  %s1438_s21 = sld [smem:[#allocation8 + $0x53]] }
 0x12e   :  { %v959_v19 = vmax.f32 %v958_v13, 0.0  ;;  %s1959_s22 = sld [smem:[#allocation10 + $0x53]]  ;;  %v972_v24 = vstv %s1951_s16 }
 0x12f   :  { %v952_v20 = vadd.f32 %v951_v15, %v941_v12  ;;  %v969_v21 = vadd.f32 %v968_v18, %v966_v17  ;;  %v976_v22 = vstv %s1434_s17  ;;  %s1440_s23 = sld [smem:[#allocation7 + $0x54]] }
 0x130   :  { %v962_v23 = vmul.f32 %v961_v16, %v959_v19  ;;  %v977_v25 = vmul.f32 %v1820_v60, %v976_v22  ;;  %v979_v26 = vstv %s1435_s18  ;;  %s1441_s24 = sld [smem:[#allocation8 + $0x54]] }
 0x131   :  { %v970_v27 = vmax.f32 %v969_v21, 0.0  ;;  %s1963_s25 = sld [smem:[#allocation10 + $0x54]]  ;;  %v983_v32 = vstv %s1955_s19 }
 0x132   :  { %v963_v28 = vadd.f32 %v962_v23, %v952_v20  ;;  %v980_v29 = vadd.f32 %v979_v26, %v977_v25  ;;  %v987_v30 = vstv %s1437_s20  ;;  %s1443_s26 = sld [smem:[#allocation7 + $0x55]] }
 0x133   :  { %v973_v31 = vmul.f32 %v972_v24, %v970_v27  ;;  %v988_v33 = vmul.f32 %v1820_v60, %v987_v30  ;;  %v990_v34 = vstv %s1438_s21  ;;  %s1444_s4 = sld [smem:[#allocation8 + $0x55]] }
 0x134   :  { %v981_v35 = vmax.f32 %v980_v29, 0.0  ;;  %s1967_s27 = sld [smem:[#allocation10 + $0x55]]  ;;  %v994_v40 = vstv %s1959_s22 }
 0x135   :  { %v974_v36 = vadd.f32 %v973_v31, %v963_v28  ;;  %v991_v37 = vadd.f32 %v990_v34, %v988_v33  ;;  %v998_v38 = vstv %s1440_s23  ;;  %s1446_s2 = sld [smem:[#allocation7 + $0x56]] }
 0x136   :  { %v984_v39 = vmul.f32 %v983_v32, %v981_v35  ;;  %v999_v41 = vmul.f32 %v1820_v60, %v998_v38  ;;  %v1001_v42 = vstv %s1441_s24  ;;  %s1447_s28 = sld [smem:[#allocation8 + $0x56]] }
 0x137   :  { %v992_v43 = vmax.f32 %v991_v37, 0.0  ;;  %s1971_s29 = sld [smem:[#allocation10 + $0x56]]  ;;  %v1005_v48 = vstv %s1963_s25 }
 0x138   :  { %v985_v44 = vadd.f32 %v984_v39, %v974_v36  ;;  %v1002_v45 = vadd.f32 %v1001_v42, %v999_v41  ;;  %v1009_v46 = vstv %s1443_s26  ;;  %s1449_s30 = sld [smem:[#allocation7 + $0x57]] }
 0x139   :  { %v995_v47 = vmul.f32 %v994_v40, %v992_v43  ;;  %v1010_v49 = vmul.f32 %v1820_v60, %v1009_v46  ;;  %v1012_v50 = vstv %s1444_s4  ;;  %s1450_s6 = sld [smem:[#allocation8 + $0x57]] }
 0x13a   :  { %v1003_v51 = vmax.f32 %v1002_v45, 0.0  ;;  %s1975_s7 = sld [smem:[#allocation10 + $0x57]]  ;;  %v1016_v56 = vstv %s1967_s27 }
 0x13b   :  { %v996_v52 = vadd.f32 %v995_v47, %v985_v44  ;;  %v1013_v53 = vadd.f32 %v1012_v50, %v1010_v49  ;;  %v1020_v54 = vstv %s1446_s2  ;;  %s1452_s8 = sld [smem:[#allocation7 + $0x58]] }
 0x13c   :  { %v1006_v55 = vmul.f32 %v1005_v48, %v1003_v51  ;;  %v1021_v57 = vmul.f32 %v1820_v60, %v1020_v54  ;;  %v1023_v58 = vstv %s1447_s28  ;;  %s1453_s1 = sld [smem:[#allocation8 + $0x58]] }
 0x13d   :  { %v1014_v59 = vmax.f32 %v1013_v53, 0.0  ;;  %s1979_s9 = sld [smem:[#allocation10 + $0x58]]  ;;  %v1027_v1 = vstv %s1971_s29 }
 0x13e   :  { %v1007_v61 = vadd.f32 %v1006_v55, %v996_v52  ;;  %v1024_v62 = vadd.f32 %v1023_v58, %v1021_v57  ;;  %v1031_v63 = vstv %s1449_s30  ;;  %s1455_s0 = sld [smem:[#allocation7 + $0x59]]  ;;  %v1494_v58 = vld [vmem:[#allocation3] sm:$0xff] }
 0x13f   :  { %v1017_v0 = vmul.f32 %v1016_v56, %v1014_v59  ;;  %v1032_v2 = vmul.f32 %v1820_v60, %v1031_v63  ;;  %v1034_v3 = vstv %s1450_s6  ;;  %s1456_s3 = sld [smem:[#allocation8 + $0x59]] }
 0x140   :  { %v1025_v4 = vmax.f32 %v1024_v62, 0.0  ;;  %s1983_s10 = sld [smem:[#allocation10 + $0x59]]  ;;  %v1038_v9 = vstv %s1975_s7 }
 0x141   :  { %v1018_v5 = vadd.f32 %v1017_v0, %v1007_v61  ;;  %v1035_v6 = vadd.f32 %v1034_v3, %v1032_v2  ;;  %v1042_v7 = vstv %s1452_s8  ;;  %s1458_s11 = sld [smem:[#allocation7 + $0x5a]] }
 0x142   :  { %v1028_v8 = vmul.f32 %v1027_v1, %v1025_v4  ;;  %v1043_v10 = vmul.f32 %v1820_v60, %v1042_v7  ;;  %v1045_v11 = vstv %s1453_s1  ;;  %s1459_s12 = sld [smem:[#allocation8 + $0x5a]] }
 0x143   :  { %v1036_v12 = vmax.f32 %v1035_v6, 0.0  ;;  %s1987_s13 = sld [smem:[#allocation10 + $0x5a]]  ;;  %v1049_v17 = vstv %s1979_s9 }
 0x144   :  { %v1029_v13 = vadd.f32 %v1028_v8, %v1018_v5  ;;  %v1046_v14 = vadd.f32 %v1045_v11, %v1043_v10  ;;  %v1053_v15 = vstv %s1455_s0  ;;  %s1461_s14 = sld [smem:[#allocation7 + $0x5b]] }
 0x145   :  { %v1039_v16 = vmul.f32 %v1038_v9, %v1036_v12  ;;  %v1054_v18 = vmul.f32 %v1820_v60, %v1053_v15  ;;  %v1056_v19 = vstv %s1456_s3  ;;  %s1462_s15 = sld [smem:[#allocation8 + $0x5b]] }
 0x146   :  { %v1047_v20 = vmax.f32 %v1046_v14, 0.0  ;;  %s1991_s16 = sld [smem:[#allocation10 + $0x5b]]  ;;  %v1060_v25 = vstv %s1983_s10 }
 0x147   :  { %v1040_v21 = vadd.f32 %v1039_v16, %v1029_v13  ;;  %v1057_v22 = vadd.f32 %v1056_v19, %v1054_v18  ;;  %v1064_v23 = vstv %s1458_s11  ;;  %s1464_s17 = sld [smem:[#allocation7 + $0x5c]]  ;;  %s1583_s11 = smov [#allocation11]  }
 0x148   :  { %v1050_v24 = vmul.f32 %v1049_v17, %v1047_v20  ;;  %v1065_v26 = vmul.f32 %v1820_v60, %v1064_v23  ;;  %v1067_v27 = vstv %s1459_s12  ;;  %s1465_s18 = sld [smem:[#allocation8 + $0x5c]]  ;;  %s1180_s12 = sshll.u32 %s1583_s11, 4  ;;  %s1181_s12 = int_to_ptr.vmem [resolvable:$true] %s1180_s12 }
 0x149   :  { %v1058_v28 = vmax.f32 %v1057_v22, 0.0  ;;  %s1995_s19 = sld [smem:[#allocation10 + $0x5c]]  ;;  %v1071_v33 = vstv %s1987_s13  ;;  %s1551_s13 = scalar_lea.vmem %s1181_s12, 128 }
 0x14a   :  { %v1051_v29 = vadd.f32 %v1050_v24, %v1040_v21  ;;  %v1068_v30 = vadd.f32 %v1067_v27, %v1065_v26  ;;  %v1075_v31 = vstv %s1461_s14  ;;  %s1467_s20 = sld [smem:[#allocation7 + $0x5d]]  ;;  %p1552_p6 = scmp.ne.s32.totalorder %s1181_s12, %s1551_s13 }
 0x14b   :  { %v1061_v32 = vmul.f32 %v1060_v25, %v1058_v28  ;;  %v1076_v34 = vmul.f32 %v1820_v60, %v1075_v31  ;;  %v1078_v35 = vstv %s1462_s15  ;;  %s1468_s21 = sld [smem:[#allocation8 + $0x5d]]  ;;  %p1556_p7 = scmp.lt.s32.totalorder %s1181_s12, %s1181_s12 }
 0x14c   :  { %v1069_v36 = vmax.f32 %v1068_v30, 0.0  ;;  %s1999_s22 = sld [smem:[#allocation10 + $0x5d]]  ;;  %v1082_v41 = vstv %s1991_s16  ;;  %p1557_p8 = scmp.lt.s32.totalorder %s1551_s13, %s1551_s13 }
 0x14d   :  { %v1062_v37 = vadd.f32 %v1061_v32, %v1051_v29  ;;  %v1079_v38 = vadd.f32 %v1078_v35, %v1076_v34  ;;  %v1086_v39 = vstv %s1464_s17  ;;  %s1470_s23 = sld [smem:[#allocation7 + $0x5e]] }
 0x14e   :  { %v1072_v40 = vmul.f32 %v1071_v33, %v1069_v36  ;;  %v1087_v42 = vmul.f32 %v1820_v60, %v1086_v39  ;;  %v1089_v43 = vstv %s1465_s18  ;;  %s1471_s24 = sld [smem:[#allocation8 + $0x5e]]  ;;  %p1558_p9 = por %p1557_p8, %p1556_p7 }
 0x14f   :  { %v1080_v44 = vmax.f32 %v1079_v38, 0.0  ;;  %s2003_s25 = sld [smem:[#allocation10 + $0x5e]]  ;;  %v1093_v49 = vstv %s1995_s19 }
 0x150   :  { %v1073_v45 = vadd.f32 %v1072_v40, %v1062_v37  ;;  %v1090_v46 = vadd.f32 %v1089_v43, %v1087_v42  ;;  %v1097_v47 = vstv %s1467_s20  ;;  %s1473_s26 = sld [smem:[#allocation7 + $0x5f]]  ;;  %p1559_p10 = pnand %p1558_p9, %p1552_p6 }
 0x151   :  { %v1083_v48 = vmul.f32 %v1082_v41, %v1080_v44  ;;  %v1098_v50 = vmul.f32 %v1820_v60, %v1097_v47  ;;  %v1100_v51 = vstv %s1468_s21  ;;  %s1474_s4 = sld [smem:[#allocation8 + $0x5f]] }
 0x152   :  { %v1091_v52 = vmax.f32 %v1090_v46, 0.0  ;;  %s2007_s27 = sld [smem:[#allocation10 + $0x5f]]  ;;  %v1104_v57 = vstv %s1999_s22 }
 0x153   :  { %v1084_v53 = vadd.f32 %v1083_v48, %v1073_v45  ;;  %v1101_v54 = vadd.f32 %v1100_v51, %v1098_v50  ;;  %v1108_v55 = vstv %s1470_s23  ;;  %s1476_s2 = sld [smem:[#allocation7 + $0x60]] }
 0x154   :  { %v1094_v56 = vmul.f32 %v1093_v49, %v1091_v52  ;;  %v1109_v59 = vmul.f32 %v1494_v58, %v1108_v55  ;;  %v1111_v61 = vstv %s1471_s24  ;;  %s1477_s28 = sld [smem:[#allocation8 + $0x60]] }
 0x155   :  { %v1102_v62 = vmax.f32 %v1101_v54, 0.0  ;;  %s2010_s29 = sld [smem:[#allocation10 + $0x60]]  ;;  %v1115_v2 = vstv %s2003_s25 }
 0x156   :  { %v1095_v60 = vadd.f32 %v1094_v56, %v1084_v53  ;;  %v1112_v63 = vadd.f32 %v1111_v61, %v1109_v59  ;;  %v1119_v0 = vstv %s1473_s26  ;;  %s1479_s30 = sld [smem:[#allocation7 + $0x61]] }
 0x157   :  { %v1105_v1 = vmul.f32 %v1104_v57, %v1102_v62  ;;  %v1120_v3 = vmul.f32 %v1494_v58, %v1119_v0  ;;  %v1122_v4 = vstv %s1474_s4  ;;  %s1480_s6 = sld [smem:[#allocation8 + $0x61]] }
 0x158   :  { %v1113_v5 = vmax.f32 %v1112_v63, 0.0  ;;  %s2013_s7 = sld [smem:[#allocation10 + $0x61]]  ;;  %v1126_v10 = vstv %s2007_s27 }
 0x159   :  { %v1106_v6 = vadd.f32 %v1105_v1, %v1095_v60  ;;  %v1123_v7 = vadd.f32 %v1122_v4, %v1120_v3  ;;  %v1130_v8 = vstv %s1476_s2  ;;  %s1482_s8 = sld [smem:[#allocation7 + $0x62]] }
 0x15a   :  { %v1116_v9 = vmul.f32 %v1115_v2, %v1113_v5  ;;  %v1131_v11 = vmul.f32 %v1494_v58, %v1130_v8  ;;  %v1133_v12 = vstv %s1477_s28  ;;  %s1483_s1 = sld [smem:[#allocation8 + $0x62]] }
 0x15b   :  { %v1124_v13 = vmax.f32 %v1123_v7, 0.0  ;;  %s1484_s9 = sld [smem:[#allocation10 + $0x62]]  ;;  %v1137_v18 = vstv %s2010_s29 }
 0x15c   :  { %v1117_v14 = vadd.f32 %v1116_v9, %v1106_v6  ;;  %v1134_v15 = vadd.f32 %v1133_v12, %v1131_v11  ;;  %v1141_v16 = vstv %s1479_s30  ;;  %s1485_s0 = sld [smem:[#allocation7 + $0x63]] }
 0x15d   :  { %v1127_v17 = vmul.f32 %v1126_v10, %v1124_v13  ;;  %v1142_v19 = vmul.f32 %v1494_v58, %v1141_v16  ;;  %v1144_v20 = vstv %s1480_s6  ;;  %s1486_s3 = sld [smem:[#allocation8 + $0x63]] }
 0x15e   :  { %v1135_v21 = vmax.f32 %v1134_v15, 0.0  ;;  %s1487_s10 = sld [smem:[#allocation10 + $0x63]]  ;;  %v1148_v26 = vstv %s2013_s7 }
 0x15f   :  { %v1128_v22 = vadd.f32 %v1127_v17, %v1117_v14  ;;  %v1145_v23 = vadd.f32 %v1144_v20, %v1142_v19  ;;  %v1152_v24 = vstv %s1482_s8 }
 0x160   :  { %v1138_v25 = vmul.f32 %v1137_v18, %v1135_v21  ;;  %v1153_v27 = vmul.f32 %v1494_v58, %v1152_v24  ;;  %v1155_v28 = vstv %s1483_s1 }
 0x161   :  { %v1146_v29 = vmax.f32 %v1145_v23, 0.0  ;;  %v1159_v34 = vstv %s1484_s9 }
 0x162   :  { %v1139_v30 = vadd.f32 %v1138_v25, %v1128_v22  ;;  %v1156_v31 = vadd.f32 %v1155_v28, %v1153_v27  ;;  %v1163_v32 = vstv %s1485_s0 }
 0x163   :  { %v1149_v33 = vmul.f32 %v1148_v26, %v1146_v29  ;;  %v1164_v35 = vmul.f32 %v1494_v58, %v1163_v32  ;;  %v1166_v36 = vstv %s1486_s3 }
 0x164   :  { %v1157_v37 = vmax.f32 %v1156_v31, 0.0  ;;  %v1170_v41 = vstv %s1487_s10 }
 0x165   :  { %v1150_v38 = vadd.f32 %v1149_v33, %v1139_v30  ;;  %v1167_v39 = vadd.f32 %v1166_v36, %v1164_v35 }
 0x166   :  { %v1160_v40 = vmul.f32 %v1159_v34, %v1157_v37 }
 0x167   :  { %v1168_v42 = vmax.f32 %v1167_v39, 0.0 }
 0x168   :  { %v1161_v43 = vadd.f32 %v1160_v40, %v1150_v38 }
 0x169   :  { %v1171_v44 = vmul.f32 %v1170_v41, %v1168_v42 }
 0x16b   :  { %v1172_v45 = vadd.f32 %v1171_v44, %v1161_v43 }
 0x16d   :  { %1173 = vst [vmem:[#allocation11] sm:$0xff] %v1172_v45 }
 0x16e   :  { %1562 = shalt.err (!%p1559_p10)
}
 0x16f   :  { %1183 = dma.vmem_to_hbm [thread:$0]  %s1181_s12, 128, %s2026_s5, [#allocation5]  }
 0x170   :  { %1577 = dma.done.wait [#allocation5], 128  }
 0x171   :  { %1578 = vsyncadd [#allocation5], 4294967168 }
 0x172   :  { %1187 = vsyncpa [#allocation4], 1 }
 0x173   :  { %1188 = vsyncpa [#allocation5], 1 }
 0x174   :  { %1189 = vsyncpa [#allocation6], 1 }
 0x175   :  { %1190 = vsyncpa [#allocation9], 1 }

</bundles_post_ra>
